<compile_context>
chip_gen: v6e
topology: v6e:2x2x1
jax: 0.10.0
libtpu: 0.0.40
codegen_flags: <defaults>
</compile_context>

<pallas_src>
import math
from functools import partial

import jax
import jax.numpy as jnp
from jax.experimental import pallas as pl
from jax.experimental.pallas import tpu as pltpu


# ----------------------------- elementwise helpers ---------------------------

def _gelu(x):
    # tanh-approximation GELU; routes the transcendental to the EUP slot.
    c = 0.7978845608028654  # sqrt(2/pi)
    return 0.5 * x * (1.0 + jnp.tanh(c * (x + 0.044715 * x * x * x)))


def _layernorm(x, w, b, eps=1e-5):
    mu = jnp.mean(x, axis=-1, keepdims=True)
    xc = x - mu
    var = jnp.mean(xc * xc, axis=-1, keepdims=True)
    return xc * jax.lax.rsqrt(var + eps) * w + b


# --------------------------------- kernels -----------------------------------

def _fused_encoder_kernel(xw_ref, negm_ref, keepc_ref, pe_ref,
                          cw_ref, cb_ref,
                          wq_ref, bq_ref, wk_ref, bk_ref, wv_ref, bv_ref,
                          wo_ref, bo_ref, ln1w_ref, ln1b_ref,
                          w1_ref, b1_ref, w2_ref, b2_ref, ln2w_ref, ln2b_ref,
                          o_ref, *, n_heads):
    """Fused conv(im2col) + PE + N post-norm encoder layers + final GELU/mask.

    Per grid step (one batch row):
      xw:   (S, K*F)  im2col causal-conv windows (f32)
      negm: (1, S)    additive key-padding mask (0 keep / -1e30 pad)
      keepc:(S, 1)    multiplicative keep mask for the output
      out:  (S, D)    masked, activated encoder output
    Weights are stacked over layers on a leading axis and kept VMEM-resident.
    """
    S, D = o_ref.shape
    H = n_heads
    Dh = D // H
    num_layers = wq_ref.shape[0]
    bf16 = jnp.bfloat16
    f32 = jnp.float32

    neg_mask = negm_ref[...]                       # (1, S)

    # conv (single im2col matmul; sqrt(d_model) folded into weights) + pos enc.
    x = (jnp.dot(xw_ref[...].astype(bf16), cw_ref[...],
                 preferred_element_type=f32)
         + cb_ref[...] + pe_ref[...])              # (S, D) f32

    for li in range(num_layers):                   # static loop, weights by
        xb = x.astype(bf16)                        # static leading-axis index
        q = jnp.dot(xb, wq_ref[li], preferred_element_type=f32) + bq_ref[li]
        k = jnp.dot(xb, wk_ref[li], preferred_element_type=f32) + bk_ref[li]
        v = jnp.dot(xb, wv_ref[li], preferred_element_type=f32) + bv_ref[li]

        # Per-head attention (contraction depth is head_dim by construction).
        # Note: fully-masked rows give a uniform softmax instead of PyTorch's
        # NaN propagation — benign divergence, kept from the original kernel.
        ctxs = []
        for h in range(H):                         # small static head loop
            lo = h * Dh
            qh = q[:, lo:lo + Dh]
            kh = k[:, lo:lo + Dh]
            vh = v[:, lo:lo + Dh]
            s = jnp.einsum('qd,kd->qk', qh.astype(bf16), kh.astype(bf16),
                           preferred_element_type=f32)       # (S, S)
            s = s + neg_mask                                  # key padding mask
            m = jnp.max(s, axis=-1, keepdims=True)
            e = jnp.exp(s - m)
            p = e * pl.reciprocal(jnp.sum(e, axis=-1, keepdims=True),
                                  approx=True)
            ctxs.append(jnp.dot(p.astype(bf16), vh.astype(bf16),
                                preferred_element_type=f32))  # (S, Dh)
        ctx = jnp.concatenate(ctxs, axis=-1)                  # (S, D)

        # single full-depth out-projection
        attn = (jnp.dot(ctx.astype(bf16), wo_ref[li],
                        preferred_element_type=f32) + bo_ref[li])

        # residual + LayerNorm1
        src = _layernorm(x + attn, ln1w_ref[li], ln1b_ref[li])

        # feed-forward
        h1 = _gelu(jnp.dot(src.astype(bf16), w1_ref[li],
                           preferred_element_type=f32) + b1_ref[li])
        h2 = (jnp.dot(h1.astype(bf16), w2_ref[li],
                      preferred_element_type=f32) + b2_ref[li])

        # residual + LayerNorm2
        x = _layernorm(src + h2, ln2w_ref[li], ln2b_ref[li])

    # final activation, dropout1 is identity (eval), multiply by padding mask.
    o_ref[...] = _gelu(x) * keepc_ref[...]


def _head_kernel(y_ref, w_ref, b_ref, o_ref):
    """Output Linear on the flattened, masked encoder output.
    y: (1, S*D), w: (S*D, C_pad) bf16, b/out: (1, C_pad) with C padded to 128."""
    o_ref[...] = (jnp.dot(y_ref[...].astype(jnp.bfloat16), w_ref[...],
                          preferred_element_type=jnp.float32) + b_ref[...])


# --------------------------------- params ------------------------------------

def fixed_pos_encoding(max_len, d_model):
    """'fixed' sinusoidal positional encoding from the mvts codebase."""
    position = jnp.arange(max_len, dtype=jnp.float32)[:, None]
    div_term = jnp.exp(jnp.arange(0, d_model, 2, dtype=jnp.float32)
                       * (-math.log(10000.0) / d_model))
    pe = jnp.zeros((max_len, d_model), jnp.float32)
    pe = pe.at[:, 0::2].set(jnp.sin(position * div_term))
    pe = pe.at[:, 1::2].set(jnp.cos(position * div_term))
    return pe


def init_params(key, *, feat_dim, max_len, d_model, n_heads, num_layers,
                dim_feedforward, num_classes, conv_kernel_size, conv_stride=1):
    """Random parameters in a torch-like layout: Linear weights are stored as
    (in_features, out_features) (== torch weight.T); Conv1d weight as
    (K, C_in, C_out) (== torch weight.permute(2, 1, 0))."""
    eff_len = (max_len - 1) // conv_stride + 1
    ks = jax.random.split(key, 4 + num_layers)

    def w(k, shape, scale=0.05):
        return (scale * jax.random.normal(k, shape)).astype(jnp.float32)

    params = {
        'conv_w': w(ks[0], (conv_kernel_size, feat_dim, d_model)),
        'conv_b': w(ks[1], (1, d_model)),
        'out_w': w(ks[2], (eff_len * d_model, num_classes)),
        'out_b': w(ks[3], (1, num_classes)),
        'conv_stride': conv_stride,
        'max_len': max_len,
        'num_classes': num_classes,
        'layers': [],
    }
    for i in range(num_layers):
        lk = jax.random.split(ks[4 + i], 12)
        params['layers'].append({
            'wq': w(lk[0], (d_model, d_model)), 'bq': w(lk[1], (1, d_model)),
            'wk': w(lk[2], (d_model, d_model)), 'bk': w(lk[3], (1, d_model)),
            'wv': w(lk[4], (d_model, d_model)), 'bv': w(lk[5], (1, d_model)),
            'wo': w(lk[6], (d_model, d_model)), 'bo': w(lk[7], (1, d_model)),
            'ln1w': jnp.ones((1, d_model), jnp.float32),
            'ln1b': jnp.zeros((1, d_model), jnp.float32),
            'w1': w(lk[8], (d_model, dim_feedforward)),
            'b1': w(lk[9], (1, dim_feedforward)),
            'w2': w(lk[10], (dim_feedforward, d_model)),
            'b2': w(lk[11], (1, d_model)),
            'ln2w': jnp.ones((1, d_model), jnp.float32),
            'ln2b': jnp.zeros((1, d_model), jnp.float32),
        })
    return params


def prepare_params(params, *, n_heads):
    """One-time prep: fold constant scales into weights, reshape the conv weight
    for im2col, stack per-layer weights on a leading axis, cast matmul weights
    to bf16, and pad the output head to a lane-dense 128-wide class dim."""
    K, F, D = params['conv_w'].shape
    assert D % n_heads == 0
    Dh = D // n_heads
    qscale = 1.0 / math.sqrt(Dh)
    dscale = math.sqrt(D)
    bf16 = jnp.bfloat16

    def stack(name, fold=None, dtype=None):
        a = jnp.stack([lp[name] for lp in params['layers']], axis=0)
        if fold is not None:
            a = a * fold
        if dtype is not None:
            a = a.astype(dtype)
        return a

    stride = params['conv_stride']
    eff_len = (params['max_len'] - 1) // stride + 1
    C = params['num_classes']
    C_pad = ((C + 127) // 128) * 128
    out_w = jnp.pad(params['out_w'], ((0, 0), (0, C_pad - C)))
    out_b = jnp.pad(params['out_b'], ((0, 0), (0, C_pad - C)))

    return {
        'conv_stride': stride,
        'conv_kernel_size': K,
        'num_classes': C,
        # im2col conv weight (K*F, D); sqrt(d_model) scale folded in.
        'conv_w': (params['conv_w'].reshape(K * F, D) * dscale).astype(bf16),
        'conv_b': params['conv_b'] * dscale,
        'pe': fixed_pos_encoding(eff_len, D),
        # 1/sqrt(head_dim) folded into the query projection.
        'wq': stack('wq', fold=qscale, dtype=bf16), 'bq': stack('bq', fold=qscale),
        'wk': stack('wk', dtype=bf16), 'bk': stack('bk'),
        'wv': stack('wv', dtype=bf16), 'bv': stack('bv'),
        'wo': stack('wo', dtype=bf16), 'bo': stack('bo'),
        'ln1w': stack('ln1w'), 'ln1b': stack('ln1b'),
        'w1': stack('w1', dtype=bf16), 'b1': stack('b1'),
        'w2': stack('w2', dtype=bf16), 'b2': stack('b2'),
        'ln2w': stack('ln2w'), 'ln2b': stack('ln2b'),
        'out_w': out_w.astype(bf16),
        'out_b': out_b,
    }


# --------------------------------- forward -----------------------------------

def _full_spec(shape):
    n = len(shape)
    return pl.BlockSpec(shape, lambda b: (0,) * n)


def conv_ts_transformer_forward(prep, X, padding_masks, *, n_heads):
    """Forward pass (eval mode). X: (B, L, feat_dim) f32,
    padding_masks: (B, L) bool (True = keep). Returns (B, num_classes)."""
    B, L, F = X.shape
    K = prep['conv_kernel_size']
    stride = prep['conv_stride']
    pe = prep['pe']
    L_out, D = pe.shape
    assert L_out == (L - 1) // stride + 1, "seq_length must match max_len"
    assert prep['out_w'].shape[0] == L_out * D

    # ---- XLA-side prep (cheap, metadata-ish): im2col windows & masks ----
    # ConstantPad1d((K-1, 0)) causal left pad along the sequence axis, then
    # windows[b, l, k*F + f] = xpad[b, l*stride + k, f]  (honours conv_stride).
    xpad = jnp.pad(X.astype(jnp.float32), ((0, 0), (K - 1, 0), (0, 0)))
    cols = [xpad[:, k: k + (L_out - 1) * stride + 1: stride, :] for k in range(K)]
    xw = jnp.concatenate(cols, axis=-1)                        # (B, L_out, K*F)
    keep = padding_masks[:, ::stride].astype(jnp.float32)      # (B, L_out)
    negm = ((1.0 - keep) * jnp.float32(-1e30)).reshape(B, 1, L_out)
    keepc = keep.reshape(B, L_out, 1)
    KF = K * F

    cparams = pltpu.CompilerParams(
        dimension_semantics=("parallel",),         # megacore-parallel batch axis
        vmem_limit_bytes=32 * 1024 * 1024)

    # ---- fused conv + PE + encoder layers + final GELU/mask ----
    enc = pl.pallas_call(
        partial(_fused_encoder_kernel, n_heads=n_heads),
        grid=(B,),
        out_shape=jax.ShapeDtypeStruct((B, L_out, D), jnp.float32),
        in_specs=[
            pl.BlockSpec((None, L_out, KF), lambda b: (b, 0, 0)),  # im2col input
            pl.BlockSpec((None, 1, L_out), lambda b: (b, 0, 0)),   # additive mask
            pl.BlockSpec((None, L_out, 1), lambda b: (b, 0, 0)),   # keep column
            _full_spec(pe.shape),
            _full_spec(prep['conv_w'].shape), _full_spec(prep['conv_b'].shape),
            _full_spec(prep['wq'].shape), _full_spec(prep['bq'].shape),
            _full_spec(prep['wk'].shape), _full_spec(prep['bk'].shape),
            _full_spec(prep['wv'].shape), _full_spec(prep['bv'].shape),
            _full_spec(prep['wo'].shape), _full_spec(prep['bo'].shape),
            _full_spec(prep['ln1w'].shape), _full_spec(prep['ln1b'].shape),
            _full_spec(prep['w1'].shape), _full_spec(prep['b1'].shape),
            _full_spec(prep['w2'].shape), _full_spec(prep['b2'].shape),
            _full_spec(prep['ln2w'].shape), _full_spec(prep['ln2b'].shape),
        ],
        out_specs=pl.BlockSpec((None, L_out, D), lambda b: (b, 0, 0)),
        compiler_params=cparams,
    )(xw, negm, keepc, pe, prep['conv_w'], prep['conv_b'],
      prep['wq'], prep['bq'], prep['wk'], prep['bk'], prep['wv'], prep['bv'],
      prep['wo'], prep['bo'], prep['ln1w'], prep['ln1b'],
      prep['w1'], prep['b1'], prep['w2'], prep['b2'],
      prep['ln2w'], prep['ln2b'])

    # ---- output head: flatten in XLA (free), lane-dense padded classes ----
    y = enc.reshape(B, 1, L_out * D)
    C_pad = prep['out_w'].shape[1]
    out = pl.pallas_call(
        _head_kernel,
        grid=(B,),
        out_shape=jax.ShapeDtypeStruct((B, 1, C_pad), jnp.float32),
        in_specs=[pl.BlockSpec((None, 1, L_out * D), lambda b: (b, 0, 0)),
                  _full_spec(prep['out_w'].shape),
                  _full_spec(prep['out_b'].shape)],
        out_specs=pl.BlockSpec((None, 1, C_pad), lambda b: (b, 0, 0)),
        compiler_params=cparams,
    )(y, prep['out_w'], prep['out_b'])

    return out.reshape(B, C_pad)[:, :prep['num_classes']]


# ----------------------------------- main ------------------------------------

if __name__ == "__main__":
    # Small shapes consistent with the module's forward contract.
    B, L, FEAT = 2, 16, 4
    D_MODEL, N_HEADS, NUM_LAYERS, DIM_FF, NUM_CLASSES, K = 32, 4, 2, 64, 3, 7
    CONV_STRIDE = 1

    key = jax.random.PRNGKey(0)
    k_x, k_p = jax.random.split(key)

    X = jax.random.normal(k_x, (B, L, FEAT), dtype=jnp.float32)
    # Deterministic padding masks: batch 0 fully valid, batch 1 has 4 pad steps.
    lengths = jnp.array([16, 12], dtype=jnp.int32)
    padding_masks = jnp.arange(L)[None, :] < lengths[:, None]   # (B, L) bool

    params = init_params(k_p, feat_dim=FEAT, max_len=L, d_model=D_MODEL,
                         n_heads=N_HEADS, num_layers=NUM_LAYERS,
                         dim_feedforward=DIM_FF, num_classes=NUM_CLASSES,
                         conv_kernel_size=K, conv_stride=CONV_STRIDE)
    prep = prepare_params(params, n_heads=N_HEADS)

    out = conv_ts_transformer_forward(prep, X, padding_masks, n_heads=N_HEADS)
    jax.block_until_ready(out)
    assert out.shape == (B, NUM_CLASSES), out.shape
    assert bool(jnp.all(jnp.isfinite(out)))
    print("KERNEL_OK")
</pallas_src>

<mosaic_0001>
module attributes {stable_mosaic.version = 11 : i64} {
  func.func @_fused_encoder_kernel(%arg0: i32, %arg1: memref<1x16x28xf32, #tpu.memory_space<vmem>>, %arg2: memref<1x1x16xf32, #tpu.memory_space<vmem>>, %arg3: memref<1x16x1xf32, #tpu.memory_space<vmem>>, %arg4: memref<16x32xf32, #tpu.memory_space<vmem>>, %arg5: memref<28x32xbf16, #tpu.memory_space<vmem>>, %arg6: memref<1x32xf32, #tpu.memory_space<vmem>>, %arg7: memref<2x32x32xbf16, #tpu.memory_space<vmem>>, %arg8: memref<2x1x32xf32, #tpu.memory_space<vmem>>, %arg9: memref<2x32x32xbf16, #tpu.memory_space<vmem>>, %arg10: memref<2x1x32xf32, #tpu.memory_space<vmem>>, %arg11: memref<2x32x32xbf16, #tpu.memory_space<vmem>>, %arg12: memref<2x1x32xf32, #tpu.memory_space<vmem>>, %arg13: memref<2x32x32xbf16, #tpu.memory_space<vmem>>, %arg14: memref<2x1x32xf32, #tpu.memory_space<vmem>>, %arg15: memref<2x1x32xf32, #tpu.memory_space<vmem>>, %arg16: memref<2x1x32xf32, #tpu.memory_space<vmem>>, %arg17: memref<2x32x64xbf16, #tpu.memory_space<vmem>>, %arg18: memref<2x1x64xf32, #tpu.memory_space<vmem>>, %arg19: memref<2x64x32xbf16, #tpu.memory_space<vmem>>, %arg20: memref<2x1x32xf32, #tpu.memory_space<vmem>>, %arg21: memref<2x1x32xf32, #tpu.memory_space<vmem>>, %arg22: memref<2x1x32xf32, #tpu.memory_space<vmem>>, %arg23: memref<1x16x32xf32, #tpu.memory_space<vmem>>) attributes {dimension_semantics = [#tpu.dimension_semantics<parallel>], iteration_bounds = array<i64: 2>, scalar_prefetch = 0 : i64, scratch_operands = 0 : i64, tpu.core_type = #tpu.core_type<tc>, window_params = [{transform_indices = @transform_0, window_bounds = array<i64: 1, 16, 28>}, {transform_indices = @transform_1, window_bounds = array<i64: 1, 1, 16>}, {transform_indices = @transform_2, window_bounds = array<i64: 1, 16, 1>}, {pipeline_mode = #tpu.pipeline_mode<synchronous>, transform_indices = @transform_3, window_bounds = array<i64: 16, 32>}, {pipeline_mode = #tpu.pipeline_mode<synchronous>, transform_indices = @transform_4, window_bounds = array<i64: 28, 32>}, {pipeline_mode = #tpu.pipeline_mode<synchronous>, transform_indices = @transform_5, window_bounds = array<i64: 1, 32>}, {pipeline_mode = #tpu.pipeline_mode<synchronous>, transform_indices = @transform_6, window_bounds = array<i64: 2, 32, 32>}, {pipeline_mode = #tpu.pipeline_mode<synchronous>, transform_indices = @transform_7, window_bounds = array<i64: 2, 1, 32>}, {pipeline_mode = #tpu.pipeline_mode<synchronous>, transform_indices = @transform_8, window_bounds = array<i64: 2, 32, 32>}, {pipeline_mode = #tpu.pipeline_mode<synchronous>, transform_indices = @transform_9, window_bounds = array<i64: 2, 1, 32>}, {pipeline_mode = #tpu.pipeline_mode<synchronous>, transform_indices = @transform_10, window_bounds = array<i64: 2, 32, 32>}, {pipeline_mode = #tpu.pipeline_mode<synchronous>, transform_indices = @transform_11, window_bounds = array<i64: 2, 1, 32>}, {pipeline_mode = #tpu.pipeline_mode<synchronous>, transform_indices = @transform_12, window_bounds = array<i64: 2, 32, 32>}, {pipeline_mode = #tpu.pipeline_mode<synchronous>, transform_indices = @transform_13, window_bounds = array<i64: 2, 1, 32>}, {pipeline_mode = #tpu.pipeline_mode<synchronous>, transform_indices = @transform_14, window_bounds = array<i64: 2, 1, 32>}, {pipeline_mode = #tpu.pipeline_mode<synchronous>, transform_indices = @transform_15, window_bounds = array<i64: 2, 1, 32>}, {pipeline_mode = #tpu.pipeline_mode<synchronous>, transform_indices = @transform_16, window_bounds = array<i64: 2, 32, 64>}, {pipeline_mode = #tpu.pipeline_mode<synchronous>, transform_indices = @transform_17, window_bounds = array<i64: 2, 1, 64>}, {pipeline_mode = #tpu.pipeline_mode<synchronous>, transform_indices = @transform_18, window_bounds = array<i64: 2, 64, 32>}, {pipeline_mode = #tpu.pipeline_mode<synchronous>, transform_indices = @transform_19, window_bounds = array<i64: 2, 1, 32>}, {pipeline_mode = #tpu.pipeline_mode<synchronous>, transform_indices = @transform_20, window_bounds = array<i64: 2, 1, 32>}, {pipeline_mode = #tpu.pipeline_mode<synchronous>, transform_indices = @transform_21, window_bounds = array<i64: 2, 1, 32>}, {transform_indices = @transform_22, window_bounds = array<i64: 1, 16, 32>}]} {
    %c0 = arith.constant 0 : index
    %c0_0 = arith.constant 0 : index
    %c0_1 = arith.constant 0 : index
    %0 = vector.load %arg2[%c0, %c0_0, %c0_1] : memref<1x1x16xf32, #tpu.memory_space<vmem>>, vector<1x1x16xf32>
    %1 = vector.shape_cast %0 : vector<1x1x16xf32> to vector<1x16xf32>
    %c0_2 = arith.constant 0 : index
    %c0_3 = arith.constant 0 : index
    %c0_4 = arith.constant 0 : index
    %2 = vector.load %arg1[%c0_2, %c0_3, %c0_4] : memref<1x16x28xf32, #tpu.memory_space<vmem>>, vector<1x16x28xf32>
    %3 = vector.shape_cast %2 : vector<1x16x28xf32> to vector<16x28xf32>
    %4 = arith.truncf %3 : vector<16x28xf32> to vector<16x28xbf16>
    %c0_5 = arith.constant 0 : index
    %c0_6 = arith.constant 0 : index
    %5 = vector.load %arg5[%c0_5, %c0_6] : memref<28x32xbf16, #tpu.memory_space<vmem>>, vector<28x32xbf16>
    %cst = arith.constant dense<0.000000e+00> : vector<16x32xf32>
    %6 = tpu.matmul %4, %5, %cst {dimension_numbers = #tpu.dot_dimension_numbers<[1], [0], [0], [1], [0, 0, 1, 1], [], []>} : vector<16x28xbf16>, vector<28x32xbf16>, vector<16x32xf32> -> vector<16x32xf32>
    %c0_7 = arith.constant 0 : index
    %c0_8 = arith.constant 0 : index
    %7 = vector.load %arg6[%c0_7, %c0_8] : memref<1x32xf32, #tpu.memory_space<vmem>>, vector<1x32xf32>
    %8 = vector.broadcast %7 : vector<1x32xf32> to vector<16x32xf32>
    %9 = arith.addf %6, %8 : vector<16x32xf32>
    %c0_9 = arith.constant 0 : index
    %c0_10 = arith.constant 0 : index
    %10 = vector.load %arg4[%c0_9, %c0_10] : memref<16x32xf32, #tpu.memory_space<vmem>>, vector<16x32xf32>
    %11 = arith.addf %9, %10 : vector<16x32xf32>
    %12 = arith.truncf %11 : vector<16x32xf32> to vector<16x32xbf16>
    %c0_11 = arith.constant 0 : index
    %c0_12 = arith.constant 0 : index
    %c0_13 = arith.constant 0 : index
    %13 = vector.load %arg7[%c0_11, %c0_12, %c0_13] : memref<2x32x32xbf16, #tpu.memory_space<vmem>>, vector<1x32x32xbf16>
    %14 = vector.shape_cast %13 : vector<1x32x32xbf16> to vector<32x32xbf16>
    %cst_14 = arith.constant dense<0.000000e+00> : vector<16x32xf32>
    %15 = tpu.matmul %12, %14, %cst_14 {dimension_numbers = #tpu.dot_dimension_numbers<[1], [0], [0], [1], [0, 0, 1, 1], [], []>} : vector<16x32xbf16>, vector<32x32xbf16>, vector<16x32xf32> -> vector<16x32xf32>
    %c0_15 = arith.constant 0 : index
    %c0_16 = arith.constant 0 : index
    %c0_17 = arith.constant 0 : index
    %16 = vector.load %arg8[%c0_15, %c0_16, %c0_17] : memref<2x1x32xf32, #tpu.memory_space<vmem>>, vector<1x1x32xf32>
    %17 = vector.shape_cast %16 : vector<1x1x32xf32> to vector<1x32xf32>
    %18 = vector.broadcast %17 : vector<1x32xf32> to vector<16x32xf32>
    %19 = arith.addf %15, %18 : vector<16x32xf32>
    %c0_18 = arith.constant 0 : index
    %c0_19 = arith.constant 0 : index
    %c0_20 = arith.constant 0 : index
    %20 = vector.load %arg9[%c0_18, %c0_19, %c0_20] : memref<2x32x32xbf16, #tpu.memory_space<vmem>>, vector<1x32x32xbf16>
    %21 = vector.shape_cast %20 : vector<1x32x32xbf16> to vector<32x32xbf16>
    %cst_21 = arith.constant dense<0.000000e+00> : vector<16x32xf32>
    %22 = tpu.matmul %12, %21, %cst_21 {dimension_numbers = #tpu.dot_dimension_numbers<[1], [0], [0], [1], [0, 0, 1, 1], [], []>} : vector<16x32xbf16>, vector<32x32xbf16>, vector<16x32xf32> -> vector<16x32xf32>
    %c0_22 = arith.constant 0 : index
    %c0_23 = arith.constant 0 : index
    %c0_24 = arith.constant 0 : index
    %23 = vector.load %arg10[%c0_22, %c0_23, %c0_24] : memref<2x1x32xf32, #tpu.memory_space<vmem>>, vector<1x1x32xf32>
    %24 = vector.shape_cast %23 : vector<1x1x32xf32> to vector<1x32xf32>
    %25 = vector.broadcast %24 : vector<1x32xf32> to vector<16x32xf32>
    %26 = arith.addf %22, %25 : vector<16x32xf32>
    %c0_25 = arith.constant 0 : index
    %c0_26 = arith.constant 0 : index
    %c0_27 = arith.constant 0 : index
    %27 = vector.load %arg11[%c0_25, %c0_26, %c0_27] : memref<2x32x32xbf16, #tpu.memory_space<vmem>>, vector<1x32x32xbf16>
    %28 = vector.shape_cast %27 : vector<1x32x32xbf16> to vector<32x32xbf16>
    %cst_28 = arith.constant dense<0.000000e+00> : vector<16x32xf32>
    %29 = tpu.matmul %12, %28, %cst_28 {dimension_numbers = #tpu.dot_dimension_numbers<[1], [0], [0], [1], [0, 0, 1, 1], [], []>} : vector<16x32xbf16>, vector<32x32xbf16>, vector<16x32xf32> -> vector<16x32xf32>
    %c0_29 = arith.constant 0 : index
    %c0_30 = arith.constant 0 : index
    %c0_31 = arith.constant 0 : index
    %30 = vector.load %arg12[%c0_29, %c0_30, %c0_31] : memref<2x1x32xf32, #tpu.memory_space<vmem>>, vector<1x1x32xf32>
    %31 = vector.shape_cast %30 : vector<1x1x32xf32> to vector<1x32xf32>
    %32 = vector.broadcast %31 : vector<1x32xf32> to vector<16x32xf32>
    %33 = arith.addf %29, %32 : vector<16x32xf32>
    %34 = vector.extract_strided_slice %19 {offsets = [0, 0], sizes = [16, 8], strides = [1, 1]} : vector<16x32xf32> to vector<16x8xf32>
    %35 = vector.extract_strided_slice %26 {offsets = [0, 0], sizes = [16, 8], strides = [1, 1]} : vector<16x32xf32> to vector<16x8xf32>
    %36 = vector.extract_strided_slice %33 {offsets = [0, 0], sizes = [16, 8], strides = [1, 1]} : vector<16x32xf32> to vector<16x8xf32>
    %37 = arith.truncf %34 : vector<16x8xf32> to vector<16x8xbf16>
    %38 = arith.truncf %35 : vector<16x8xf32> to vector<16x8xbf16>
    "tpu.trace_start"() <{level = 10 : i32, message = "qd,kd->qk"}> : () -> ()
    %cst_32 = arith.constant dense<0.000000e+00> : vector<16x16xf32>
    %39 = tpu.matmul %37, %38, %cst_32 {dimension_numbers = #tpu.dot_dimension_numbers<[1], [1], [0], [0], [0, 0, 1, 0], [], []>} : vector<16x8xbf16>, vector<16x8xbf16>, vector<16x16xf32> -> vector<16x16xf32>
    "tpu.trace_stop"() : () -> ()
    %40 = vector.broadcast %1 : vector<1x16xf32> to vector<16x16xf32>
    %41 = arith.addf %39, %40 : vector<16x16xf32>
    %cst_33 = arith.constant dense<0xFF800000> : vector<16xf32>
    %42 = vector.multi_reduction <maximumf>, %41, %cst_33 [1] : vector<16x16xf32> to vector<16xf32>
    %43 = vector.shape_cast %42 : vector<16xf32> to vector<16x1xf32>
    %44 = vector.broadcast %43 : vector<16x1xf32> to vector<16x16xf32>
    %45 = arith.subf %41, %44 : vector<16x16xf32>
    %46 = math.exp %45 : vector<16x16xf32>
    %cst_34 = arith.constant dense<0.000000e+00> : vector<16xf32>
    %47 = vector.multi_reduction <add>, %46, %cst_34 [1] : vector<16x16xf32> to vector<16xf32>
    %48 = vector.shape_cast %47 : vector<16xf32> to vector<16x1xf32>
    %49 = tpu.reciprocal %48 {approx = true} : vector<16x1xf32> -> vector<16x1xf32>
    %50 = vector.broadcast %49 : vector<16x1xf32> to vector<16x16xf32>
    %51 = arith.mulf %46, %50 : vector<16x16xf32>
    %52 = arith.truncf %51 : vector<16x16xf32> to vector<16x16xbf16>
    %53 = arith.truncf %36 : vector<16x8xf32> to vector<16x8xbf16>
    %cst_35 = arith.constant dense<0.000000e+00> : vector<16x8xf32>
    %54 = tpu.matmul %52, %53, %cst_35 {dimension_numbers = #tpu.dot_dimension_numbers<[1], [0], [0], [1], [0, 0, 1, 1], [], []>} : vector<16x16xbf16>, vector<16x8xbf16>, vector<16x8xf32> -> vector<16x8xf32>
    %55 = vector.extract_strided_slice %19 {offsets = [0, 8], sizes = [16, 8], strides = [1, 1]} : vector<16x32xf32> to vector<16x8xf32>
    %56 = vector.extract_strided_slice %26 {offsets = [0, 8], sizes = [16, 8], strides = [1, 1]} : vector<16x32xf32> to vector<16x8xf32>
    %57 = vector.extract_strided_slice %33 {offsets = [0, 8], sizes = [16, 8], strides = [1, 1]} : vector<16x32xf32> to vector<16x8xf32>
    %58 = arith.truncf %55 : vector<16x8xf32> to vector<16x8xbf16>
    %59 = arith.truncf %56 : vector<16x8xf32> to vector<16x8xbf16>
    "tpu.trace_start"() <{level = 10 : i32, message = "qd,kd->qk"}> : () -> ()
    %cst_36 = arith.constant dense<0.000000e+00> : vector<16x16xf32>
    %60 = tpu.matmul %58, %59, %cst_36 {dimension_numbers = #tpu.dot_dimension_numbers<[1], [1], [0], [0], [0, 0, 1, 0], [], []>} : vector<16x8xbf16>, vector<16x8xbf16>, vector<16x16xf32> -> vector<16x16xf32>
    "tpu.trace_stop"() : () -> ()
    %61 = vector.broadcast %1 : vector<1x16xf32> to vector<16x16xf32>
    %62 = arith.addf %60, %61 : vector<16x16xf32>
    %cst_37 = arith.constant dense<0xFF800000> : vector<16xf32>
    %63 = vector.multi_reduction <maximumf>, %62, %cst_37 [1] : vector<16x16xf32> to vector<16xf32>
    %64 = vector.shape_cast %63 : vector<16xf32> to vector<16x1xf32>
    %65 = vector.broadcast %64 : vector<16x1xf32> to vector<16x16xf32>
    %66 = arith.subf %62, %65 : vector<16x16xf32>
    %67 = math.exp %66 : vector<16x16xf32>
    %cst_38 = arith.constant dense<0.000000e+00> : vector<16xf32>
    %68 = vector.multi_reduction <add>, %67, %cst_38 [1] : vector<16x16xf32> to vector<16xf32>
    %69 = vector.shape_cast %68 : vector<16xf32> to vector<16x1xf32>
    %70 = tpu.reciprocal %69 {approx = true} : vector<16x1xf32> -> vector<16x1xf32>
    %71 = vector.broadcast %70 : vector<16x1xf32> to vector<16x16xf32>
    %72 = arith.mulf %67, %71 : vector<16x16xf32>
    %73 = arith.truncf %72 : vector<16x16xf32> to vector<16x16xbf16>
    %74 = arith.truncf %57 : vector<16x8xf32> to vector<16x8xbf16>
    %cst_39 = arith.constant dense<0.000000e+00> : vector<16x8xf32>
    %75 = tpu.matmul %73, %74, %cst_39 {dimension_numbers = #tpu.dot_dimension_numbers<[1], [0], [0], [1], [0, 0, 1, 1], [], []>} : vector<16x16xbf16>, vector<16x8xbf16>, vector<16x8xf32> -> vector<16x8xf32>
    %76 = vector.extract_strided_slice %19 {offsets = [0, 16], sizes = [16, 8], strides = [1, 1]} : vector<16x32xf32> to vector<16x8xf32>
    %77 = vector.extract_strided_slice %26 {offsets = [0, 16], sizes = [16, 8], strides = [1, 1]} : vector<16x32xf32> to vector<16x8xf32>
    %78 = vector.extract_strided_slice %33 {offsets = [0, 16], sizes = [16, 8], strides = [1, 1]} : vector<16x32xf32> to vector<16x8xf32>
    %79 = arith.truncf %76 : vector<16x8xf32> to vector<16x8xbf16>
    %80 = arith.truncf %77 : vector<16x8xf32> to vector<16x8xbf16>
    "tpu.trace_start"() <{level = 10 : i32, message = "qd,kd->qk"}> : () -> ()
    %cst_40 = arith.constant dense<0.000000e+00> : vector<16x16xf32>
    %81 = tpu.matmul %79, %80, %cst_40 {dimension_numbers = #tpu.dot_dimension_numbers<[1], [1], [0], [0], [0, 0, 1, 0], [], []>} : vector<16x8xbf16>, vector<16x8xbf16>, vector<16x16xf32> -> vector<16x16xf32>
    "tpu.trace_stop"() : () -> ()
    %82 = vector.broadcast %1 : vector<1x16xf32> to vector<16x16xf32>
    %83 = arith.addf %81, %82 : vector<16x16xf32>
    %cst_41 = arith.constant dense<0xFF800000> : vector<16xf32>
    %84 = vector.multi_reduction <maximumf>, %83, %cst_41 [1] : vector<16x16xf32> to vector<16xf32>
    %85 = vector.shape_cast %84 : vector<16xf32> to vector<16x1xf32>
    %86 = vector.broadcast %85 : vector<16x1xf32> to vector<16x16xf32>
    %87 = arith.subf %83, %86 : vector<16x16xf32>
    %88 = math.exp %87 : vector<16x16xf32>
    %cst_42 = arith.constant dense<0.000000e+00> : vector<16xf32>
    %89 = vector.multi_reduction <add>, %88, %cst_42 [1] : vector<16x16xf32> to vector<16xf32>
    %90 = vector.shape_cast %89 : vector<16xf32> to vector<16x1xf32>
    %91 = tpu.reciprocal %90 {approx = true} : vector<16x1xf32> -> vector<16x1xf32>
    %92 = vector.broadcast %91 : vector<16x1xf32> to vector<16x16xf32>
    %93 = arith.mulf %88, %92 : vector<16x16xf32>
    %94 = arith.truncf %93 : vector<16x16xf32> to vector<16x16xbf16>
    %95 = arith.truncf %78 : vector<16x8xf32> to vector<16x8xbf16>
    %cst_43 = arith.constant dense<0.000000e+00> : vector<16x8xf32>
    %96 = tpu.matmul %94, %95, %cst_43 {dimension_numbers = #tpu.dot_dimension_numbers<[1], [0], [0], [1], [0, 0, 1, 1], [], []>} : vector<16x16xbf16>, vector<16x8xbf16>, vector<16x8xf32> -> vector<16x8xf32>
    %97 = vector.extract_strided_slice %19 {offsets = [0, 24], sizes = [16, 8], strides = [1, 1]} : vector<16x32xf32> to vector<16x8xf32>
    %98 = vector.extract_strided_slice %26 {offsets = [0, 24], sizes = [16, 8], strides = [1, 1]} : vector<16x32xf32> to vector<16x8xf32>
    %99 = vector.extract_strided_slice %33 {offsets = [0, 24], sizes = [16, 8], strides = [1, 1]} : vector<16x32xf32> to vector<16x8xf32>
    %100 = arith.truncf %97 : vector<16x8xf32> to vector<16x8xbf16>
    %101 = arith.truncf %98 : vector<16x8xf32> to vector<16x8xbf16>
    "tpu.trace_start"() <{level = 10 : i32, message = "qd,kd->qk"}> : () -> ()
    %cst_44 = arith.constant dense<0.000000e+00> : vector<16x16xf32>
    %102 = tpu.matmul %100, %101, %cst_44 {dimension_numbers = #tpu.dot_dimension_numbers<[1], [1], [0], [0], [0, 0, 1, 0], [], []>} : vector<16x8xbf16>, vector<16x8xbf16>, vector<16x16xf32> -> vector<16x16xf32>
    "tpu.trace_stop"() : () -> ()
    %103 = vector.broadcast %1 : vector<1x16xf32> to vector<16x16xf32>
    %104 = arith.addf %102, %103 : vector<16x16xf32>
    %cst_45 = arith.constant dense<0xFF800000> : vector<16xf32>
    %105 = vector.multi_reduction <maximumf>, %104, %cst_45 [1] : vector<16x16xf32> to vector<16xf32>
    %106 = vector.shape_cast %105 : vector<16xf32> to vector<16x1xf32>
    %107 = vector.broadcast %106 : vector<16x1xf32> to vector<16x16xf32>
    %108 = arith.subf %104, %107 : vector<16x16xf32>
    %109 = math.exp %108 : vector<16x16xf32>
    %cst_46 = arith.constant dense<0.000000e+00> : vector<16xf32>
    %110 = vector.multi_reduction <add>, %109, %cst_46 [1] : vector<16x16xf32> to vector<16xf32>
    %111 = vector.shape_cast %110 : vector<16xf32> to vector<16x1xf32>
    %112 = tpu.reciprocal %111 {approx = true} : vector<16x1xf32> -> vector<16x1xf32>
    %113 = vector.broadcast %112 : vector<16x1xf32> to vector<16x16xf32>
    %114 = arith.mulf %109, %113 : vector<16x16xf32>
    %115 = arith.truncf %114 : vector<16x16xf32> to vector<16x16xbf16>
    %116 = arith.truncf %99 : vector<16x8xf32> to vector<16x8xbf16>
    %cst_47 = arith.constant dense<0.000000e+00> : vector<16x8xf32>
    %117 = tpu.matmul %115, %116, %cst_47 {dimension_numbers = #tpu.dot_dimension_numbers<[1], [0], [0], [1], [0, 0, 1, 1], [], []>} : vector<16x16xbf16>, vector<16x8xbf16>, vector<16x8xf32> -> vector<16x8xf32>
    %118 = tpu.concatenate %54, %75, %96, %117 in 1 : vector<16x8xf32>, vector<16x8xf32>, vector<16x8xf32>, vector<16x8xf32> -> vector<16x32xf32>
    %119 = arith.truncf %118 : vector<16x32xf32> to vector<16x32xbf16>
    %c0_48 = arith.constant 0 : index
    %c0_49 = arith.constant 0 : index
    %c0_50 = arith.constant 0 : index
    %120 = vector.load %arg13[%c0_48, %c0_49, %c0_50] : memref<2x32x32xbf16, #tpu.memory_space<vmem>>, vector<1x32x32xbf16>
    %121 = vector.shape_cast %120 : vector<1x32x32xbf16> to vector<32x32xbf16>
    %cst_51 = arith.constant dense<0.000000e+00> : vector<16x32xf32>
    %122 = tpu.matmul %119, %121, %cst_51 {dimension_numbers = #tpu.dot_dimension_numbers<[1], [0], [0], [1], [0, 0, 1, 1], [], []>} : vector<16x32xbf16>, vector<32x32xbf16>, vector<16x32xf32> -> vector<16x32xf32>
    %c0_52 = arith.constant 0 : index
    %c0_53 = arith.constant 0 : index
    %c0_54 = arith.constant 0 : index
    %123 = vector.load %arg14[%c0_52, %c0_53, %c0_54] : memref<2x1x32xf32, #tpu.memory_space<vmem>>, vector<1x1x32xf32>
    %124 = vector.shape_cast %123 : vector<1x1x32xf32> to vector<1x32xf32>
    %125 = vector.broadcast %124 : vector<1x32xf32> to vector<16x32xf32>
    %126 = arith.addf %122, %125 : vector<16x32xf32>
    %127 = arith.addf %11, %126 : vector<16x32xf32>
    %c0_55 = arith.constant 0 : index
    %c0_56 = arith.constant 0 : index
    %c0_57 = arith.constant 0 : index
    %128 = vector.load %arg15[%c0_55, %c0_56, %c0_57] : memref<2x1x32xf32, #tpu.memory_space<vmem>>, vector<1x1x32xf32>
    %129 = vector.shape_cast %128 : vector<1x1x32xf32> to vector<1x32xf32>
    %c0_58 = arith.constant 0 : index
    %c0_59 = arith.constant 0 : index
    %c0_60 = arith.constant 0 : index
    %130 = vector.load %arg16[%c0_58, %c0_59, %c0_60] : memref<2x1x32xf32, #tpu.memory_space<vmem>>, vector<1x1x32xf32>
    %131 = vector.shape_cast %130 : vector<1x1x32xf32> to vector<1x32xf32>
    %cst_61 = arith.constant dense<0.000000e+00> : vector<16xf32>
    %132 = vector.multi_reduction <add>, %127, %cst_61 [1] : vector<16x32xf32> to vector<16xf32>
    %133 = vector.shape_cast %132 : vector<16xf32> to vector<16x1xf32>
    %cst_62 = arith.constant 3.200000e+01 : f32
    %134 = vector.broadcast %cst_62 : f32 to vector<16x1xf32>
    %135 = arith.divf %133, %134 : vector<16x1xf32>
    %136 = vector.broadcast %135 : vector<16x1xf32> to vector<16x32xf32>
    %137 = arith.subf %127, %136 : vector<16x32xf32>
    %138 = arith.mulf %137, %137 : vector<16x32xf32>
    %cst_63 = arith.constant dense<0.000000e+00> : vector<16xf32>
    %139 = vector.multi_reduction <add>, %138, %cst_63 [1] : vector<16x32xf32> to vector<16xf32>
    %140 = vector.shape_cast %139 : vector<16xf32> to vector<16x1xf32>
    %cst_64 = arith.constant 3.200000e+01 : f32
    %141 = vector.broadcast %cst_64 : f32 to vector<16x1xf32>
    %142 = arith.divf %140, %141 : vector<16x1xf32>
    %cst_65 = arith.constant 9.99999974E-6 : f32
    %143 = vector.broadcast %cst_65 : f32 to vector<16x1xf32>
    %144 = arith.addf %142, %143 : vector<16x1xf32>
    %145 = math.rsqrt %144 : vector<16x1xf32>
    %146 = vector.broadcast %145 : vector<16x1xf32> to vector<16x32xf32>
    %147 = arith.mulf %137, %146 : vector<16x32xf32>
    %148 = vector.broadcast %129 : vector<1x32xf32> to vector<16x32xf32>
    %149 = arith.mulf %147, %148 : vector<16x32xf32>
    %150 = vector.broadcast %131 : vector<1x32xf32> to vector<16x32xf32>
    %151 = arith.addf %149, %150 : vector<16x32xf32>
    %152 = arith.truncf %151 : vector<16x32xf32> to vector<16x32xbf16>
    %c0_66 = arith.constant 0 : index
    %c0_67 = arith.constant 0 : index
    %c0_68 = arith.constant 0 : index
    %153 = vector.load %arg17[%c0_66, %c0_67, %c0_68] : memref<2x32x64xbf16, #tpu.memory_space<vmem>>, vector<1x32x64xbf16>
    %154 = vector.shape_cast %153 : vector<1x32x64xbf16> to vector<32x64xbf16>
    %cst_69 = arith.constant dense<0.000000e+00> : vector<16x64xf32>
    %155 = tpu.matmul %152, %154, %cst_69 {dimension_numbers = #tpu.dot_dimension_numbers<[1], [0], [0], [1], [0, 0, 1, 1], [], []>} : vector<16x32xbf16>, vector<32x64xbf16>, vector<16x64xf32> -> vector<16x64xf32>
    %c0_70 = arith.constant 0 : index
    %c0_71 = arith.constant 0 : index
    %c0_72 = arith.constant 0 : index
    %156 = vector.load %arg18[%c0_70, %c0_71, %c0_72] : memref<2x1x64xf32, #tpu.memory_space<vmem>>, vector<1x1x64xf32>
    %157 = vector.shape_cast %156 : vector<1x1x64xf32> to vector<1x64xf32>
    %158 = vector.broadcast %157 : vector<1x64xf32> to vector<16x64xf32>
    %159 = arith.addf %155, %158 : vector<16x64xf32>
    %cst_73 = arith.constant 5.000000e-01 : f32
    %160 = vector.broadcast %cst_73 : f32 to vector<16x64xf32>
    %161 = arith.mulf %160, %159 : vector<16x64xf32>
    %cst_74 = arith.constant 4.471500e-02 : f32
    %162 = vector.broadcast %cst_74 : f32 to vector<16x64xf32>
    %163 = arith.mulf %162, %159 : vector<16x64xf32>
    %164 = arith.mulf %163, %159 : vector<16x64xf32>
    %165 = arith.mulf %164, %159 : vector<16x64xf32>
    %166 = arith.addf %159, %165 : vector<16x64xf32>
    %cst_75 = arith.constant 0.797884583 : f32
    %167 = vector.broadcast %cst_75 : f32 to vector<16x64xf32>
    %168 = arith.mulf %167, %166 : vector<16x64xf32>
    %169 = math.tanh %168 : vector<16x64xf32>
    %cst_76 = arith.constant 1.000000e+00 : f32
    %170 = vector.broadcast %cst_76 : f32 to vector<16x64xf32>
    %171 = arith.addf %170, %169 : vector<16x64xf32>
    %172 = arith.mulf %161, %171 : vector<16x64xf32>
    %173 = arith.truncf %172 : vector<16x64xf32> to vector<16x64xbf16>
    %c0_77 = arith.constant 0 : index
    %c0_78 = arith.constant 0 : index
    %c0_79 = arith.constant 0 : index
    %174 = vector.load %arg19[%c0_77, %c0_78, %c0_79] : memref<2x64x32xbf16, #tpu.memory_space<vmem>>, vector<1x64x32xbf16>
    %175 = vector.shape_cast %174 : vector<1x64x32xbf16> to vector<64x32xbf16>
    %cst_80 = arith.constant dense<0.000000e+00> : vector<16x32xf32>
    %176 = tpu.matmul %173, %175, %cst_80 {dimension_numbers = #tpu.dot_dimension_numbers<[1], [0], [0], [1], [0, 0, 1, 1], [], []>} : vector<16x64xbf16>, vector<64x32xbf16>, vector<16x32xf32> -> vector<16x32xf32>
    %c0_81 = arith.constant 0 : index
    %c0_82 = arith.constant 0 : index
    %c0_83 = arith.constant 0 : index
    %177 = vector.load %arg20[%c0_81, %c0_82, %c0_83] : memref<2x1x32xf32, #tpu.memory_space<vmem>>, vector<1x1x32xf32>
    %178 = vector.shape_cast %177 : vector<1x1x32xf32> to vector<1x32xf32>
    %179 = vector.broadcast %178 : vector<1x32xf32> to vector<16x32xf32>
    %180 = arith.addf %176, %179 : vector<16x32xf32>
    %181 = arith.addf %151, %180 : vector<16x32xf32>
    %c0_84 = arith.constant 0 : index
    %c0_85 = arith.constant 0 : index
    %c0_86 = arith.constant 0 : index
    %182 = vector.load %arg21[%c0_84, %c0_85, %c0_86] : memref<2x1x32xf32, #tpu.memory_space<vmem>>, vector<1x1x32xf32>
    %183 = vector.shape_cast %182 : vector<1x1x32xf32> to vector<1x32xf32>
    %c0_87 = arith.constant 0 : index
    %c0_88 = arith.constant 0 : index
    %c0_89 = arith.constant 0 : index
    %184 = vector.load %arg22[%c0_87, %c0_88, %c0_89] : memref<2x1x32xf32, #tpu.memory_space<vmem>>, vector<1x1x32xf32>
    %185 = vector.shape_cast %184 : vector<1x1x32xf32> to vector<1x32xf32>
    %cst_90 = arith.constant dense<0.000000e+00> : vector<16xf32>
    %186 = vector.multi_reduction <add>, %181, %cst_90 [1] : vector<16x32xf32> to vector<16xf32>
    %187 = vector.shape_cast %186 : vector<16xf32> to vector<16x1xf32>
    %cst_91 = arith.constant 3.200000e+01 : f32
    %188 = vector.broadcast %cst_91 : f32 to vector<16x1xf32>
    %189 = arith.divf %187, %188 : vector<16x1xf32>
    %190 = vector.broadcast %189 : vector<16x1xf32> to vector<16x32xf32>
    %191 = arith.subf %181, %190 : vector<16x32xf32>
    %192 = arith.mulf %191, %191 : vector<16x32xf32>
    %cst_92 = arith.constant dense<0.000000e+00> : vector<16xf32>
    %193 = vector.multi_reduction <add>, %192, %cst_92 [1] : vector<16x32xf32> to vector<16xf32>
    %194 = vector.shape_cast %193 : vector<16xf32> to vector<16x1xf32>
    %cst_93 = arith.constant 3.200000e+01 : f32
    %195 = vector.broadcast %cst_93 : f32 to vector<16x1xf32>
    %196 = arith.divf %194, %195 : vector<16x1xf32>
    %cst_94 = arith.constant 9.99999974E-6 : f32
    %197 = vector.broadcast %cst_94 : f32 to vector<16x1xf32>
    %198 = arith.addf %196, %197 : vector<16x1xf32>
    %199 = math.rsqrt %198 : vector<16x1xf32>
    %200 = vector.broadcast %199 : vector<16x1xf32> to vector<16x32xf32>
    %201 = arith.mulf %191, %200 : vector<16x32xf32>
    %202 = vector.broadcast %183 : vector<1x32xf32> to vector<16x32xf32>
    %203 = arith.mulf %201, %202 : vector<16x32xf32>
    %204 = vector.broadcast %185 : vector<1x32xf32> to vector<16x32xf32>
    %205 = arith.addf %203, %204 : vector<16x32xf32>
    %206 = arith.truncf %205 : vector<16x32xf32> to vector<16x32xbf16>
    %c1 = arith.constant 1 : index
    %c0_95 = arith.constant 0 : index
    %c0_96 = arith.constant 0 : index
    %207 = vector.load %arg7[%c1, %c0_95, %c0_96] : memref<2x32x32xbf16, #tpu.memory_space<vmem>>, vector<1x32x32xbf16>
    %208 = vector.shape_cast %207 : vector<1x32x32xbf16> to vector<32x32xbf16>
    %cst_97 = arith.constant dense<0.000000e+00> : vector<16x32xf32>
    %209 = tpu.matmul %206, %208, %cst_97 {dimension_numbers = #tpu.dot_dimension_numbers<[1], [0], [0], [1], [0, 0, 1, 1], [], []>} : vector<16x32xbf16>, vector<32x32xbf16>, vector<16x32xf32> -> vector<16x32xf32>
    %c1_98 = arith.constant 1 : index
    %c0_99 = arith.constant 0 : index
    %c0_100 = arith.constant 0 : index
    %210 = vector.load %arg8[%c1_98, %c0_99, %c0_100] : memref<2x1x32xf32, #tpu.memory_space<vmem>>, vector<1x1x32xf32>
    %211 = vector.shape_cast %210 : vector<1x1x32xf32> to vector<1x32xf32>
    %212 = vector.broadcast %211 : vector<1x32xf32> to vector<16x32xf32>
    %213 = arith.addf %209, %212 : vector<16x32xf32>
    %c1_101 = arith.constant 1 : index
    %c0_102 = arith.constant 0 : index
    %c0_103 = arith.constant 0 : index
    %214 = vector.load %arg9[%c1_101, %c0_102, %c0_103] : memref<2x32x32xbf16, #tpu.memory_space<vmem>>, vector<1x32x32xbf16>
    %215 = vector.shape_cast %214 : vector<1x32x32xbf16> to vector<32x32xbf16>
    %cst_104 = arith.constant dense<0.000000e+00> : vector<16x32xf32>
    %216 = tpu.matmul %206, %215, %cst_104 {dimension_numbers = #tpu.dot_dimension_numbers<[1], [0], [0], [1], [0, 0, 1, 1], [], []>} : vector<16x32xbf16>, vector<32x32xbf16>, vector<16x32xf32> -> vector<16x32xf32>
    %c1_105 = arith.constant 1 : index
    %c0_106 = arith.constant 0 : index
    %c0_107 = arith.constant 0 : index
    %217 = vector.load %arg10[%c1_105, %c0_106, %c0_107] : memref<2x1x32xf32, #tpu.memory_space<vmem>>, vector<1x1x32xf32>
    %218 = vector.shape_cast %217 : vector<1x1x32xf32> to vector<1x32xf32>
    %219 = vector.broadcast %218 : vector<1x32xf32> to vector<16x32xf32>
    %220 = arith.addf %216, %219 : vector<16x32xf32>
    %c1_108 = arith.constant 1 : index
    %c0_109 = arith.constant 0 : index
    %c0_110 = arith.constant 0 : index
    %221 = vector.load %arg11[%c1_108, %c0_109, %c0_110] : memref<2x32x32xbf16, #tpu.memory_space<vmem>>, vector<1x32x32xbf16>
    %222 = vector.shape_cast %221 : vector<1x32x32xbf16> to vector<32x32xbf16>
    %cst_111 = arith.constant dense<0.000000e+00> : vector<16x32xf32>
    %223 = tpu.matmul %206, %222, %cst_111 {dimension_numbers = #tpu.dot_dimension_numbers<[1], [0], [0], [1], [0, 0, 1, 1], [], []>} : vector<16x32xbf16>, vector<32x32xbf16>, vector<16x32xf32> -> vector<16x32xf32>
    %c1_112 = arith.constant 1 : index
    %c0_113 = arith.constant 0 : index
    %c0_114 = arith.constant 0 : index
    %224 = vector.load %arg12[%c1_112, %c0_113, %c0_114] : memref<2x1x32xf32, #tpu.memory_space<vmem>>, vector<1x1x32xf32>
    %225 = vector.shape_cast %224 : vector<1x1x32xf32> to vector<1x32xf32>
    %226 = vector.broadcast %225 : vector<1x32xf32> to vector<16x32xf32>
    %227 = arith.addf %223, %226 : vector<16x32xf32>
    %228 = vector.extract_strided_slice %213 {offsets = [0, 0], sizes = [16, 8], strides = [1, 1]} : vector<16x32xf32> to vector<16x8xf32>
    %229 = vector.extract_strided_slice %220 {offsets = [0, 0], sizes = [16, 8], strides = [1, 1]} : vector<16x32xf32> to vector<16x8xf32>
    %230 = vector.extract_strided_slice %227 {offsets = [0, 0], sizes = [16, 8], strides = [1, 1]} : vector<16x32xf32> to vector<16x8xf32>
    %231 = arith.truncf %228 : vector<16x8xf32> to vector<16x8xbf16>
    %232 = arith.truncf %229 : vector<16x8xf32> to vector<16x8xbf16>
    "tpu.trace_start"() <{level = 10 : i32, message = "qd,kd->qk"}> : () -> ()
    %cst_115 = arith.constant dense<0.000000e+00> : vector<16x16xf32>
    %233 = tpu.matmul %231, %232, %cst_115 {dimension_numbers = #tpu.dot_dimension_numbers<[1], [1], [0], [0], [0, 0, 1, 0], [], []>} : vector<16x8xbf16>, vector<16x8xbf16>, vector<16x16xf32> -> vector<16x16xf32>
    "tpu.trace_stop"() : () -> ()
    %234 = vector.broadcast %1 : vector<1x16xf32> to vector<16x16xf32>
    %235 = arith.addf %233, %234 : vector<16x16xf32>
    %cst_116 = arith.constant dense<0xFF800000> : vector<16xf32>
    %236 = vector.multi_reduction <maximumf>, %235, %cst_116 [1] : vector<16x16xf32> to vector<16xf32>
    %237 = vector.shape_cast %236 : vector<16xf32> to vector<16x1xf32>
    %238 = vector.broadcast %237 : vector<16x1xf32> to vector<16x16xf32>
    %239 = arith.subf %235, %238 : vector<16x16xf32>
    %240 = math.exp %239 : vector<16x16xf32>
    %cst_117 = arith.constant dense<0.000000e+00> : vector<16xf32>
    %241 = vector.multi_reduction <add>, %240, %cst_117 [1] : vector<16x16xf32> to vector<16xf32>
    %242 = vector.shape_cast %241 : vector<16xf32> to vector<16x1xf32>
    %243 = tpu.reciprocal %242 {approx = true} : vector<16x1xf32> -> vector<16x1xf32>
    %244 = vector.broadcast %243 : vector<16x1xf32> to vector<16x16xf32>
    %245 = arith.mulf %240, %244 : vector<16x16xf32>
    %246 = arith.truncf %245 : vector<16x16xf32> to vector<16x16xbf16>
    %247 = arith.truncf %230 : vector<16x8xf32> to vector<16x8xbf16>
    %cst_118 = arith.constant dense<0.000000e+00> : vector<16x8xf32>
    %248 = tpu.matmul %246, %247, %cst_118 {dimension_numbers = #tpu.dot_dimension_numbers<[1], [0], [0], [1], [0, 0, 1, 1], [], []>} : vector<16x16xbf16>, vector<16x8xbf16>, vector<16x8xf32> -> vector<16x8xf32>
    %249 = vector.extract_strided_slice %213 {offsets = [0, 8], sizes = [16, 8], strides = [1, 1]} : vector<16x32xf32> to vector<16x8xf32>
    %250 = vector.extract_strided_slice %220 {offsets = [0, 8], sizes = [16, 8], strides = [1, 1]} : vector<16x32xf32> to vector<16x8xf32>
    %251 = vector.extract_strided_slice %227 {offsets = [0, 8], sizes = [16, 8], strides = [1, 1]} : vector<16x32xf32> to vector<16x8xf32>
    %252 = arith.truncf %249 : vector<16x8xf32> to vector<16x8xbf16>
    %253 = arith.truncf %250 : vector<16x8xf32> to vector<16x8xbf16>
    "tpu.trace_start"() <{level = 10 : i32, message = "qd,kd->qk"}> : () -> ()
    %cst_119 = arith.constant dense<0.000000e+00> : vector<16x16xf32>
    %254 = tpu.matmul %252, %253, %cst_119 {dimension_numbers = #tpu.dot_dimension_numbers<[1], [1], [0], [0], [0, 0, 1, 0], [], []>} : vector<16x8xbf16>, vector<16x8xbf16>, vector<16x16xf32> -> vector<16x16xf32>
    "tpu.trace_stop"() : () -> ()
    %255 = vector.broadcast %1 : vector<1x16xf32> to vector<16x16xf32>
    %256 = arith.addf %254, %255 : vector<16x16xf32>
    %cst_120 = arith.constant dense<0xFF800000> : vector<16xf32>
    %257 = vector.multi_reduction <maximumf>, %256, %cst_120 [1] : vector<16x16xf32> to vector<16xf32>
    %258 = vector.shape_cast %257 : vector<16xf32> to vector<16x1xf32>
    %259 = vector.broadcast %258 : vector<16x1xf32> to vector<16x16xf32>
    %260 = arith.subf %256, %259 : vector<16x16xf32>
    %261 = math.exp %260 : vector<16x16xf32>
    %cst_121 = arith.constant dense<0.000000e+00> : vector<16xf32>
    %262 = vector.multi_reduction <add>, %261, %cst_121 [1] : vector<16x16xf32> to vector<16xf32>
    %263 = vector.shape_cast %262 : vector<16xf32> to vector<16x1xf32>
    %264 = tpu.reciprocal %263 {approx = true} : vector<16x1xf32> -> vector<16x1xf32>
    %265 = vector.broadcast %264 : vector<16x1xf32> to vector<16x16xf32>
    %266 = arith.mulf %261, %265 : vector<16x16xf32>
    %267 = arith.truncf %266 : vector<16x16xf32> to vector<16x16xbf16>
    %268 = arith.truncf %251 : vector<16x8xf32> to vector<16x8xbf16>
    %cst_122 = arith.constant dense<0.000000e+00> : vector<16x8xf32>
    %269 = tpu.matmul %267, %268, %cst_122 {dimension_numbers = #tpu.dot_dimension_numbers<[1], [0], [0], [1], [0, 0, 1, 1], [], []>} : vector<16x16xbf16>, vector<16x8xbf16>, vector<16x8xf32> -> vector<16x8xf32>
    %270 = vector.extract_strided_slice %213 {offsets = [0, 16], sizes = [16, 8], strides = [1, 1]} : vector<16x32xf32> to vector<16x8xf32>
    %271 = vector.extract_strided_slice %220 {offsets = [0, 16], sizes = [16, 8], strides = [1, 1]} : vector<16x32xf32> to vector<16x8xf32>
    %272 = vector.extract_strided_slice %227 {offsets = [0, 16], sizes = [16, 8], strides = [1, 1]} : vector<16x32xf32> to vector<16x8xf32>
    %273 = arith.truncf %270 : vector<16x8xf32> to vector<16x8xbf16>
    %274 = arith.truncf %271 : vector<16x8xf32> to vector<16x8xbf16>
    "tpu.trace_start"() <{level = 10 : i32, message = "qd,kd->qk"}> : () -> ()
    %cst_123 = arith.constant dense<0.000000e+00> : vector<16x16xf32>
    %275 = tpu.matmul %273, %274, %cst_123 {dimension_numbers = #tpu.dot_dimension_numbers<[1], [1], [0], [0], [0, 0, 1, 0], [], []>} : vector<16x8xbf16>, vector<16x8xbf16>, vector<16x16xf32> -> vector<16x16xf32>
    "tpu.trace_stop"() : () -> ()
    %276 = vector.broadcast %1 : vector<1x16xf32> to vector<16x16xf32>
    %277 = arith.addf %275, %276 : vector<16x16xf32>
    %cst_124 = arith.constant dense<0xFF800000> : vector<16xf32>
    %278 = vector.multi_reduction <maximumf>, %277, %cst_124 [1] : vector<16x16xf32> to vector<16xf32>
    %279 = vector.shape_cast %278 : vector<16xf32> to vector<16x1xf32>
    %280 = vector.broadcast %279 : vector<16x1xf32> to vector<16x16xf32>
    %281 = arith.subf %277, %280 : vector<16x16xf32>
    %282 = math.exp %281 : vector<16x16xf32>
    %cst_125 = arith.constant dense<0.000000e+00> : vector<16xf32>
    %283 = vector.multi_reduction <add>, %282, %cst_125 [1] : vector<16x16xf32> to vector<16xf32>
    %284 = vector.shape_cast %283 : vector<16xf32> to vector<16x1xf32>
    %285 = tpu.reciprocal %284 {approx = true} : vector<16x1xf32> -> vector<16x1xf32>
    %286 = vector.broadcast %285 : vector<16x1xf32> to vector<16x16xf32>
    %287 = arith.mulf %282, %286 : vector<16x16xf32>
    %288 = arith.truncf %287 : vector<16x16xf32> to vector<16x16xbf16>
    %289 = arith.truncf %272 : vector<16x8xf32> to vector<16x8xbf16>
    %cst_126 = arith.constant dense<0.000000e+00> : vector<16x8xf32>
    %290 = tpu.matmul %288, %289, %cst_126 {dimension_numbers = #tpu.dot_dimension_numbers<[1], [0], [0], [1], [0, 0, 1, 1], [], []>} : vector<16x16xbf16>, vector<16x8xbf16>, vector<16x8xf32> -> vector<16x8xf32>
    %291 = vector.extract_strided_slice %213 {offsets = [0, 24], sizes = [16, 8], strides = [1, 1]} : vector<16x32xf32> to vector<16x8xf32>
    %292 = vector.extract_strided_slice %220 {offsets = [0, 24], sizes = [16, 8], strides = [1, 1]} : vector<16x32xf32> to vector<16x8xf32>
    %293 = vector.extract_strided_slice %227 {offsets = [0, 24], sizes = [16, 8], strides = [1, 1]} : vector<16x32xf32> to vector<16x8xf32>
    %294 = arith.truncf %291 : vector<16x8xf32> to vector<16x8xbf16>
    %295 = arith.truncf %292 : vector<16x8xf32> to vector<16x8xbf16>
    "tpu.trace_start"() <{level = 10 : i32, message = "qd,kd->qk"}> : () -> ()
    %cst_127 = arith.constant dense<0.000000e+00> : vector<16x16xf32>
    %296 = tpu.matmul %294, %295, %cst_127 {dimension_numbers = #tpu.dot_dimension_numbers<[1], [1], [0], [0], [0, 0, 1, 0], [], []>} : vector<16x8xbf16>, vector<16x8xbf16>, vector<16x16xf32> -> vector<16x16xf32>
    "tpu.trace_stop"() : () -> ()
    %297 = vector.broadcast %1 : vector<1x16xf32> to vector<16x16xf32>
    %298 = arith.addf %296, %297 : vector<16x16xf32>
    %cst_128 = arith.constant dense<0xFF800000> : vector<16xf32>
    %299 = vector.multi_reduction <maximumf>, %298, %cst_128 [1] : vector<16x16xf32> to vector<16xf32>
    %300 = vector.shape_cast %299 : vector<16xf32> to vector<16x1xf32>
    %301 = vector.broadcast %300 : vector<16x1xf32> to vector<16x16xf32>
    %302 = arith.subf %298, %301 : vector<16x16xf32>
    %303 = math.exp %302 : vector<16x16xf32>
    %cst_129 = arith.constant dense<0.000000e+00> : vector<16xf32>
    %304 = vector.multi_reduction <add>, %303, %cst_129 [1] : vector<16x16xf32> to vector<16xf32>
    %305 = vector.shape_cast %304 : vector<16xf32> to vector<16x1xf32>
    %306 = tpu.reciprocal %305 {approx = true} : vector<16x1xf32> -> vector<16x1xf32>
    %307 = vector.broadcast %306 : vector<16x1xf32> to vector<16x16xf32>
    %308 = arith.mulf %303, %307 : vector<16x16xf32>
    %309 = arith.truncf %308 : vector<16x16xf32> to vector<16x16xbf16>
    %310 = arith.truncf %293 : vector<16x8xf32> to vector<16x8xbf16>
    %cst_130 = arith.constant dense<0.000000e+00> : vector<16x8xf32>
    %311 = tpu.matmul %309, %310, %cst_130 {dimension_numbers = #tpu.dot_dimension_numbers<[1], [0], [0], [1], [0, 0, 1, 1], [], []>} : vector<16x16xbf16>, vector<16x8xbf16>, vector<16x8xf32> -> vector<16x8xf32>
    %312 = tpu.concatenate %248, %269, %290, %311 in 1 : vector<16x8xf32>, vector<16x8xf32>, vector<16x8xf32>, vector<16x8xf32> -> vector<16x32xf32>
    %313 = arith.truncf %312 : vector<16x32xf32> to vector<16x32xbf16>
    %c1_131 = arith.constant 1 : index
    %c0_132 = arith.constant 0 : index
    %c0_133 = arith.constant 0 : index
    %314 = vector.load %arg13[%c1_131, %c0_132, %c0_133] : memref<2x32x32xbf16, #tpu.memory_space<vmem>>, vector<1x32x32xbf16>
    %315 = vector.shape_cast %314 : vector<1x32x32xbf16> to vector<32x32xbf16>
    %cst_134 = arith.constant dense<0.000000e+00> : vector<16x32xf32>
    %316 = tpu.matmul %313, %315, %cst_134 {dimension_numbers = #tpu.dot_dimension_numbers<[1], [0], [0], [1], [0, 0, 1, 1], [], []>} : vector<16x32xbf16>, vector<32x32xbf16>, vector<16x32xf32> -> vector<16x32xf32>
    %c1_135 = arith.constant 1 : index
    %c0_136 = arith.constant 0 : index
    %c0_137 = arith.constant 0 : index
    %317 = vector.load %arg14[%c1_135, %c0_136, %c0_137] : memref<2x1x32xf32, #tpu.memory_space<vmem>>, vector<1x1x32xf32>
    %318 = vector.shape_cast %317 : vector<1x1x32xf32> to vector<1x32xf32>
    %319 = vector.broadcast %318 : vector<1x32xf32> to vector<16x32xf32>
    %320 = arith.addf %316, %319 : vector<16x32xf32>
    %321 = arith.addf %205, %320 : vector<16x32xf32>
    %c1_138 = arith.constant 1 : index
    %c0_139 = arith.constant 0 : index
    %c0_140 = arith.constant 0 : index
    %322 = vector.load %arg15[%c1_138, %c0_139, %c0_140] : memref<2x1x32xf32, #tpu.memory_space<vmem>>, vector<1x1x32xf32>
    %323 = vector.shape_cast %322 : vector<1x1x32xf32> to vector<1x32xf32>
    %c1_141 = arith.constant 1 : index
    %c0_142 = arith.constant 0 : index
    %c0_143 = arith.constant 0 : index
    %324 = vector.load %arg16[%c1_141, %c0_142, %c0_143] : memref<2x1x32xf32, #tpu.memory_space<vmem>>, vector<1x1x32xf32>
    %325 = vector.shape_cast %324 : vector<1x1x32xf32> to vector<1x32xf32>
    %cst_144 = arith.constant dense<0.000000e+00> : vector<16xf32>
    %326 = vector.multi_reduction <add>, %321, %cst_144 [1] : vector<16x32xf32> to vector<16xf32>
    %327 = vector.shape_cast %326 : vector<16xf32> to vector<16x1xf32>
    %cst_145 = arith.constant 3.200000e+01 : f32
    %328 = vector.broadcast %cst_145 : f32 to vector<16x1xf32>
    %329 = arith.divf %327, %328 : vector<16x1xf32>
    %330 = vector.broadcast %329 : vector<16x1xf32> to vector<16x32xf32>
    %331 = arith.subf %321, %330 : vector<16x32xf32>
    %332 = arith.mulf %331, %331 : vector<16x32xf32>
    %cst_146 = arith.constant dense<0.000000e+00> : vector<16xf32>
    %333 = vector.multi_reduction <add>, %332, %cst_146 [1] : vector<16x32xf32> to vector<16xf32>
    %334 = vector.shape_cast %333 : vector<16xf32> to vector<16x1xf32>
    %cst_147 = arith.constant 3.200000e+01 : f32
    %335 = vector.broadcast %cst_147 : f32 to vector<16x1xf32>
    %336 = arith.divf %334, %335 : vector<16x1xf32>
    %cst_148 = arith.constant 9.99999974E-6 : f32
    %337 = vector.broadcast %cst_148 : f32 to vector<16x1xf32>
    %338 = arith.addf %336, %337 : vector<16x1xf32>
    %339 = math.rsqrt %338 : vector<16x1xf32>
    %340 = vector.broadcast %339 : vector<16x1xf32> to vector<16x32xf32>
    %341 = arith.mulf %331, %340 : vector<16x32xf32>
    %342 = vector.broadcast %323 : vector<1x32xf32> to vector<16x32xf32>
    %343 = arith.mulf %341, %342 : vector<16x32xf32>
    %344 = vector.broadcast %325 : vector<1x32xf32> to vector<16x32xf32>
    %345 = arith.addf %343, %344 : vector<16x32xf32>
    %346 = arith.truncf %345 : vector<16x32xf32> to vector<16x32xbf16>
    %c1_149 = arith.constant 1 : index
    %c0_150 = arith.constant 0 : index
    %c0_151 = arith.constant 0 : index
    %347 = vector.load %arg17[%c1_149, %c0_150, %c0_151] : memref<2x32x64xbf16, #tpu.memory_space<vmem>>, vector<1x32x64xbf16>
    %348 = vector.shape_cast %347 : vector<1x32x64xbf16> to vector<32x64xbf16>
    %cst_152 = arith.constant dense<0.000000e+00> : vector<16x64xf32>
    %349 = tpu.matmul %346, %348, %cst_152 {dimension_numbers = #tpu.dot_dimension_numbers<[1], [0], [0], [1], [0, 0, 1, 1], [], []>} : vector<16x32xbf16>, vector<32x64xbf16>, vector<16x64xf32> -> vector<16x64xf32>
    %c1_153 = arith.constant 1 : index
    %c0_154 = arith.constant 0 : index
    %c0_155 = arith.constant 0 : index
    %350 = vector.load %arg18[%c1_153, %c0_154, %c0_155] : memref<2x1x64xf32, #tpu.memory_space<vmem>>, vector<1x1x64xf32>
    %351 = vector.shape_cast %350 : vector<1x1x64xf32> to vector<1x64xf32>
    %352 = vector.broadcast %351 : vector<1x64xf32> to vector<16x64xf32>
    %353 = arith.addf %349, %352 : vector<16x64xf32>
    %cst_156 = arith.constant 5.000000e-01 : f32
    %354 = vector.broadcast %cst_156 : f32 to vector<16x64xf32>
    %355 = arith.mulf %354, %353 : vector<16x64xf32>
    %cst_157 = arith.constant 4.471500e-02 : f32
    %356 = vector.broadcast %cst_157 : f32 to vector<16x64xf32>
    %357 = arith.mulf %356, %353 : vector<16x64xf32>
    %358 = arith.mulf %357, %353 : vector<16x64xf32>
    %359 = arith.mulf %358, %353 : vector<16x64xf32>
    %360 = arith.addf %353, %359 : vector<16x64xf32>
    %cst_158 = arith.constant 0.797884583 : f32
    %361 = vector.broadcast %cst_158 : f32 to vector<16x64xf32>
    %362 = arith.mulf %361, %360 : vector<16x64xf32>
    %363 = math.tanh %362 : vector<16x64xf32>
    %cst_159 = arith.constant 1.000000e+00 : f32
    %364 = vector.broadcast %cst_159 : f32 to vector<16x64xf32>
    %365 = arith.addf %364, %363 : vector<16x64xf32>
    %366 = arith.mulf %355, %365 : vector<16x64xf32>
    %367 = arith.truncf %366 : vector<16x64xf32> to vector<16x64xbf16>
    %c1_160 = arith.constant 1 : index
    %c0_161 = arith.constant 0 : index
    %c0_162 = arith.constant 0 : index
    %368 = vector.load %arg19[%c1_160, %c0_161, %c0_162] : memref<2x64x32xbf16, #tpu.memory_space<vmem>>, vector<1x64x32xbf16>
    %369 = vector.shape_cast %368 : vector<1x64x32xbf16> to vector<64x32xbf16>
    %cst_163 = arith.constant dense<0.000000e+00> : vector<16x32xf32>
    %370 = tpu.matmul %367, %369, %cst_163 {dimension_numbers = #tpu.dot_dimension_numbers<[1], [0], [0], [1], [0, 0, 1, 1], [], []>} : vector<16x64xbf16>, vector<64x32xbf16>, vector<16x32xf32> -> vector<16x32xf32>
    %c1_164 = arith.constant 1 : index
    %c0_165 = arith.constant 0 : index
    %c0_166 = arith.constant 0 : index
    %371 = vector.load %arg20[%c1_164, %c0_165, %c0_166] : memref<2x1x32xf32, #tpu.memory_space<vmem>>, vector<1x1x32xf32>
    %372 = vector.shape_cast %371 : vector<1x1x32xf32> to vector<1x32xf32>
    %373 = vector.broadcast %372 : vector<1x32xf32> to vector<16x32xf32>
    %374 = arith.addf %370, %373 : vector<16x32xf32>
    %375 = arith.addf %345, %374 : vector<16x32xf32>
    %c1_167 = arith.constant 1 : index
    %c0_168 = arith.constant 0 : index
    %c0_169 = arith.constant 0 : index
    %376 = vector.load %arg21[%c1_167, %c0_168, %c0_169] : memref<2x1x32xf32, #tpu.memory_space<vmem>>, vector<1x1x32xf32>
    %377 = vector.shape_cast %376 : vector<1x1x32xf32> to vector<1x32xf32>
    %c1_170 = arith.constant 1 : index
    %c0_171 = arith.constant 0 : index
    %c0_172 = arith.constant 0 : index
    %378 = vector.load %arg22[%c1_170, %c0_171, %c0_172] : memref<2x1x32xf32, #tpu.memory_space<vmem>>, vector<1x1x32xf32>
    %379 = vector.shape_cast %378 : vector<1x1x32xf32> to vector<1x32xf32>
    %cst_173 = arith.constant dense<0.000000e+00> : vector<16xf32>
    %380 = vector.multi_reduction <add>, %375, %cst_173 [1] : vector<16x32xf32> to vector<16xf32>
    %381 = vector.shape_cast %380 : vector<16xf32> to vector<16x1xf32>
    %cst_174 = arith.constant 3.200000e+01 : f32
    %382 = vector.broadcast %cst_174 : f32 to vector<16x1xf32>
    %383 = arith.divf %381, %382 : vector<16x1xf32>
    %384 = vector.broadcast %383 : vector<16x1xf32> to vector<16x32xf32>
    %385 = arith.subf %375, %384 : vector<16x32xf32>
    %386 = arith.mulf %385, %385 : vector<16x32xf32>
    %cst_175 = arith.constant dense<0.000000e+00> : vector<16xf32>
    %387 = vector.multi_reduction <add>, %386, %cst_175 [1] : vector<16x32xf32> to vector<16xf32>
    %388 = vector.shape_cast %387 : vector<16xf32> to vector<16x1xf32>
    %cst_176 = arith.constant 3.200000e+01 : f32
    %389 = vector.broadcast %cst_176 : f32 to vector<16x1xf32>
    %390 = arith.divf %388, %389 : vector<16x1xf32>
    %cst_177 = arith.constant 9.99999974E-6 : f32
    %391 = vector.broadcast %cst_177 : f32 to vector<16x1xf32>
    %392 = arith.addf %390, %391 : vector<16x1xf32>
    %393 = math.rsqrt %392 : vector<16x1xf32>
    %394 = vector.broadcast %393 : vector<16x1xf32> to vector<16x32xf32>
    %395 = arith.mulf %385, %394 : vector<16x32xf32>
    %396 = vector.broadcast %377 : vector<1x32xf32> to vector<16x32xf32>
    %397 = arith.mulf %395, %396 : vector<16x32xf32>
    %398 = vector.broadcast %379 : vector<1x32xf32> to vector<16x32xf32>
    %399 = arith.addf %397, %398 : vector<16x32xf32>
    %cst_178 = arith.constant 5.000000e-01 : f32
    %400 = vector.broadcast %cst_178 : f32 to vector<16x32xf32>
    %401 = arith.mulf %400, %399 : vector<16x32xf32>
    %cst_179 = arith.constant 4.471500e-02 : f32
    %402 = vector.broadcast %cst_179 : f32 to vector<16x32xf32>
    %403 = arith.mulf %402, %399 : vector<16x32xf32>
    %404 = arith.mulf %403, %399 : vector<16x32xf32>
    %405 = arith.mulf %404, %399 : vector<16x32xf32>
    %406 = arith.addf %399, %405 : vector<16x32xf32>
    %cst_180 = arith.constant 0.797884583 : f32
    %407 = vector.broadcast %cst_180 : f32 to vector<16x32xf32>
    %408 = arith.mulf %407, %406 : vector<16x32xf32>
    %409 = math.tanh %408 : vector<16x32xf32>
    %cst_181 = arith.constant 1.000000e+00 : f32
    %410 = vector.broadcast %cst_181 : f32 to vector<16x32xf32>
    %411 = arith.addf %410, %409 : vector<16x32xf32>
    %412 = arith.mulf %401, %411 : vector<16x32xf32>
    %c0_182 = arith.constant 0 : index
    %c0_183 = arith.constant 0 : index
    %c0_184 = arith.constant 0 : index
    %413 = vector.load %arg3[%c0_182, %c0_183, %c0_184] : memref<1x16x1xf32, #tpu.memory_space<vmem>>, vector<1x16x1xf32>
    %414 = vector.shape_cast %413 : vector<1x16x1xf32> to vector<16x1xf32>
    %415 = vector.broadcast %414 : vector<16x1xf32> to vector<16x32xf32>
    %416 = arith.mulf %412, %415 : vector<16x32xf32>
    %c0_185 = arith.constant 0 : index
    %c0_186 = arith.constant 0 : index
    %c0_187 = arith.constant 0 : index
    %417 = vector.load %arg23[%c0_185, %c0_186, %c0_187] : memref<1x16x32xf32, #tpu.memory_space<vmem>>, vector<1x16x32xf32>
    %418 = vector.shape_cast %417 : vector<1x16x32xf32> to vector<16x32xf32>
    %419 = vector.shape_cast %416 : vector<16x32xf32> to vector<1x16x32xf32>
    tpu.vector_store %arg23[%c0_185, %c0_186, %c0_187], %419 {strides = array<i32>} : memref<1x16x32xf32, #tpu.memory_space<vmem>>, vector<1x16x32xf32>,
    return
  }
  func.func @transform_0(%arg0: i32) -> (i32, i32, i32) {
    %c0_i32 = arith.constant 0 : i32
    %c0_i32_0 = arith.constant 0 : i32
    %c0_i32_1 = arith.constant 0 : i32
    return %arg0, %c0_i32, %c0_i32_0 : i32, i32, i32
  }
  func.func @transform_1(%arg0: i32) -> (i32, i32, i32) {
    %c0_i32 = arith.constant 0 : i32
    %c0_i32_0 = arith.constant 0 : i32
    %c0_i32_1 = arith.constant 0 : i32
    return %arg0, %c0_i32, %c0_i32_0 : i32, i32, i32
  }
  func.func @transform_2(%arg0: i32) -> (i32, i32, i32) {
    %c0_i32 = arith.constant 0 : i32
    %c0_i32_0 = arith.constant 0 : i32
    %c0_i32_1 = arith.constant 0 : i32
    return %arg0, %c0_i32, %c0_i32_0 : i32, i32, i32
  }
  func.func @transform_3(%arg0: i32) -> (i32, i32) {
    %c0_i32 = arith.constant 0 : i32
    %c0_i32_0 = arith.constant 0 : i32
    %c0_i32_1 = arith.constant 0 : i32
    return %c0_i32, %c0_i32_0 : i32, i32
  }
  func.func @transform_4(%arg0: i32) -> (i32, i32) {
    %c0_i32 = arith.constant 0 : i32
    %c0_i32_0 = arith.constant 0 : i32
    %c0_i32_1 = arith.constant 0 : i32
    return %c0_i32, %c0_i32_0 : i32, i32
  }
  func.func @transform_5(%arg0: i32) -> (i32, i32) {
    %c0_i32 = arith.constant 0 : i32
    %c0_i32_0 = arith.constant 0 : i32
    %c0_i32_1 = arith.constant 0 : i32
    return %c0_i32, %c0_i32_0 : i32, i32
  }
  func.func @transform_6(%arg0: i32) -> (i32, i32, i32) {
    %c0_i32 = arith.constant 0 : i32
    %c0_i32_0 = arith.constant 0 : i32
    %c0_i32_1 = arith.constant 0 : i32
    %c0_i32_2 = arith.constant 0 : i32
    return %c0_i32, %c0_i32_0, %c0_i32_1 : i32, i32, i32
  }
  func.func @transform_7(%arg0: i32) -> (i32, i32, i32) {
    %c0_i32 = arith.constant 0 : i32
    %c0_i32_0 = arith.constant 0 : i32
    %c0_i32_1 = arith.constant 0 : i32
    %c0_i32_2 = arith.constant 0 : i32
    return %c0_i32, %c0_i32_0, %c0_i32_1 : i32, i32, i32
  }
  func.func @transform_8(%arg0: i32) -> (i32, i32, i32) {
    %c0_i32 = arith.constant 0 : i32
    %c0_i32_0 = arith.constant 0 : i32
    %c0_i32_1 = arith.constant 0 : i32
    %c0_i32_2 = arith.constant 0 : i32
    return %c0_i32, %c0_i32_0, %c0_i32_1 : i32, i32, i32
  }
  func.func @transform_9(%arg0: i32) -> (i32, i32, i32) {
    %c0_i32 = arith.constant 0 : i32
    %c0_i32_0 = arith.constant 0 : i32
    %c0_i32_1 = arith.constant 0 : i32
    %c0_i32_2 = arith.constant 0 : i32
    return %c0_i32, %c0_i32_0, %c0_i32_1 : i32, i32, i32
  }
  func.func @transform_10(%arg0: i32) -> (i32, i32, i32) {
    %c0_i32 = arith.constant 0 : i32
    %c0_i32_0 = arith.constant 0 : i32
    %c0_i32_1 = arith.constant 0 : i32
    %c0_i32_2 = arith.constant 0 : i32
    return %c0_i32, %c0_i32_0, %c0_i32_1 : i32, i32, i32
  }
  func.func @transform_11(%arg0: i32) -> (i32, i32, i32) {
    %c0_i32 = arith.constant 0 : i32
    %c0_i32_0 = arith.constant 0 : i32
    %c0_i32_1 = arith.constant 0 : i32
    %c0_i32_2 = arith.constant 0 : i32
    return %c0_i32, %c0_i32_0, %c0_i32_1 : i32, i32, i32
  }
  func.func @transform_12(%arg0: i32) -> (i32, i32, i32) {
    %c0_i32 = arith.constant 0 : i32
    %c0_i32_0 = arith.constant 0 : i32
    %c0_i32_1 = arith.constant 0 : i32
    %c0_i32_2 = arith.constant 0 : i32
    return %c0_i32, %c0_i32_0, %c0_i32_1 : i32, i32, i32
  }
  func.func @transform_13(%arg0: i32) -> (i32, i32, i32) {
    %c0_i32 = arith.constant 0 : i32
    %c0_i32_0 = arith.constant 0 : i32
    %c0_i32_1 = arith.constant 0 : i32
    %c0_i32_2 = arith.constant 0 : i32
    return %c0_i32, %c0_i32_0, %c0_i32_1 : i32, i32, i32
  }
  func.func @transform_14(%arg0: i32) -> (i32, i32, i32) {
    %c0_i32 = arith.constant 0 : i32
    %c0_i32_0 = arith.constant 0 : i32
    %c0_i32_1 = arith.constant 0 : i32
    %c0_i32_2 = arith.constant 0 : i32
    return %c0_i32, %c0_i32_0, %c0_i32_1 : i32, i32, i32
  }
  func.func @transform_15(%arg0: i32) -> (i32, i32, i32) {
    %c0_i32 = arith.constant 0 : i32
    %c0_i32_0 = arith.constant 0 : i32
    %c0_i32_1 = arith.constant 0 : i32
    %c0_i32_2 = arith.constant 0 : i32
    return %c0_i32, %c0_i32_0, %c0_i32_1 : i32, i32, i32
  }
  func.func @transform_16(%arg0: i32) -> (i32, i32, i32) {
    %c0_i32 = arith.constant 0 : i32
    %c0_i32_0 = arith.constant 0 : i32
    %c0_i32_1 = arith.constant 0 : i32
    %c0_i32_2 = arith.constant 0 : i32
    return %c0_i32, %c0_i32_0, %c0_i32_1 : i32, i32, i32
  }
  func.func @transform_17(%arg0: i32) -> (i32, i32, i32) {
    %c0_i32 = arith.constant 0 : i32
    %c0_i32_0 = arith.constant 0 : i32
    %c0_i32_1 = arith.constant 0 : i32
    %c0_i32_2 = arith.constant 0 : i32
    return %c0_i32, %c0_i32_0, %c0_i32_1 : i32, i32, i32
  }
  func.func @transform_18(%arg0: i32) -> (i32, i32, i32) {
    %c0_i32 = arith.constant 0 : i32
    %c0_i32_0 = arith.constant 0 : i32
    %c0_i32_1 = arith.constant 0 : i32
    %c0_i32_2 = arith.constant 0 : i32
    return %c0_i32, %c0_i32_0, %c0_i32_1 : i32, i32, i32
  }
  func.func @transform_19(%arg0: i32) -> (i32, i32, i32) {
    %c0_i32 = arith.constant 0 : i32
    %c0_i32_0 = arith.constant 0 : i32
    %c0_i32_1 = arith.constant 0 : i32
    %c0_i32_2 = arith.constant 0 : i32
    return %c0_i32, %c0_i32_0, %c0_i32_1 : i32, i32, i32
  }
  func.func @transform_20(%arg0: i32) -> (i32, i32, i32) {
    %c0_i32 = arith.constant 0 : i32
    %c0_i32_0 = arith.constant 0 : i32
    %c0_i32_1 = arith.constant 0 : i32
    %c0_i32_2 = arith.constant 0 : i32
    return %c0_i32, %c0_i32_0, %c0_i32_1 : i32, i32, i32
  }
  func.func @transform_21(%arg0: i32) -> (i32, i32, i32) {
    %c0_i32 = arith.constant 0 : i32
    %c0_i32_0 = arith.constant 0 : i32
    %c0_i32_1 = arith.constant 0 : i32
    %c0_i32_2 = arith.constant 0 : i32
    return %c0_i32, %c0_i32_0, %c0_i32_1 : i32, i32, i32
  }
  func.func @transform_22(%arg0: i32) -> (i32, i32, i32) {
    %c0_i32 = arith.constant 0 : i32
    %c0_i32_0 = arith.constant 0 : i32
    %c0_i32_1 = arith.constant 0 : i32
    return %arg0, %c0_i32, %c0_i32_0 : i32, i32, i32
  }
}

</mosaic_0001>

<bundles_post_ra>
// kernel: tpu_custom_call.1
= control target key start
LH: loop header
LB: loop body
LE: loop exit
PB: predicated region body
PF: predicated region fallthrough
CT: control target
= control target key end

     0   :  { %s5365_s0 = inlined_call_operand.vmem [shape: f32[2,16,28], index: 0, kind: input, shape index: {}]   ;;  %s5366_s1 = inlined_call_operand.hbm [shape: f32[2,1,16], index: 1, kind: input, shape index: {}]   ;;  %s5367_s2 = inlined_call_operand.vmem [shape: f32[2,16,1], index: 2, kind: input, shape index: {}]   ;;  %s5368_s3 = inlined_call_operand.hbm [shape: f32[16,32], index: 3, kind: input, shape index: {}]   ;;  %s5369_s4 = inlined_call_operand.hbm [shape: bf16[28,32], index: 4, kind: input, shape index: {}]   ;;  %s5370_s5 = inlined_call_operand.hbm [shape: f32[1,32], index: 5, kind: input, shape index: {}]   ;;  %s5371_s6 = inlined_call_operand.vmem [shape: bf16[2,32,32], index: 6, kind: input, shape index: {}]   ;;  %s5372_s7 = inlined_call_operand.hbm [shape: f32[2,1,32], index: 7, kind: input, shape index: {}]   ;;  %s5373_s8 = inlined_call_operand.vmem [shape: bf16[2,32,32], index: 8, kind: input, shape index: {}]   ;;  %s5374_s9 = inlined_call_operand.hbm [shape: f32[2,1,32], index: 9, kind: input, shape index: {}]   ;;  %s5375_s10 = inlined_call_operand.vmem [shape: bf16[2,32,32], index: 10, kind: input, shape index: {}]   ;;  %s5376_s11 = inlined_call_operand.hbm [shape: f32[2,1,32], index: 11, kind: input, shape index: {}]   ;;  %s5377_s12 = inlined_call_operand.hbm [shape: bf16[2,32,32], index: 12, kind: input, shape index: {}]   ;;  %s5378_s13 = inlined_call_operand.hbm [shape: f32[2,1,32], index: 13, kind: input, shape index: {}]   ;;  %s5379_s14 = inlined_call_operand.hbm [shape: f32[2,1,32], index: 14, kind: input, shape index: {}]   ;;  %s5380_s15 = inlined_call_operand.hbm [shape: f32[2,1,32], index: 15, kind: input, shape index: {}]   ;;  %s5381_s16 = inlined_call_operand.hbm [shape: bf16[2,32,64], index: 16, kind: input, shape index: {}]   ;;  %s5382_s17 = inlined_call_operand.hbm [shape: f32[2,1,64], index: 17, kind: input, shape index: {}]   ;;  %s5383_s18 = inlined_call_operand.vmem [shape: bf16[2,64,32], index: 18, kind: input, shape index: {}]   ;;  %s5384_s19 = inlined_call_operand.vmem [shape: f32[2,1,32], index: 19, kind: input, shape index: {}]   ;;  %s5385_s20 = inlined_call_operand.vmem [shape: f32[2,1,32], index: 20, kind: input, shape index: {}]   ;;  %s5386_s21 = inlined_call_operand.vmem [shape: f32[2,1,32], index: 21, kind: input, shape index: {}]   ;;  %s5387_s22 = inlined_call_operand.hbm [shape: f32[2,16,32], index: 22, kind: output, shape index: {}]  }
   0x1   :  { %5412 = sst [smem:[#allocation32_spill]] %s5365_s0 }
   0x2   :  { %5413 = sst [smem:[#allocation33_spill]] %s5366_s1 }
   0x3   :  { %5414 = sst [smem:[#allocation34_spill]] %s5367_s2 }
   0x4   :  { %5415 = sst [smem:[#allocation35_spill]] %s5368_s3 }
   0x5   :  { %5416 = sst [smem:[#allocation36_spill]] %s5369_s4 }
   0x6   :  { %5417 = sst [smem:[#allocation37_spill]] %s5370_s5 }
   0x7   :  { %5418 = sst [smem:[#allocation38_spill]] %s5371_s6 }
   0x8   :  { %5419 = sst [smem:[#allocation39_spill]] %s5372_s7 }
   0x9   :  { %5420 = sst [smem:[#allocation40_spill]] %s5374_s9 }
   0xa   :  { %5421 = sst [smem:[#allocation41_spill]] %s5375_s10 }
   0xb   :  { %5422 = sst [smem:[#allocation42_spill]] %s5376_s11 }
   0xc   :  { %5423 = sst [smem:[#allocation43_spill]] %s5377_s12 }
   0xd   :  { %5424 = sst [smem:[#allocation44_spill]] %s5378_s13 }
   0xe   :  { %5425 = sst [smem:[#allocation45_spill]] %s5383_s18 }
   0xf   :  { %5426 = sst [smem:[#allocation46_spill]] %s5384_s19 }
  0x10   :  { %5427 = sst [smem:[#allocation47_spill]] %s5385_s20 }
  0x11   :  { %5428 = sst [smem:[#allocation48_spill]] %s5386_s21 }
  0x12   :  { %5429 = sst [smem:[#allocation49_spill]] %s5387_s22 }
  0x13   :  { %27 = vsyncpa [#allocation3], 0 }
  0x14   :  { %29 = vsyncpa [#allocation3 + $0x1], 0 }
  0x15   :  { %30 = vsyncpa [#allocation6], 0 }
  0x16   :  { %31 = vsyncpa [#allocation9], 0 }
  0x17   :  { %32 = vsyncpa [#allocation12], 0 }
  0x18   :  { %33 = vsyncpa [#allocation15], 0 }
  0x19   :  { %34 = vsyncpa [#allocation18], 0 }
  0x1a   :  { %35 = vsyncpa [#allocation21], 0 }
  0x1b   :  { %36 = vsyncpa [#allocation4], 0 }
  0x1c   :  { %38 = vsyncpa [#allocation4 + $0x1], 0  ;;  %s4691_s3 = smov 0   ;;  %s4693_s28 = smov 0  }
  0x1d   :  { %s4695_s29 = smov 0   ;;  %s4697_s30 = smov 0  }
  0x1e LB: > { %s4546_s4 = smov [#allocation5]   ;;  %s4712_s23 = sadd.s32 4294967295, %s4544_s30   ;;  %s4544_s30 = sphi %s4697_s30, %s5484_s30   ;;  %s4540_s29 = sphi %s4695_s29, %s5483_s29   ;;  %s4536_s28 = sphi %s4693_s28, %s5482_s28   ;;  %s4532_s3 = sphi %s4691_s3, %s5481_s3  }
  0x1f   : > { %s564_s0 = sshll.u32 %s4546_s4, 4  ;;  %p3351_p0 = scmp.ge.s32.totalorder %s4544_s30, 1  ;;  %s565_s0 = int_to_ptr.vmem [resolvable:$true] %s564_s0 }
  0x20   : > { %p5396_p1 = scmp.eq.s32.totalorder %s4712_s23, 0  ;;  %p552_p2 = scmp.lt.s32.totalorder %s4544_s30, 3 }
  0x21   : > { %s4547_s5 = smov [#allocation8]   ;;  %s4548_s25 = smov [#allocation11]  }
  0x22   : > { %p4717_p3 = pnand %p3351_p0, %p552_p2  ;;  %s591_s24 = sshll.u32 %s4547_s5, 4  ;;  %s592_s24 = int_to_ptr.vmem [resolvable:$true] %s591_s24 }
  0x23   : > { %s620_s26 = sshll.u32 %s4548_s25, 4  ;;  %s4127_s27 = scalar_lea.vmem %s565_s0, 256  ;;  %s621_s26 = int_to_ptr.vmem [resolvable:$true] %s620_s26 }
  0x24   : > { %s5430_s1 = scalar_select %p4717_p3, 1, 0 }
  0x25   : > { %p3831_p5 = pneg %p4717_p3  ;;  %p4128_p8 = scmp.ne.s32.totalorder %s565_s0, %s4127_s27 }
  0x26   : > { %p4135_p11 = scmp.lt.s32.totalorder %s565_s0, %s565_s0  ;;  %p4136_p12 = scmp.lt.s32.totalorder %s4127_s27, %s4127_s27 }
  0x27   : > { %p4726_p6 = pnand %p3831_p5, %p5396_p1 }
  0x28   : > { %p4137_p13 = por %p4136_p12, %p4135_p11 }
  0x29   : > { %p4732_p7 = pneg %p4726_p6 }
  0x2b   : > { %p4130_p9 = pnand %p4128_p8, %p4732_p7 }
  0x2d   : > { %p4131_p10 = pneg %p4130_p9 }
  0x2f   : > { %p4138_p0 = pnand %p4137_p13, %p4131_p10 }
  0x31   : > { %4141 = shalt.err (!%p4138_p0)
}
  0x32   : > { %s4549_s4 = smov 128   ;;  %s4550_s5 = smov 8  }
  0x33   : > { %s5433_s21 = sld [smem:[#allocation35_spill]]  ;;  %s4153_s20 = scalar_lea.vmem %s592_s24, 16 }
  0x34   : > { %p4154_p2 = scmp.ne.s32.totalorder %s592_s24, %s4153_s20  ;;  %s4160_s19 = scalar_lea.vmem %s592_s24, 32 }
  0x35   : > { %p4161_p9 = scmp.lt.s32.totalorder %s592_s24, %s592_s24  ;;  %p4162_p4 = scmp.lt.s32.totalorder %s4160_s19, %s4153_s20 }
  0x36   : > { %p4156_p5 = pnand %p4154_p2, %p4732_p7 }
  0x37   : > { %p4163_p11 = por %p4162_p4, %p4161_p9 }
  0x38   : > { %p4157_p8 = pneg %p4156_p5 }
  0x39   : > { %3834 = dma.hbm_to_vmem [thread:$0]  (!%p4726_p6), %s5433_s21, 256, %s565_s0, [#allocation6], %s4549_s4, %s4549_s4, %s4550_s5  }
  0x3a   : > { %p4164_p10 = pnand %p4163_p11, %p4157_p8 }
  0x3c   : > { %4167 = shalt.err (!%p4164_p10)
}
  0x3d   : > { %s5434_s10 = sld [smem:[#allocation37_spill]]  ;;  %s4179_s21 = scalar_lea.vmem %s621_s26, 32 }
  0x3e   : > { %p4180_p12 = scmp.ne.s32.totalorder %s621_s26, %s4179_s21  ;;  %p4187_p2 = scmp.lt.s32.totalorder %s621_s26, %s621_s26 }
  0x3f   : > { %p4188_p5 = scmp.lt.s32.totalorder %s4179_s21, %s4179_s21 }
  0x40   : > { %p4182_p13 = pnand %p4180_p12, %p4732_p7 }
  0x41   : > { %p4189_p1 = por %p4188_p5, %p4187_p2 }
  0x42   : > { %p4183_p0 = pneg %p4182_p13 }
  0x43   : > { %3840 = dma.hbm_to_vmem [thread:$0]  (!%p4726_p6), %s5434_s10, 16, %s592_s24, [#allocation9]  }
  0x44   : > { %p4190_p3 = pnand %p4189_p1, %p4183_p0 }
  0x46   : > { %4193 = shalt.err (!%p4190_p3)
}
  0x47   : > { %s5398_s19 = smov 16   ;;  %s4552_s20 = smov 1  }
  0x48   : > { %s5435_s9 = sld [smem:[#allocation40_spill]]  ;;  %s4553_s22 = smov [#allocation14]  }
  0x49   : > { %s649_s0 = sshll.u32 %s4553_s22, 4  ;;  %s4554_s24 = smov [#allocation17]   ;;  %s650_s0 = int_to_ptr.vmem [resolvable:$true] %s649_s0 }
  0x4a   : > { %s675_s4 = sshll.u32 %s4554_s24, 4  ;;  %s4205_s5 = scalar_lea.vmem %s650_s0, 512  ;;  %s676_s4 = int_to_ptr.vmem [resolvable:$true] %s675_s4 }
  0x4b   : > { %p4206_p1 = scmp.ne.s32.totalorder %s650_s0, %s4205_s5  ;;  %p4213_p8 = scmp.lt.s32.totalorder %s650_s0, %s650_s0 }
  0x4c   : > { %p4214_p9 = scmp.lt.s32.totalorder %s4205_s5, %s4205_s5 }
  0x4d   : > { %p4208_p3 = pnand %p4206_p1, %p4732_p7 }
  0x4e   : > { %3846 = dma.hbm_to_vmem [thread:$0]  (!%p4726_p6), %s5435_s9, 32, %s621_s26, [#allocation12], %s5398_s19, %s5398_s19, %s4552_s20  }
  0x4f   : > { %p4209_p4 = pneg %p4208_p3  ;;  %p4215_p11 = por %p4214_p9, %p4213_p8 }
  0x51   : > { %p4216_p10 = pnand %p4215_p11, %p4209_p4 }
  0x53   : > { %4219 = shalt.err (!%p4216_p10)
}
  0x54   : > { %s4555_s25 = smov 64   ;;  %s4556_s27 = smov 4  }
  0x55   : > { %s5436_s12 = sld [smem:[#allocation43_spill]]  ;;  %s4231_s10 = scalar_lea.vmem %s676_s4, 32 }
  0x56   : > { %p4232_p12 = scmp.ne.s32.totalorder %s676_s4, %s4231_s10  ;;  %p4239_p2 = scmp.lt.s32.totalorder %s676_s4, %s676_s4 }
  0x57   : > { %p4240_p5 = scmp.lt.s32.totalorder %s4231_s10, %s4231_s10 }
  0x58   : > { %p4234_p13 = pnand %p4232_p12, %p4732_p7 }
  0x59   : > { %p4241_p1 = por %p4240_p5, %p4239_p2 }
  0x5a   : > { %p4235_p0 = pneg %p4234_p13 }
  0x5b   : > { %3852 = dma.hbm_to_vmem [thread:$0]  (!%p4726_p6), %s5436_s12, 512, %s650_s0, [#allocation15], %s4555_s25, %s4555_s25, %s4556_s27  }
  0x5c   : > { %p4242_p3 = pnand %p4241_p1, %p4235_p0 }
  0x5e   : > { %4245 = shalt.err (!%p4242_p3)
}
  0x5f   : > { %3858 = dma.hbm_to_vmem [thread:$0]  (!%p4726_p6), %s5379_s14, 32, %s676_s4, [#allocation18], %s5398_s19, %s5398_s19, %s4552_s20  }
  0x60   : > { %s4557_s0 = smov [#allocation20]   ;;  %s4558_s5 = smov [#allocation7]  }
  0x61   : > { %s701_s24 = sshll.u32 %s4557_s0, 4  ;;  %s577_s26 = sshll.u32 %s4558_s5, 4  ;;  %s702_s24 = int_to_ptr.vmem [resolvable:$true] %s701_s24  ;;  %s578_s26 = int_to_ptr.vmem [resolvable:$true] %s577_s26 }
  0x62   : > { %s4257_s21 = scalar_lea.vmem %s702_s24, 512  ;;  %p4265_p11 = scmp.lt.s32.totalorder %s702_s24, %s702_s24 }
  0x63   : > { %p4258_p4 = scmp.ne.s32.totalorder %s702_s24, %s4257_s21  ;;  %p4266_p10 = scmp.lt.s32.totalorder %s4257_s21, %s4257_s21 }
  0x65   : > { %p4260_p8 = pnand %p4258_p4, %p4732_p7  ;;  %p4267_p12 = por %p4266_p10, %p4265_p11 }
  0x67   : > { %p4261_p9 = pneg %p4260_p8 }
  0x69   : > { %p4268_p13 = pnand %p4267_p12, %p4261_p9 }
  0x6b   : > { %4271 = shalt.err (!%p4268_p13)
}
  0x6c   : > { %3864 = dma.hbm_to_vmem [thread:$0]  (!%p4726_p6), %s5381_s16, 512, %s702_s24, [#allocation21], %s4555_s25, %s4555_s25, %s4556_s27  }
  0x6d   : > { %s4283_s18 = scalar_lea.vmem %s578_s26, 256  ;;  %p4291_p1 = scmp.lt.s32.totalorder %s578_s26, %s578_s26 }
  0x6e   : > { %p4284_p0 = scmp.ne.s32.totalorder %s578_s26, %s4283_s18  ;;  %p4292_p3 = scmp.lt.s32.totalorder %s4283_s18, %s4283_s18 }
  0x70   : > { %p4286_p2 = pnand %p4284_p0, %p4732_p7  ;;  %p4293_p4 = por %p4292_p3, %p4291_p1 }
  0x72   : > { %p4287_p5 = pneg %p4286_p2 }
  0x74   : > { %p4294_p8 = pnand %p4293_p4, %p4287_p5 }
  0x76   : > { %4297 = shalt.err (!%p4294_p8)
}
  0x77   : > { %s5437_s5 = sld [smem:[#allocation36_spill]]  ;;  %s4559_s24 = smov [#allocation10]  }
  0x78   : > { %s604_s21 = sshll.u32 %s4559_s24, 4  ;;  %s4560_s4 = smov [#allocation13]   ;;  %s605_s21 = int_to_ptr.vmem [resolvable:$true] %s604_s21 }
  0x79   : > { %s636_s10 = sshll.u32 %s4560_s4, 4  ;;  %s4309_s19 = scalar_lea.vmem %s605_s21, 32  ;;  %s637_s10 = int_to_ptr.vmem [resolvable:$true] %s636_s10 }
  0x7a   : > { %p4310_p9 = scmp.ne.s32.totalorder %s605_s21, %s4309_s19  ;;  %p4317_p12 = scmp.lt.s32.totalorder %s605_s21, %s605_s21 }
  0x7b   : > { %p4318_p13 = scmp.lt.s32.totalorder %s4309_s19, %s4309_s19 }
  0x7c   : > { %p4312_p11 = pnand %p4310_p9, %p4732_p7 }
  0x7d   : > { %3837 = dma.hbm_to_vmem [thread:$0]  (!%p4726_p6), %s5437_s5, 256, %s578_s26, [#allocation6], %s4555_s25, %s4555_s25, %s4556_s27  }
  0x7e   : > { %p4313_p10 = pneg %p4312_p11  ;;  %p4319_p0 = por %p4318_p13, %p4317_p12 }
  0x80   : > { %p4320_p2 = pnand %p4319_p0, %p4313_p10 }
  0x82   : > { %4323 = shalt.err (!%p4320_p2)
}
  0x83   : > { %s5438_s18 = smov 16   ;;  %s5439_s7 = sld [smem:[#allocation39_spill]] }
  0x84   : > { %s4335_s26 = scalar_lea.vmem %s637_s10, 32  ;;  %p4343_p4 = scmp.lt.s32.totalorder %s637_s10, %s637_s10 }
  0x85   : > { %p4336_p5 = scmp.ne.s32.totalorder %s637_s10, %s4335_s26  ;;  %p4344_p8 = scmp.lt.s32.totalorder %s4335_s26, %s4335_s26 }
  0x87   : > { %p4338_p1 = pnand %p4336_p5, %p4732_p7  ;;  %p4345_p9 = por %p4344_p8, %p4343_p4 }
  0x89   : > { %3843 = dma.hbm_to_vmem [thread:$0]  (!%p4726_p6), %s5439_s7, 32, %s605_s21, [#allocation9], %s5438_s18, %s5438_s18, %s4552_s20  }
  0x8a   : > { %p4339_p3 = pneg %p4338_p1 }
  0x8c   : > { %p4346_p11 = pnand %p4345_p9, %p4339_p3 }
  0x8e   : > { %4349 = shalt.err (!%p4346_p11)
}
  0x8f   : > { %s5440_s11 = sld [smem:[#allocation42_spill]]  ;;  %s4561_s0 = smov [#allocation16]  }
  0x90   : > { %s662_s5 = sshll.u32 %s4561_s0, 4  ;;  %s4562_s24 = smov [#allocation19]   ;;  %s663_s5 = int_to_ptr.vmem [resolvable:$true] %s662_s5 }
  0x91   : > { %s688_s21 = sshll.u32 %s4562_s24, 4  ;;  %s4361_s4 = scalar_lea.vmem %s663_s5, 32  ;;  %s689_s21 = int_to_ptr.vmem [resolvable:$true] %s688_s21 }
  0x92   : > { %p4362_p10 = scmp.ne.s32.totalorder %s663_s5, %s4361_s4  ;;  %p4369_p0 = scmp.lt.s32.totalorder %s663_s5, %s663_s5 }
  0x93   : > { %p4370_p2 = scmp.lt.s32.totalorder %s4361_s4, %s4361_s4 }
  0x94   : > { %p4364_p12 = pnand %p4362_p10, %p4732_p7 }
  0x95   : > { %3849 = dma.hbm_to_vmem [thread:$0]  (!%p4726_p6), %s5440_s11, 32, %s637_s10, [#allocation12], %s5438_s18, %s5438_s18, %s4552_s20  }
  0x96   : > { %p4365_p13 = pneg %p4364_p12  ;;  %p4371_p5 = por %p4370_p2, %p4369_p0 }
  0x98   : > { %p4372_p1 = pnand %p4371_p5, %p4365_p13 }
  0x9a   : > { %4375 = shalt.err (!%p4372_p1)
}
  0x9b   : > { %s5441_s13 = sld [smem:[#allocation44_spill]]  ;;  %s4387_s27 = scalar_lea.vmem %s689_s21, 32 }
  0x9c   : > { %p4388_p3 = scmp.ne.s32.totalorder %s689_s21, %s4387_s27  ;;  %p4395_p9 = scmp.lt.s32.totalorder %s689_s21, %s689_s21 }
  0x9d   : > { %p4396_p11 = scmp.lt.s32.totalorder %s4387_s27, %s4387_s27 }
  0x9e   : > { %p4390_p4 = pnand %p4388_p3, %p4732_p7 }
  0x9f   : > { %p4397_p10 = por %p4396_p11, %p4395_p9 }
  0xa0   : > { %p4391_p8 = pneg %p4390_p4 }
  0xa1   : > { %3855 = dma.hbm_to_vmem [thread:$0]  (!%p4726_p6), %s5441_s13, 32, %s663_s5, [#allocation15], %s5438_s18, %s5438_s18, %s4552_s20  }
  0xa2   : > { %p4398_p12 = pnand %p4397_p10, %p4391_p8 }
  0xa4   : > { %4401 = shalt.err (!%p4398_p12)
}
  0xa5   : > { %3861 = dma.hbm_to_vmem [thread:$0]  (!%p4726_p6), %s5380_s15, 32, %s689_s21, [#allocation18], %s5438_s18, %s5438_s18, %s4552_s20  }
  0xa6   : > { %s4563_s22 = smov [#allocation22]  }
  0xa7   : > { %s714_s0 = sshll.u32 %s4563_s22, 4  ;;  %s715_s0 = int_to_ptr.vmem [resolvable:$true] %s714_s0 }
  0xa8   : > { %s4413_s5 = scalar_lea.vmem %s715_s0, 32  ;;  %p4421_p5 = scmp.lt.s32.totalorder %s715_s0, %s715_s0 }
  0xa9   : > { %p4414_p13 = scmp.ne.s32.totalorder %s715_s0, %s4413_s5  ;;  %p4422_p1 = scmp.lt.s32.totalorder %s4413_s5, %s4413_s5 }
  0xab   : > { %p4416_p0 = pnand %p4414_p13, %p4732_p7  ;;  %p4423_p3 = por %p4422_p1, %p4421_p5 }
  0xad   : > { %p4417_p2 = pneg %p4416_p0 }
  0xaf   : > { %p4424_p4 = pnand %p4423_p3, %p4417_p2 }
  0xb1   : > { %4427 = shalt.err (!%p4424_p4)
}
  0xb2   : > { %3867 = dma.hbm_to_vmem [thread:$0]  (!%p4726_p6), %s5382_s17, 32, %s715_s0, [#allocation21], %s5438_s18, %s5438_s18, %s4552_s20  }
  0xb3   : > { %s3350_s6 = sadd.s32 4294967294, %s4544_s30   ;;  %s4852_s2 = sadd.s32 1, %s4544_s30  }
  0xb4   : > { %s74_s4 = ssub.s32 %s4544_s30, %s4852_s2  ;;  %s77_s10 = sadd.s32 1, %s4540_s29 }
  0xb5   : > { %p75_p7 = scmp.eq.s32.totalorder %s74_s4, 0  ;;  %p84_p8 = scmp.ne.s32.totalorder %s4540_s29, %s4536_s28 }
  0xb6   : > { %p85_p9 = scmp.eq.s32.totalorder %s4544_s30, 0  ;;  %p90_p11 = scmp.ne.s32.totalorder %s4536_s28, %s4532_s3 }
  0xb7   : > { %s4863_s25 = scalar_select %p75_p7, %s4540_s29, %s77_s10  }
  0xb8   : > { %p4865_p10 = por %p85_p9, %p84_p8  ;;  %p5443_p12 = scmp.eq.s32.totalorder %s4712_s23, 0 }
  0xb9   : > { %p539_p13 = scmp.eq.s32.totalorder %s4712_s23, 1  ;;  %p545_p0 = scmp.eq.s32.totalorder %s3350_s6, 1 }
  0xba   : > { %p4871_p6 = por %p5443_p12, %p90_p11  ;;  %p3888_p2 = scmp.lt.s32.totalorder %s4544_s30, 2 }
  0xbb   : > { %s748_s18 = sand.u32 1, %s4540_s29   ;;  %p4878_p5 = por %p539_p13, %p84_p8 }
  0xbc   : > { %s5444_s20 = scalar_select %p4871_p6, 1, 0 }
  0xbd   : > { %s5445_s26 = scalar_select %p4878_p5, 1, 0 }
  0xbe   : > { %p4882_p1 = por %p545_p0, %p90_p11  ;;  %s3365_s22 = sshll.u32 %s4544_s30, 4 }
  0xbf   : > { %s751_s0 = scalar_lea.vmem [#allocation2], %s748_s18  ;;  %s5447_s4 = sld [smem:[#allocation33_spill]] }
  0xc0   : > { %s5446_s19 = scalar_select %p4882_p1, 1, 0 }
  0xc1   : > { %s758_s5 = sshll.u32 %s751_s0, 4  ;;  %p4894_p3 = pnand %p3888_p2, %p4865_p10  ;;  %s759_s5 = int_to_ptr.vmem [resolvable:$true] %s758_s5 }
  0xc2   : > { %s749_s7 = scalar_lea.sflag [#allocation3], %s748_s18 }
  0xc3   : > { %p4430_p7 = pneg %p4894_p3 }
  0xc5   : > { %s4890_s10 = scalar_lea.hbm %s5447_s4, %s3365_s22  ;;  %s4433_s24 = scalar_lea.hbm %s5447_s4, 32 }
  0xc6   : > { %s4428_s9 = scalar_lea.hbm %s4890_s10, 16  ;;  %p4434_p11 = scmp.lt.s32.totalorder %s4890_s10, %s5447_s4 }
  0xc7   : > { %p4429_p4 = scmp.ne.s32.totalorder %s4890_s10, %s4428_s9  ;;  %p4435_p10 = scmp.lt.s32.totalorder %s4433_s24, %s4428_s9 }
  0xc9   : > { %p4431_p8 = pnand %p4430_p7, %p4429_p4  ;;  %p4436_p12 = por %p4435_p10, %p4434_p11 }
  0xcb   : > { %p4432_p9 = pneg %p4431_p8 }
  0xcd   : > { %p4437_p13 = pnand %p4436_p12, %p4432_p9 }
  0xcf   : > { %4440 = shalt.err (!%p4437_p13)
}
  0xd0   : > { %s4441_s27 = scalar_lea.vmem %s759_s5, 16  ;;  %s4564_s18 = smov [#allocation2]  }
  0xd1   : > { %p4442_p0 = scmp.ne.s32.totalorder %s759_s5, %s4441_s27  ;;  %s4446_s12 = sshll.u32 %s4564_s18, 4  ;;  %s4447_s12 = int_to_ptr.vmem [resolvable:$false] %s4446_s12 }
  0xd2   : > { %s4448_s13 = scalar_lea.vmem %s4447_s12, 32  ;;  %p4449_p4 = scmp.lt.s32.totalorder %s759_s5, %s4447_s12 }
  0xd3   : > { %p4444_p2 = pnand %p4442_p0, %p4430_p7  ;;  %p4450_p8 = scmp.lt.s32.totalorder %s4448_s13, %s4441_s27 }
  0xd5   : > { %p4445_p1 = pneg %p4444_p2  ;;  %p4451_p5 = por %p4450_p8, %p4449_p4 }
  0xd7   : > { %p4452_p6 = pnand %p4451_p5, %p4445_p1 }
  0xd9   : > { %4455 = shalt.err (!%p4452_p6)
}
  0xda   : > { %3871 = dma.hbm_to_vmem [thread:$0]  (!%p4894_p3), %s4890_s10, 16, %s759_s5, %s749_s7  }
  0xdb   : > { %p5449_p9 = scmp.ne.s32.totalorder %s5430_s1, 0 }
  0xdc   : > { %s4915_s9 = sand.u32 (!%p5449_p9), 1, %s4536_s28   ;;  %p5450_p7 = scmp.ne.s32.totalorder (!%p5449_p9), %s5444_s20, 0 }
  0xdd   : > { %775 = sbr.rel (%p5449_p9) target bundleno = 5355 (0x14eb), region = 108  ;;  %s778_s11 = scalar_lea.sflag (!%p5449_p9), [#allocation3], %s4915_s9 }
  0xde   : > { %s780_s0 = scalar_lea.vmem (!%p5449_p9), [#allocation2], %s4915_s9 }
  0xe2   : > { %4499 = dma.done.wait (%p5450_p7), %s778_s11, 16  }
  0xe3   : > { %4501 = vsyncadd (%p5450_p7), %s778_s11, 4294967280  ;;  %p5451_p6 = scmp.eq.s32.totalorder %s4712_s23, 0 }
  0xe5   : > { %4503 = dma.done.wait (%p5451_p6), [#allocation6], 512   ;;  %p5452_p5 = pmov %p5451_p6 }
  0xe7   : > { %4505 = vsyncadd (%p5452_p5), [#allocation6], 4294966784  ;;  %p5453_p1 = pmov %p5452_p5 }
  0xe9   : > { %4507 = dma.done.wait (%p5453_p1), [#allocation9], 48   ;;  %p5454_p3 = pmov %p5453_p1 }
  0xea   : > { %p5455_p11 = pmov %p5453_p1 }
  0xeb   : > { %4509 = vsyncadd (%p5454_p3), [#allocation9], 4294967248 }
  0xec   : > { %4511 = dma.done.wait (%p5455_p11), [#allocation12], 64   ;;  %p5456_p10 = pmov %p5453_p1 }
  0xed   : > { %p5457_p12 = pmov %p5453_p1 }
  0xee   : > { %4513 = vsyncadd (%p5456_p10), [#allocation12], 4294967232 }
  0xef   : > { %4515 = dma.done.wait (%p5457_p12), [#allocation15], 544   ;;  %p5458_p13 = pmov %p5453_p1 }
  0xf0   : > { %p5459_p0 = pmov %p5453_p1 }
  0xf1   : > { %4517 = vsyncadd (%p5458_p13), [#allocation15], 4294966752 }
  0xf2   : > { %4519 = dma.done.wait (%p5459_p0), [#allocation18], 64   ;;  %p5460_p2 = pmov %p5459_p0 }
  0xf3   : > { %p5461_p4 = pmov %p5459_p0 }
  0xf4   : > { %4521 = vsyncadd (%p5460_p2), [#allocation18], 4294967232 }
  0xf5   : > { %4523 = dma.done.wait (%p5461_p4), [#allocation21], 544   ;;  %p5462_p8 = pmov %p5459_p0 }
  0xf6   : > { %p898_p9 = scmp.lt.s32.totalorder %s4712_s23, 1  ;;  %v4565_v0 = vmov 0.0   ;;  %vm4566_vm0 = vmmov 0   ;;  %vm939_vm1 = vcmask 1045504   ;;  %s5463_s20 = sld [smem:[#allocation32_spill]]  ;;  %v3995_v3 = vld [vmem:[#allocation7] sm:$0xff]  }
  0xf7   : > { %4525 = vsyncadd (%p5462_p8), [#allocation21], 4294966752  ;;  %3571 = vmatprep.subr.bf16.mxu0 %v4565_v0  ;;  %3575 = vmatprep.mubr.msk.bf16.mxu0 %vm4566_vm0, %v4565_v0  ;;  %v3994_v1 = vld [vmem:[#allocation7 + $0x8] sm:$0x3f]   ;;  %vm935_vm2 = vcmask 228352   ;;  %s5464_s22 = sld [smem:[#allocation38_spill]] }
  0xf8   : > { %s4952_s7 = scalar_select %p898_p9, %s4712_s23, 1  ;;  %3579 = vmatprep.subr.bf16.mxu1 %v4565_v0  ;;  %3583 = vmatprep.mubr.msk.bf16.mxu1 %vm4566_vm0, %v4565_v0  ;;  %v941_v2 = vsel %vm939_vm1, %v3994_v1, 0  ;;  %v3997_v8 = vld [vmem:[%s5373_s8 + $0x8] sm:$0xff]   ;;  %v3999_v10 = vld [vmem:[%s5373_s8] sm:$0xff]   ;;  %vm1012_vm3 = vcmask 261120   ;;  %vm1193_vm4 = vcmask 64512  }
  0xf9   : > { %3572 = vmatpush3.bf16.msra.mxu0 %v941_v2  ;;  %v3384_v11 = vld [vmem:[#allocation8] ss:$0 sm:$0xff]  ;;  %v985_v17 = vld [vmem:[#allocation5 + $0x8] sm:$0xff]  ;;  %v3392_v27 = vld [vmem:[#allocation11] ss:$0 sm:$0xff]  ;;  %s5407_s24 = smov 112  }
  0xfa   : > { %s5402_s12 = sshll.u32 %s4952_s7, 4  ;;  %3573 = vmatprep.subr.bf16.mxu0 %v4565_v0  ;;  %v984_v15 = vld [vmem:[#allocation5] sm:$0xff]  ;;  %s4568_s21 = smov 120   ;;  %v5038_v59 = vld [vmem:[%s780_s0] ss:$0 sm:$0xff]  ;;  %vm1241_vm5 = vcmask 130048  }
  0xfb   : > { %v3388_v34 = vld [vmem:[#allocation10] ss:$0 sm:$0xff]  ;;  %v3396_v42 = vld [vmem:[#allocation13] ss:$0 sm:$0xff]  ;;  %s4569_s27 = smov 104   ;;  %s5405_s0 = smov 8  }
  0xfc   : > { %s902_s5 = scalar_lea.vmem %s5463_s20, %s5402_s12  ;;  %s5404_s18 = smov 16   ;;  %vm1704_vm6 = vcmask 195584   ;;  %vm1948_vm7 = vcmask 523264  }
  0xfd   : > { %v910_v4 = vld [vmem:[%s902_s5] sm:$0xff]  ;;  %v911_v5 = vld [vmem:[%s902_s5 + $0x8] sm:$0xff]  ;;  %3574 = vmatpush3.bf16.msra.mxu0 %v3995_v3  ;;  %s5465_s5 = sld [smem:[#allocation41_spill]]  ;;  %s5403_s11 = smov 24  }
  0xfe   : > { %v912_v6 = vpack.c.bf16 %v911_v5, %v910_v4  ;;  %3587 = vmatprep.subr.bf16.mxu0 %v4565_v0  ;;  %v3996_v7 = vld [vmem:[%s5464_s22 + $0x8] sm:$0xff]   ;;  %v3998_v9 = vld [vmem:[%s5464_s22] sm:$0xff]   ;;  %s5466_s20 = sld [smem:[#allocation45_spill]]  ;;  %s5470_s1 = smov 112  }
  0xff   : > { %3580 = vmatpush3.bf16.msra.mxu1 %v3996_v7  ;;  %s5468_s13 = sld [smem:[#allocation47_spill]]  ;;  %s5473_s10 = smov 24  }
 0x100   : > { %3576 = vmatmul.mubr.msk.bf16.vlgmr.msra.gmra.mxu0 %vm935_vm2, %v912_v6  ;;  %3581 = vmatprep.subr.bf16.mxu1 %v4565_v0  ;;  %s5469_s6 = sld [smem:[#allocation48_spill]]  ;;  %p5477_p6 = scmp.ne.s32.totalorder %s5445_s26, 0 }
 0x101   : > { %3591 = vmatprep.mubr.msk.bf16.mxu0 %vm4566_vm0, %v4565_v0  ;;  %3588 = vmatpush3.bf16.msra.mxu0 %v3997_v8  ;;  %s5476_s4 = sld [smem:[#allocation49_spill]] }
 0x102   : > { %3589 = vmatprep.subr.bf16.mxu0 %v4565_v0 }
 0x103   : > { %3582 = vmatpush3.bf16.msra.mxu1 %v3998_v9  ;;  %v4000_v22 = vld [vmem:[%s5465_s5 + $0x8] sm:$0xff]   ;;  %v4001_v24 = vld [vmem:[%s5465_s5] sm:$0xff]  }
 0x104   : > { %3595 = vmatprep.subr.bf16.mxu1 %v4565_v0 }
 0x105   : > { %3590 = vmatpush3.bf16.msra.mxu0 %v3999_v10 }
 0x106   : > { %3603 = vmatprep.subr.bf16.mxu0 %v4565_v0 }
 0x1c0   : > { %v977_v12 = vpop.f32.mrf.mxu0 }
 0x1c1   : > { %v978_v14 = vadd.f32 %v3384_v11, %v977_v12 }
 0x1c2   : > { %v3577_v13 = vpop.f32.mrf.mxu0 }
 0x1c3   : > { %v4983_v20 = vadd.f32 %v984_v15, %v978_v14 }
 0x1c4   : > { %v980_v16 = vpop.f32.mrf.mxu0 }
 0x1c5   : > { %v981_v18 = vadd.f32 %v3384_v11, %v980_v16 }
 0x1c6   : > { %v3578_v19 = vpop.f32.mrf.mxu0 }
 0x1c7   : > { %v4985_v21 = vadd.f32 %v985_v17, %v981_v18 }
 0x1c9   : > { %v988_v23 = vpack.c.bf16 %v4985_v21, %v4983_v20 }
 0x1cb   : > { %3584 = vmatmul.mubr.msk.bf16.vlgmr.msra.gmra.mxu1 %vm1012_vm3, %v988_v23  ;;  %3592 = vmatmul.mubr.msk.bf16.vlgmr.msra.gmra.mxu0 %vm1012_vm3, %v988_v23 }
 0x1cc   : > { %3596 = vmatpush3.bf16.msra.mxu1 %v4000_v22  ;;  %3599 = vmatprep.mubr.msk.bf16.mxu1 %vm4566_vm0, %v4565_v0 }
 0x1cd   : > { %3597 = vmatprep.subr.bf16.mxu1 %v4565_v0  ;;  %3605 = vmatprep.mubr.msk.bf16.mxu0 %vm4566_vm0, %v4565_v0 }
 0x1d0   : > { %3598 = vmatpush3.bf16.msra.mxu1 %v4001_v24 }
 0x1d1   : > { %3609 = vmatprep.subr.bf16.mxu1 %v4565_v0 }
 0x1d3   : > { %3600 = vmatmul.mubr.msk.bf16.vlgmr.msra.gmra.mxu1 %vm1012_vm3, %v988_v23 }
 0x1d4   : > { %3611 = vmatprep.mubr.msk.bf16.mxu1 %vm4566_vm0, %v4565_v0 }
 0x28b   : > { %v1050_v25 = vpop.f32.mrf.mxu1  ;;  %v1114_v26 = vpop.f32.mrf.mxu0 }
 0x28c   : > { %v1115_v32 = vadd.f32 %v3392_v27, %v1114_v26  ;;  %v1051_v40 = vadd.f32 %v3388_v34, %v1050_v25 }
 0x28d   : > { %v3585_v28 = vpop.f32.mrf.mxu1  ;;  %v3593_v29 = vpop.f32.mrf.mxu0 }
 0x28f   : > { %v1053_v30 = vpop.f32.mrf.mxu1  ;;  %v1117_v31 = vpop.f32.mrf.mxu0 }
 0x290   : > { %v1118_v33 = vadd.f32 %v3392_v27, %v1117_v31  ;;  %v1054_v37 = vadd.f32 %v3388_v34, %v1053_v30 }
 0x291   : > { %v3586_v35 = vpop.f32.mrf.mxu1  ;;  %v3594_v36 = vpop.f32.mrf.mxu0 }
 0x292   : > { %v1186_v38 = vpack.c.bf16 %v1118_v33, %v1115_v32  ;;  %v1185_v44 = vpack.c.bf16 %v1054_v37, %v1051_v40 }
 0x293   : > { %v1178_v39 = vpop.f32.mrf.mxu1 }
 0x294   : > { %1436 = vrot.lane.b32.xlu1 %v1186_v38, %s5407_s24  ;;  %1314 = vrot.lane.b32.xlu0 %v1186_v38, %s4568_s21  ;;  %v1198_v41 = vsel %vm1193_vm4, %v1186_v38, 0  ;;  %v1179_v46 = vadd.f32 %v3396_v42, %v1178_v39 }
 0x295   : > { %v3601_v43 = vpop.f32.mrf.mxu1  ;;  %3604 = vmatpush3.bf16.xpose.msra.mxu0 %v1198_v41 }
 0x296   : > { %3615 = vmatprep.subr.bf16.mxu0 %v4565_v0 }
 0x297   : > { %v1181_v45 = vpop.f32.mrf.mxu1 }
 0x298   : > { %v1182_v47 = vadd.f32 %v3396_v42, %v1181_v45  ;;  %1434 = vrot.lane.b32.xlu1 %v1185_v44, %s5407_s24  ;;  %1311 = vrot.lane.b32.xlu0 %v1185_v44, %s4568_s21 }
 0x299   : > { %v3602_v48 = vpop.f32.mrf.mxu1 }
 0x29a   : > { %v5012_v49 = vpack.c.bf16 %v1182_v47, %v1179_v46 }
 0x29c   : > { %3610 = vmatpush3.bf16.msra.mxu1 %v5012_v49  ;;  %1555 = vrot.lane.b32.xlu1 %v1185_v44, %s4569_s27 }
 0x29d   : > { %1557 = vrot.lane.b32.xlu0 %v1186_v38, %s4569_s27  ;;  %3606 = vmatmul.mubr.msk.bf16.vlgmr.msra.gmra.mxu0 %vm1193_vm4, %v1185_v44 }
 0x29e   : > { %3617 = vmatprep.mubr.msk.bf16.mxu0 %vm4566_vm0, %v4565_v0  ;;  %3621 = vmatprep.subr.bf16.mxu1 %v4565_v0 }
 0x306   : > { %v1315_v50 = vpop.permute.xlu0 %1314  ;;  %v1437_v52 = vpop.permute.xlu1 %1436 }
 0x307   : > { %v1320_v51 = vsel %vm1193_vm4, %v1315_v50, 0  ;;  %v1442_v54 = vsel %vm1193_vm4, %v1437_v52, 0 }
 0x308   : > { %3616 = vmatpush3.bf16.xpose.msra.mxu0 %v1320_v51 }
 0x309   : > { %3627 = vmatprep.subr.bf16.mxu0 %v4565_v0 }
 0x30a   : > { %v1312_v53 = vpop.permute.xlu0 %1311  ;;  %v1435_v56 = vpop.permute.xlu1 %1434 }
 0x30e   : > { %v1556_v58 = vpop.permute.xlu1 %1555 }
 0x30f   : > { %3618 = vmatmul.mubr.msk.bf16.vlgmr.msra.gmra.mxu0 %vm1193_vm4, %v1312_v53  ;;  %v1558_v55 = vpop.permute.xlu0 %1557 }
 0x310   : > { %3628 = vmatpush3.bf16.xpose.msra.mxu0 %v1442_v54  ;;  %3629 = vmatprep.mubr.msk.bf16.mxu0 %vm4566_vm0, %v4565_v0  ;;  %v1563_v57 = vsel %vm1193_vm4, %v1558_v55, 0 }
 0x311   : > { %3639 = vmatprep.subr.bf16.mxu0 %v4565_v0 }
 0x317   : > { %3630 = vmatmul.mubr.msk.bf16.vlgmr.msra.gmra.mxu0 %vm1193_vm4, %v1435_v56 }
 0x318   : > { %3640 = vmatpush3.bf16.xpose.msra.mxu0 %v1563_v57  ;;  %3641 = vmatprep.mubr.msk.bf16.mxu0 %vm4566_vm0, %v4565_v0 }
 0x319   : > { %3651 = vmatprep.subr.bf16.mxu0 %v4565_v0 }
 0x31f   : > { %3642 = vmatmul.mubr.msk.bf16.vlgmr.msra.gmra.mxu0 %vm1193_vm4, %v1556_v58 }
 0x320   : > { %3655 = vmatprep.mubr.msk.bf16.mxu0 %vm4566_vm0, %v4565_v0 }
 0x35d   : > { %v1234_v60 = vpop.f32.mrf.mxu0 }
 0x35e   : > { %v1235_v61 = vadd.f32 %v5038_v59, %v1234_v60 }
 0x35f   : > { %v3607_v62 = vpop.f32.mrf.mxu0 }
 0x360   : > { %v1242_v63 = vsel %vm1241_vm5, %v1235_v61, -inf }
 0x361   : > { %v1237_v1 = vpop.f32.mrf.mxu0  ;;  %1243 = vmax.xlane.f32.xlu0 %v1242_v63 }
 0x362   : > { %v1238_v2 = vadd.f32 %v5038_v59, %v1237_v1 }
 0x363   : > { %v3608_v3 = vpop.f32.mrf.mxu0 }
 0x364   : > { %v1245_v4 = vsel %vm1241_vm5, %v1238_v2, -inf }
 0x365   : > { %1246 = vmax.xlane.f32.xlu1 %v1245_v4 }
 0x3cf   : > { %v1356_v5 = vpop.f32.mrf.mxu0 }
 0x3d0   : > { %v1357_v6 = vadd.f32 %v5038_v59, %v1356_v5 }
 0x3d1   : > { %v3619_v7 = vpop.f32.mrf.mxu0 }
 0x3d2   : > { %v1363_v8 = vsel %vm1241_vm5, %v1357_v6, -inf }
 0x3d3   : > { %v1359_v9 = vpop.f32.mrf.mxu0  ;;  %1364 = vmax.xlane.f32.xlu0 %v1363_v8 }
 0x3d4   : > { %v1360_v10 = vadd.f32 %v5038_v59, %v1359_v9 }
 0x3d5   : > { %v3620_v11 = vpop.f32.mrf.mxu0 }
 0x3d6   : > { %v1366_v12 = vsel %vm1241_vm5, %v1360_v10, -inf }
 0x3d7   : > { %v1478_v13 = vpop.f32.mrf.mxu0  ;;  %1367 = vmax.xlane.f32.xlu0 %v1366_v12 }
 0x3d8   : > { %v1479_v14 = vadd.f32 %v5038_v59, %v1478_v13 }
 0x3d9   : > { %v3631_v15 = vpop.f32.mrf.mxu0 }
 0x3da   : > { %v1485_v16 = vsel %vm1241_vm5, %v1479_v14, -inf }
 0x3db   : > { %v1481_v17 = vpop.f32.mrf.mxu0  ;;  %1486 = vmax.xlane.f32.xlu1 %v1485_v16 }
 0x3dc   : > { %v1482_v18 = vadd.f32 %v5038_v59, %v1481_v17 }
 0x3dd   : > { %v3632_v19 = vpop.f32.mrf.mxu0 }
 0x3de   : > { %v1488_v22 = vsel %vm1241_vm5, %v1482_v18, -inf }
 0x3df   : > { %v1599_v23 = vpop.f32.mrf.mxu0  ;;  %1489 = vmax.xlane.f32.xlu0 %v1488_v22 }
 0x3e0   : > { %v1600_v24 = vadd.f32 %v5038_v59, %v1599_v23 }
 0x3e1   : > { %v3643_v25 = vpop.f32.mrf.mxu0 }
 0x3e2   : > { %v1606_v26 = vsel %vm1241_vm5, %v1600_v24, -inf }
 0x3e3   : > { %v1602_v27 = vpop.f32.mrf.mxu0  ;;  %1607 = vmax.xlane.f32.xlu1 %v1606_v26 }
 0x3e4   : > { %v1603_v28 = vadd.f32 %v5038_v59, %v1602_v27 }
 0x3e5   : > { %v3644_v29 = vpop.f32.mrf.mxu0 }
 0x3e6   : > { %v1609_v30 = vsel %vm1241_vm5, %v1603_v28, -inf }
 0x3e7   : > { %1610 = vmax.xlane.f32.xlu0 %v1609_v30 }
 0x3ea   : > { %v1244_v31 = vpop.xlane.xlu0 %1243 }
 0x3eb   : > { %v1248_v32 = vsub.f32 %v1235_v61, %v1244_v31 }
 0x3ed   : > { %v1250_v33 = vmul.f32 1.442695, %v1248_v32 }
 0x3ee   : > { %v1247_v34 = vpop.xlane.xlu1 %1246 }
 0x3ef   : > { %4024 = vpow2.f32 %v1250_v33  ;;  %v1249_v35 = vsub.f32 %v1238_v2, %v1247_v34 }
 0x3f1   : > { %v1252_v36 = vmul.f32 1.442695, %v1249_v35 }
 0x3f3   : > { %4026 = vpow2.f32 %v1252_v36 }
 0x3fc   : > { %v4025_v37 = vpop.eup %4024 }
 0x3fd   : > { %v1254_v38 = vsel %vm1241_vm5, %v4025_v37, 0.0 }
 0x3fe   : > { %1255 = vadd.xlane.f32.xlu1 %v1254_v38 }
 0x400   : > { %v4027_v39 = vpop.eup %4026 }
 0x401   : > { %v1257_v40 = vsel %vm1241_vm5, %v4027_v39, 0.0 }
 0x402   : > { %1258 = vadd.xlane.f32.xlu0 %v1257_v40 }
 0x40f   : > { %1387 = vrot.lane.b32.xlu1 %v5012_v49, %s4568_s21 }
 0x45c   : > { %v1365_v41 = vpop.xlane.xlu0 %1364 }
 0x45d   : > { %v1369_v42 = vsub.f32 %v1357_v6, %v1365_v41 }
 0x45f   : > { %v1371_v43 = vmul.f32 1.442695, %v1369_v42 }
 0x460   : > { %v1368_v44 = vpop.xlane.xlu0 %1367 }
 0x461   : > { %4028 = vpow2.f32 %v1371_v43  ;;  %v1370_v45 = vsub.f32 %v1360_v10, %v1368_v44 }
 0x463   : > { %v1373_v46 = vmul.f32 1.442695, %v1370_v45 }
 0x464   : > { %v1487_v47 = vpop.xlane.xlu1 %1486 }
 0x465   : > { %4030 = vpow2.f32 %v1373_v46  ;;  %v1491_v48 = vsub.f32 %v1479_v14, %v1487_v47 }
 0x467   : > { %v1493_v50 = vmul.f32 1.442695, %v1491_v48 }
 0x468   : > { %v1490_v51 = vpop.xlane.xlu0 %1489 }
 0x469   : > { %4032 = vpow2.f32 %v1493_v50  ;;  %v1492_v52 = vsub.f32 %v1482_v18, %v1490_v51  ;;  %v4002_v50 = vld [vmem:[#allocation14 + $0x8] sm:$0xff]  }
 0x46a   : > { %3652 = vmatpush3.bf16.msra.mxu0 %v4002_v50 }
 0x46b   : > { %v1495_v53 = vmul.f32 1.442695, %v1492_v52  ;;  %3653 = vmatprep.subr.bf16.mxu0 %v4565_v0 }
 0x46c   : > { %v1608_v54 = vpop.xlane.xlu1 %1607 }
 0x46d   : > { %4034 = vpow2.f32 %v1495_v53  ;;  %v1612_v55 = vsub.f32 %v1600_v24, %v1608_v54 }
 0x46e   : > { %v4029_v56 = vpop.eup %4028 }
 0x46f   : > { %v1614_v57 = vmul.f32 1.442695, %v1612_v55  ;;  %v1375_v58 = vsel %vm1241_vm5, %v4029_v56, 0.0 }
 0x470   : > { %1376 = vadd.xlane.f32.xlu1 %v1375_v58  ;;  %v1611_v60 = vpop.xlane.xlu0 %1610 }
 0x471   : > { %4036 = vpow2.f32 %v1614_v57  ;;  %v1613_v61 = vsub.f32 %v1603_v28, %v1611_v60 }
 0x472   : > { %v4031_v62 = vpop.eup %4030 }
 0x473   : > { %v1616_v63 = vmul.f32 1.442695, %v1613_v61  ;;  %v1378_v1 = vsel %vm1241_vm5, %v4031_v62, 0.0 }
 0x474   : > { %1379 = vadd.xlane.f32.xlu0 %v1378_v1 }
 0x475   : > { %4038 = vpow2.f32 %v1616_v63 }
 0x476   : > { %v4033_v2 = vpop.eup %4032 }
 0x477   : > { %v1497_v3 = vsel %vm1241_vm5, %v4033_v2, 0.0 }
 0x478   : > { %1498 = vadd.xlane.f32.xlu1 %v1497_v3 }
 0x47a   : > { %v4035_v4 = vpop.eup %4034 }
 0x47b   : > { %v1500_v5 = vsel %vm1241_vm5, %v4035_v4, 0.0 }
 0x47c   : > { %1501 = vadd.xlane.f32.xlu0 %v1500_v5 }
 0x47e   : > { %v4037_v6 = vpop.eup %4036 }
 0x47f   : > { %v1618_v7 = vsel %vm1241_vm5, %v4037_v6, 0.0 }
 0x480   : > { %1619 = vadd.xlane.f32.xlu1 %v1618_v7 }
 0x482   : > { %v4039_v8 = vpop.eup %4038 }
 0x483   : > { %v1621_v9 = vsel %vm1241_vm5, %v4039_v8, 0.0 }
 0x484   : > { %1622 = vadd.xlane.f32.xlu0 %v1621_v9 }
 0x487   : > { %v1256_v10 = vpop.xlane.xlu1 %1255 }
 0x488   : > { %4040 = vrcp.f32 %v1256_v10 }
 0x48b   : > { %v1259_v11 = vpop.xlane.xlu0 %1258  ;;  %v1388_v17 = vpop.permute.xlu1 %1387 }
 0x48c   : > { %4042 = vrcp.f32 %v1259_v11 }
 0x491   : > { %1629 = vrot.lane.b32.xlu1 %v5012_v49, %s4569_s27 }
 0x495   : > { %v4041_v12 = vpop.eup %4040 }
 0x496   : > { %v1262_v14 = vmul.f32 %v4041_v12, %v4025_v37 }
 0x499   : > { %v4043_v13 = vpop.eup %4042 }
 0x49a   : > { %1508 = vrot.lane.b32.xlu0 %v5012_v49, %s5407_s24  ;;  %v1263_v15 = vmul.f32 %v4043_v13, %v4027_v39 }
 0x49c   : > { %v1264_v16 = vpack.c.bf16 %v1263_v15, %v1262_v14 }
 0x49e   : > { %3612 = vmatmul.mubr.msk.bf16.vlgmr.msra.gmra.mxu1 %vm1241_vm5, %v1264_v16 }
 0x49f   : > { %3622 = vmatpush3.bf16.msra.mxu1 %v1388_v17  ;;  %3623 = vmatprep.mubr.msk.bf16.mxu1 %vm4566_vm0, %v4565_v0 }
 0x4a0   : > { %3633 = vmatprep.subr.bf16.mxu1 %v4565_v0 }
 0x4f9   : > { %v1377_v18 = vpop.xlane.xlu1 %1376 }
 0x4fa   : > { %4044 = vrcp.f32 %v1377_v18  ;;  %v3409_v18 = vld [vmem:[#allocation16] ss:$0 sm:$0xff] }
 0x4fd   : > { %v1380_v19 = vpop.xlane.xlu0 %1379 }
 0x4fe   : > { %4046 = vrcp.f32 %v1380_v19 }
 0x501   : > { %v1499_v22 = vpop.xlane.xlu1 %1498 }
 0x502   : > { %4048 = vrcp.f32 %v1499_v22 }
 0x505   : > { %v1502_v23 = vpop.xlane.xlu0 %1501 }
 0x506   : > { %4050 = vrcp.f32 %v1502_v23 }
 0x507   : > { %v4045_v49 = vpop.eup %4044 }
 0x508   : > { %v1383_v26 = vmul.f32 %v4045_v49, %v4029_v56  ;;  %v4003_v56 = vld [vmem:[#allocation14] sm:$0xff]  }
 0x509   : > { %v1620_v24 = vpop.xlane.xlu1 %1619  ;;  %3654 = vmatpush3.bf16.msra.mxu0 %v4003_v56 }
 0x50a   : > { %4052 = vrcp.f32 %v1620_v24  ;;  %3667 = vmatprep.subr.bf16.mxu0 %v4565_v0 }
 0x50b   : > { %v4047_v25 = vpop.eup %4046 }
 0x50c   : > { %v1384_v27 = vmul.f32 %v4047_v25, %v4031_v62 }
 0x50d   : > { %v1623_v28 = vpop.xlane.xlu0 %1622  ;;  %v1630_v36 = vpop.permute.xlu1 %1629 }
 0x50e   : > { %4054 = vrcp.f32 %v1623_v28  ;;  %v1385_v29 = vpack.c.bf16 %v1384_v27, %v1383_v26 }
 0x50f   : > { %v4049_v30 = vpop.eup %4048 }
 0x510   : > { %3624 = vmatmul.mubr.msk.bf16.vlgmr.msra.gmra.mxu1 %vm1241_vm5, %v1385_v29  ;;  %v1505_v33 = vmul.f32 %v4049_v30, %v4033_v2 }
 0x511   : > { %v1509_v31 = vpop.permute.xlu0 %1508  ;;  %3635 = vmatprep.mubr.msk.bf16.mxu1 %vm4566_vm0, %v4565_v0 }
 0x512   : > { %3634 = vmatpush3.bf16.msra.mxu1 %v1509_v31 }
 0x513   : > { %v4051_v32 = vpop.eup %4050  ;;  %3645 = vmatprep.subr.bf16.mxu1 %v4565_v0 }
 0x514   : > { %v1506_v34 = vmul.f32 %v4051_v32, %v4035_v4 }
 0x516   : > { %v1507_v35 = vpack.c.bf16 %v1506_v34, %v1505_v33 }
 0x517   : > { %v4053_v37 = vpop.eup %4052 }
 0x518   : > { %3636 = vmatmul.mubr.msk.bf16.vlgmr.msra.gmra.mxu1 %vm1241_vm5, %v1507_v35  ;;  %v1626_v39 = vmul.f32 %v4053_v37, %v4037_v6 }
 0x519   : > { %3646 = vmatpush3.bf16.msra.mxu1 %v1630_v36  ;;  %3647 = vmatprep.mubr.msk.bf16.mxu1 %vm4566_vm0, %v4565_v0 }
 0x51a   : > { %3659 = vmatprep.subr.bf16.mxu1 %v4565_v0 }
 0x51b   : > { %v4055_v38 = vpop.eup %4054 }
 0x51c   : > { %v1627_v40 = vmul.f32 %v4055_v38, %v4039_v8 }
 0x51e   : > { %v1628_v41 = vpack.c.bf16 %v1627_v40, %v1626_v39  ;;  %v4004_v39 = vld [vmem:[#allocation20 + $0x8] sm:$0xff]  }
 0x520   : > { %3648 = vmatmul.mubr.msk.bf16.vlgmr.msra.gmra.mxu1 %vm1241_vm5, %v1628_v41 }
 0x521   : > { %3663 = vmatprep.mubr.msk.bf16.mxu1 %vm4566_vm0, %v4565_v0  ;;  %3660 = vmatpush3.bf16.msra.mxu1 %v4004_v39 }
 0x522   : > { %3661 = vmatprep.subr.bf16.mxu1 %v4565_v0 }
 0x55e   : > { %v1303_v42 = vpop.f32.mrf.mxu1 }
 0x560   : > { %v3613_v43 = vpop.f32.mrf.mxu1 }
 0x562   : > { %v1306_v44 = vpop.f32.mrf.mxu1 }
 0x564   : > { %v3614_v45 = vpop.f32.mrf.mxu1 }
 0x5d0   : > { %v1427_v46 = vpop.f32.mrf.mxu1 }
 0x5d2   : > { %v3625_v47 = vpop.f32.mrf.mxu1 }
 0x5d4   : > { %v1430_v48 = vpop.f32.mrf.mxu1 }
 0x5d5   : > { %v3962_v51 = vpack.i.bf16 %v1430_v48, %v1427_v46  ;;  %v3413_v48 = vld [vmem:[#allocation17] ss:$0 sm:$0xff] }
 0x5d6   : > { %v3626_v52 = vpop.f32.mrf.mxu1 }
 0x5d7   : > { %3963 = vrot.lane.b32.xlu1 %v3962_v51, %s5405_s0  ;;  %s5474_s0 = sshll.u32 %s4952_s7, 4 }
 0x5d8   : > { %v1548_v53 = vpop.f32.mrf.mxu1 }
 0x5da   : > { %v3637_v54 = vpop.f32.mrf.mxu1 }
 0x5dc   : > { %v1551_v55 = vpop.f32.mrf.mxu1 }
 0x5dd   : > { %v3967_v57 = vpack.i.bf16 %v1551_v55, %v1548_v53  ;;  %v3414_v53 = vld [vmem:[#allocation19] ss:$0 sm:$0xff] }
 0x5de   : > { %v3638_v58 = vpop.f32.mrf.mxu1 }
 0x5df   : > { %3968 = vrot.lane.b32.xlu0 %v3967_v57, %s5404_s18  ;;  %v4006_v58 = vld [vmem:[%s5466_s20 + $0x18] sm:$0xff]   ;;  %s5467_s18 = sld [smem:[#allocation46_spill]] }
 0x5e0   : > { %v1669_v60 = vpop.f32.mrf.mxu1 }
 0x5e2   : > { %v3649_v61 = vpop.f32.mrf.mxu1 }
 0x5e3   : > { %v4008_v61 = vld [vmem:[%s5466_s20 + $0x8] sm:$0xff]  }
 0x5e4   : > { %v1672_v62 = vpop.f32.mrf.mxu1 }
 0x5e5   : > { %v3972_v63 = vpack.i.bf16 %v1672_v62, %v1669_v60  ;;  %v4007_v60 = vld [vmem:[%s5466_s20 + $0x10] sm:$0xff]   ;;  %v4009_v62 = vld [vmem:[%s5466_s20] sm:$0xff]  }
 0x5e6   : > { %v3650_v1 = vpop.f32.mrf.mxu1 }
 0x5e7   : > { %3973 = vrot.lane.b32.xlu1 %v3972_v63, %s5403_s11  ;;  %v3415_v63 = vld [vmem:[#allocation22] ss:$0 sm:$0xff] }
 0x649   : > { %v3964_v2 = vpop.permute.xlu1 %3963 }
 0x64a   : > { %v3966_v4 = vunpack.i.h.bf16 %v3964_v2  ;;  %v3965_v5 = vunpack.i.l.bf16 %v3964_v2 }
 0x64c   : > { %v1701_v9 = vsel %vm1193_vm4, %v1306_v44, %v3966_v4  ;;  %v1700_v10 = vsel %vm1193_vm4, %v1303_v42, %v3965_v5 }
 0x651   : > { %v3969_v3 = vpop.permute.xlu0 %3968 }
 0x652   : > { %v3971_v6 = vunpack.i.h.bf16 %v3969_v3  ;;  %v3970_v7 = vunpack.i.l.bf16 %v3969_v3 }
 0x654   : > { %v1703_v13 = vsel %vm1241_vm5, %v1701_v9, %v3971_v6  ;;  %v1702_v14 = vsel %vm1241_vm5, %v1700_v10, %v3970_v7 }
 0x659   : > { %v3974_v8 = vpop.permute.xlu1 %3973 }
 0x65a   : > { %v3976_v11 = vunpack.i.h.bf16 %v3974_v8  ;;  %v3975_v12 = vunpack.i.l.bf16 %v3974_v8 }
 0x65c   : > { %v1706_v15 = vsel %vm1704_vm6, %v1703_v13, %v3976_v11  ;;  %v1705_v16 = vsel %vm1704_vm6, %v1702_v14, %v3975_v12 }
 0x65d   : > { %v1707_v17 = vpack.c.bf16 %v1706_v15, %v1705_v16 }
 0x65f   : > { %3656 = vmatmul.mubr.msk.bf16.vlgmr.msra.gmra.mxu0 %vm1012_vm3, %v1707_v17 }
 0x660   : > { %3675 = vmatprep.mubr.msk.bf16.mxu0 %vm4566_vm0, %v4565_v0  ;;  %3668 = vmatpush3.bf16.msra.mxu0 %v4006_v58 }
 0x661   : > { %3669 = vmatprep.subr.bf16.mxu0 %v4565_v0 }
 0x664   : > { %3670 = vmatpush3.bf16.msra.mxu0 %v4007_v60  ;;  %v3425_v60 = vld [vmem:[%s5468_s13] ss:$0 sm:$0xff] }
 0x665   : > { %3671 = vmatprep.subr.bf16.mxu0 %v4565_v0 }
 0x668   : > { %3672 = vmatpush3.bf16.msra.mxu0 %v4008_v61 }
 0x669   : > { %3673 = vmatprep.subr.bf16.mxu0 %v4565_v0 }
 0x66c   : > { %3674 = vmatpush3.bf16.msra.mxu0 %v4009_v62 }
 0x66d   : > { %3695 = vmatprep.subr.bf16.mxu0 %v4565_v0 }
 0x71f   : > { %v1768_v19 = vpop.f32.mrf.mxu0 }
 0x720   : > { %v1769_v22 = vadd.f32 %v3409_v18, %v1768_v19 }
 0x721   : > { %v3657_v23 = vpop.f32.mrf.mxu0 }
 0x722   : > { %v1775_v49 = vadd.f32 %v1769_v22, %v4983_v20 }
 0x723   : > { %v1771_v24 = vpop.f32.mrf.mxu0 }
 0x724   : > { %v1772_v25 = vadd.f32 %v3409_v18, %v1771_v24  ;;  %v1779_v26 = vsel %vm1012_vm3, %v1775_v49, 0.0 }
 0x725   : > { %1780 = vadd.xlane.f32.xlu0 %v1779_v26  ;;  %v3658_v27 = vpop.f32.mrf.mxu0 }
 0x726   : > { %v1776_v28 = vadd.f32 %v1772_v25, %v4985_v21  ;;  %v4005_v21 = vld [vmem:[#allocation20] sm:$0xff]   ;;  %v3419_v27 = vld [vmem:[%s5467_s18] ss:$0 sm:$0xff] }
 0x727   : > { %3662 = vmatpush3.bf16.msra.mxu1 %v4005_v21 }
 0x728   : > { %v1782_v29 = vsel %vm1012_vm3, %v1776_v28, 0.0  ;;  %3679 = vmatprep.subr.bf16.mxu1 %v4565_v0 }
 0x729   : > { %1783 = vadd.xlane.f32.xlu1 %v1782_v29 }
 0x7ae   : > { %v1781_v30 = vpop.xlane.xlu0 %1780 }
 0x7af   : > { %v1786_v31 = vmul.f32 0.03125, %v1781_v30 }
 0x7b1   : > { %v1788_v32 = vsub.f32 %v1775_v49, %v1786_v31 }
 0x7b2   : > { %v1784_v33 = vpop.xlane.xlu1 %1783 }
 0x7b3   : > { %v1787_v34 = vmul.f32 0.03125, %v1784_v33  ;;  %v1790_v35 = vmul.f32 %v1788_v32, %v1788_v32 }
 0x7b5   : > { %v1789_v36 = vsub.f32 %v1776_v28, %v1787_v34  ;;  %v1792_v20 = vsel %vm1012_vm3, %v1790_v35, 0.0 }
 0x7b6   : > { %1793 = vadd.xlane.f32.xlu0 %v1792_v20 }
 0x7b7   : > { %v1791_v37 = vmul.f32 %v1789_v36, %v1789_v36 }
 0x7b9   : > { %v1795_v38 = vsel %vm1012_vm3, %v1791_v37, 0.0 }
 0x7ba   : > { %1796 = vadd.xlane.f32.xlu0 %v1795_v38 }
 0x83f   : > { %v1794_v40 = vpop.xlane.xlu0 %1793 }
 0x840   : > { %v1798_v41 = vmul.f32 0.03125, %v1794_v40 }
 0x842   : > { %v1800_v42 = vadd.f32 1e-05, %v1798_v41 }
 0x843   : > { %v1797_v43 = vpop.xlane.xlu0 %1796 }
 0x844   : > { %4056 = vrsqrt.f32 %v1800_v42  ;;  %v1799_v44 = vmul.f32 0.03125, %v1797_v43 }
 0x846   : > { %v1801_v45 = vadd.f32 1e-05, %v1799_v44 }
 0x848   : > { %4058 = vrsqrt.f32 %v1801_v45 }
 0x851   : > { %v4057_v46 = vpop.eup %4056 }
 0x852   : > { %v1804_v47 = vmul.f32 %v4057_v46, %v1788_v32  ;;  %v4010_v46 = vld [vmem:[%s5464_s22 + $0x18] sm:$0xff]  }
 0x854   : > { %v1812_v52 = vmul.f32 %v3413_v48, %v1804_v47  ;;  %v4011_v47 = vld [vmem:[%s5465_s5 + $0x18] sm:$0xff]  }
 0x855   : > { %v4059_v50 = vpop.eup %4058 }
 0x856   : > { %v1805_v51 = vmul.f32 %v4059_v50, %v1789_v36  ;;  %v1820_v55 = vadd.f32 %v3414_v53, %v1812_v52  ;;  %v4013_v50 = vld [vmem:[%s5465_s5 + $0x10] sm:$0xff]  }
 0x858   : > { %v1813_v54 = vmul.f32 %v3413_v48, %v1805_v51  ;;  %v4012_v48 = vld [vmem:[%s5464_s22 + $0x10] sm:$0xff]  }
 0x85a   : > { %v1821_v56 = vadd.f32 %v3414_v53, %v1813_v54 }
 0x85c   : > { %v1822_v57 = vpack.c.bf16 %v1821_v56, %v1820_v55 }
 0x85e   : > { %3664 = vmatmul.mubr.msk.bf16.vlgmr.msra.gmra.mxu1 %vm1012_vm3, %v1822_v57 }
 0x85f   : > { %3683 = vmatprep.mubr.msk.bf16.mxu1 %vm4566_vm0, %v4565_v0  ;;  %3680 = vmatpush3.bf16.msra.mxu1 %v4010_v46 }
 0x860   : > { %3681 = vmatprep.subr.bf16.mxu1 %v4565_v0 }
 0x863   : > { %3682 = vmatpush3.bf16.msra.mxu1 %v4012_v48 }
 0x864   : > { %3687 = vmatprep.subr.bf16.mxu1 %v4565_v0 }
 0x91e   : > { %v1883_v1 = vpop.f32.mrf.mxu1 }
 0x91f   : > { %v1884_v2 = vadd.f32 %v3415_v63, %v1883_v1  ;;  %v3426_v1 = vld [vmem:[%s5469_s6] ss:$0 sm:$0xff] }
 0x920   : > { %v3665_v3 = vpop.f32.mrf.mxu1 }
 0x921   : > { %v1892_v4 = vmul.f32 0.044715, %v1884_v2  ;;  %v1890_v22 = vmul.f32 0.5, %v1884_v2 }
 0x922   : > { %v1886_v5 = vpop.f32.mrf.mxu1 }
 0x923   : > { %v1894_v6 = vmul.f32 %v1892_v4, %v1884_v2  ;;  %v1887_v7 = vadd.f32 %v3415_v63, %v1886_v5  ;;  %v4014_v5 = vld [vmem:[%s5373_s8 + $0x18] sm:$0xff]  }
 0x924   : > { %v3666_v8 = vpop.f32.mrf.mxu1 }
 0x925   : > { %v1896_v9 = vmul.f32 %v1894_v6, %v1884_v2  ;;  %v1893_v10 = vmul.f32 0.044715, %v1887_v7  ;;  %v1891_v23 = vmul.f32 0.5, %v1887_v7 }
 0x927   : > { %v1898_v11 = vadd.f32 %v1896_v9, %v1884_v2  ;;  %v1895_v12 = vmul.f32 %v1893_v10, %v1887_v7  ;;  %v3431_v10 = vld [vmem:[#allocation10 + $0x1] ss:$0 sm:$0xff] }
 0x929   : > { %v1900_v13 = vmul.f32 0.7978846, %v1898_v11  ;;  %v1897_v14 = vmul.f32 %v1895_v12, %v1887_v7  ;;  %v3447_v11 = vld [vmem:[#allocation13 + $0x1] ss:$0 sm:$0xff] }
 0x92b   : > { %4060 = vtanh.f32 %v1900_v13  ;;  %v1899_v15 = vadd.f32 %v1897_v14, %v1887_v7  ;;  %v4015_v7 = vld [vmem:[%s5373_s8 + $0x10] sm:$0xff]  }
 0x92d   : > { %v1901_v16 = vmul.f32 0.7978846, %v1899_v15 }
 0x92f   : > { %4062 = vtanh.f32 %v1901_v16 }
 0x938   : > { %v4061_v17 = vpop.eup %4060 }
 0x939   : > { %v1904_v18 = vadd.f32 1.0, %v4061_v17 }
 0x93b   : > { %v1906_v24 = vmul.f32 %v1904_v18, %v1890_v22 }
 0x93c   : > { %v4063_v19 = vpop.eup %4062 }
 0x93d   : > { %v1905_v49 = vadd.f32 1.0, %v4063_v19 }
 0x93f   : > { %v1907_v25 = vmul.f32 %v1905_v49, %v1891_v23 }
 0x941   : > { %v1908_v26 = vpack.c.bf16 %v1907_v25, %v1906_v24 }
 0x943   : > { %3676 = vmatmul.mubr.msk.bf16.vlgmr.msra.gmra.mxu0 %vm1948_vm7, %v1908_v26  ;;  %v3439_v26 = vld [vmem:[#allocation11 + $0x1] ss:$0 sm:$0xff] }
 0x944   : > { %3699 = vmatprep.mubr.msk.bf16.mxu0 %vm4566_vm0, %v4565_v0  ;;  %3696 = vmatpush3.bf16.msra.mxu0 %v4011_v47 }
 0x945   : > { %3697 = vmatprep.subr.bf16.mxu0 %v4565_v0 }
 0x948   : > { %3698 = vmatpush3.bf16.msra.mxu0 %v4013_v50 }
 0x949   : > { %3709 = vmatprep.subr.bf16.mxu0 %v4565_v0 }
 0xa03   : > { %v1986_v28 = vpop.f32.mrf.mxu0 }
 0xa04   : > { %v1987_v29 = vadd.f32 %v3419_v27, %v1986_v28 }
 0xa05   : > { %v3677_v30 = vpop.f32.mrf.mxu0 }
 0xa06   : > { %v1993_v31 = vadd.f32 %v1987_v29, %v1820_v55 }
 0xa07   : > { %v1989_v32 = vpop.f32.mrf.mxu0 }
 0xa08   : > { %v1990_v33 = vadd.f32 %v3419_v27, %v1989_v32  ;;  %v1997_v34 = vsel %vm1012_vm3, %v1993_v31, 0.0 }
 0xa09   : > { %1998 = vadd.xlane.f32.xlu1 %v1997_v34  ;;  %v3678_v35 = vpop.f32.mrf.mxu0 }
 0xa0a   : > { %v1994_v36 = vadd.f32 %v1990_v33, %v1821_v56 }
 0xa0c   : > { %v2000_v20 = vsel %vm1012_vm3, %v1994_v36, 0.0 }
 0xa0d   : > { %2001 = vadd.xlane.f32.xlu0 %v2000_v20 }
 0xa92   : > { %v1999_v37 = vpop.xlane.xlu1 %1998 }
 0xa93   : > { %v2003_v38 = vmul.f32 0.03125, %v1999_v37 }
 0xa95   : > { %v2005_v39 = vsub.f32 %v1993_v31, %v2003_v38 }
 0xa96   : > { %v2002_v21 = vpop.xlane.xlu0 %2001 }
 0xa97   : > { %v2004_v40 = vmul.f32 0.03125, %v2002_v21  ;;  %v2007_v41 = vmul.f32 %v2005_v39, %v2005_v39 }
 0xa99   : > { %v2006_v42 = vsub.f32 %v1994_v36, %v2004_v40  ;;  %v2009_v43 = vsel %vm1012_vm3, %v2007_v41, 0.0 }
 0xa9a   : > { %2010 = vadd.xlane.f32.xlu1 %v2009_v43 }
 0xa9b   : > { %v2008_v44 = vmul.f32 %v2006_v42, %v2006_v42 }
 0xa9d   : > { %v2012_v45 = vsel %vm1012_vm3, %v2008_v44, 0.0 }
 0xa9e   : > { %2013 = vadd.xlane.f32.xlu0 %v2012_v45 }
 0xb23   : > { %v2011_v51 = vpop.xlane.xlu1 %2010 }
 0xb24   : > { %v2015_v52 = vmul.f32 0.03125, %v2011_v51 }
 0xb26   : > { %v2017_v53 = vadd.f32 1e-05, %v2015_v52 }
 0xb27   : > { %v2014_v54 = vpop.xlane.xlu0 %2013 }
 0xb28   : > { %4064 = vrsqrt.f32 %v2017_v53  ;;  %v2016_v55 = vmul.f32 0.03125, %v2014_v54 }
 0xb2a   : > { %v2018_v56 = vadd.f32 1e-05, %v2016_v55 }
 0xb2c   : > { %4066 = vrsqrt.f32 %v2018_v56 }
 0xb35   : > { %v4065_v57 = vpop.eup %4064 }
 0xb36   : > { %v2021_v58 = vmul.f32 %v4065_v57, %v2005_v39 }
 0xb38   : > { %v2029_v63 = vmul.f32 %v3425_v60, %v2021_v58 }
 0xb39   : > { %v4067_v61 = vpop.eup %4066 }
 0xb3a   : > { %v2022_v62 = vmul.f32 %v4067_v61, %v2006_v42  ;;  %v5158_v3 = vadd.f32 %v3426_v1, %v2029_v63 }
 0xb3c   : > { %v2030_v2 = vmul.f32 %v3425_v60, %v2022_v62 }
 0xb3e   : > { %v5160_v4 = vadd.f32 %v3426_v1, %v2030_v2 }
 0xb40   : > { %v2039_v6 = vpack.c.bf16 %v5160_v4, %v5158_v3 }
 0xb42   : > { %3684 = vmatmul.mubr.msk.bf16.vlgmr.msra.gmra.mxu1 %vm1012_vm3, %v2039_v6  ;;  %3700 = vmatmul.mubr.msk.bf16.vlgmr.msra.gmra.mxu0 %vm1012_vm3, %v2039_v6 }
 0xb43   : > { %3688 = vmatpush3.bf16.msra.mxu1 %v4014_v5  ;;  %3691 = vmatprep.mubr.msk.bf16.mxu1 %vm4566_vm0, %v4565_v0 }
 0xb44   : > { %3689 = vmatprep.subr.bf16.mxu1 %v4565_v0  ;;  %3711 = vmatprep.mubr.msk.bf16.mxu0 %vm4566_vm0, %v4565_v0 }
 0xb47   : > { %3690 = vmatpush3.bf16.msra.mxu1 %v4015_v7 }
 0xb48   : > { %3703 = vmatprep.subr.bf16.mxu1 %v4565_v0 }
 0xb4a   : > { %3692 = vmatmul.mubr.msk.bf16.vlgmr.msra.gmra.mxu1 %vm1012_vm3, %v2039_v6 }
 0xb4b   : > { %3705 = vmatprep.mubr.msk.bf16.mxu1 %vm4566_vm0, %v4565_v0 }
 0xc02   : > { %v2102_v8 = vpop.f32.mrf.mxu1  ;;  %v2234_v9 = vpop.f32.mrf.mxu0 }
 0xc03   : > { %v2103_v16 = vadd.f32 %v3431_v10, %v2102_v8  ;;  %v2235_v17 = vadd.f32 %v3447_v11, %v2234_v9 }
 0xc04   : > { %v3685_v12 = vpop.f32.mrf.mxu1  ;;  %v3701_v13 = vpop.f32.mrf.mxu0 }
 0xc06   : > { %v2105_v14 = vpop.f32.mrf.mxu1  ;;  %v2237_v15 = vpop.f32.mrf.mxu0 }
 0xc07   : > { %v2106_v18 = vadd.f32 %v3431_v10, %v2105_v14  ;;  %v2238_v19 = vadd.f32 %v3447_v11, %v2237_v15 }
 0xc08   : > { %v3686_v22 = vpop.f32.mrf.mxu1  ;;  %v3702_v23 = vpop.f32.mrf.mxu0 }
 0xc09   : > { %v2241_v49 = vpack.c.bf16 %v2106_v18, %v2103_v16  ;;  %v5181_v24 = vpack.c.bf16 %v2238_v19, %v2235_v17 }
 0xc0a   : > { %v2168_v25 = vpop.f32.mrf.mxu1 }
 0xc0b   : > { %3710 = vmatpush3.bf16.msra.mxu0 %v5181_v24  ;;  %2359 = vrot.lane.b32.xlu0 %v2241_v49, %s4568_s21  ;;  %v2169_v29 = vadd.f32 %v3439_v26, %v2168_v25 }
 0xc0c   : > { %v3693_v27 = vpop.f32.mrf.mxu1  ;;  %3721 = vmatprep.subr.bf16.mxu0 %v4565_v0 }
 0xc0e   : > { %v2171_v28 = vpop.f32.mrf.mxu1 }
 0xc0f   : > { %v2172_v30 = vadd.f32 %v3439_v26, %v2171_v28 }
 0xc10   : > { %v3694_v31 = vpop.f32.mrf.mxu1 }
 0xc11   : > { %v2242_v32 = vpack.c.bf16 %v2172_v30, %v2169_v29 }
 0xc13   : > { %2605 = vrot.lane.b32.xlu0 %v2242_v32, %s4569_s27  ;;  %2362 = vrot.lane.b32.xlu1 %v2242_v32, %s4568_s21  ;;  %v2247_v33 = vsel %vm1193_vm4, %v2242_v32, 0 }
 0xc14   : > { %3704 = vmatpush3.bf16.xpose.msra.mxu1 %v2247_v33 }
 0xc15   : > { %3715 = vmatprep.subr.bf16.mxu1 %v4565_v0 }
 0xc17   : > { %2484 = vrot.lane.b32.xlu1 %v2242_v32, %s5470_s1 }
 0xc1b   : > { %2482 = vrot.lane.b32.xlu1 %v2241_v49, %s5470_s1  ;;  %3706 = vmatmul.mubr.msk.bf16.vlgmr.msra.gmra.mxu1 %vm1193_vm4, %v2241_v49 }
 0xc1c   : > { %3717 = vmatprep.mubr.msk.bf16.mxu1 %vm4566_vm0, %v4565_v0 }
 0xc1f   : > { %2603 = vrot.lane.b32.xlu1 %v2241_v49, %s4569_s27 }
 0xc7d   : > { %v2360_v20 = vpop.permute.xlu0 %2359 }
 0xc85   : > { %v2363_v34 = vpop.permute.xlu1 %2362  ;;  %v2606_v38 = vpop.permute.xlu0 %2605 }
 0xc86   : > { %v2368_v35 = vsel %vm1193_vm4, %v2363_v34, 0  ;;  %v2611_v21 = vsel %vm1193_vm4, %v2606_v38, 0 }
 0xc87   : > { %3716 = vmatpush3.bf16.xpose.msra.mxu1 %v2368_v35 }
 0xc88   : > { %3727 = vmatprep.subr.bf16.mxu1 %v4565_v0 }
 0xc89   : > { %v2485_v36 = vpop.permute.xlu1 %2484 }
 0xc8a   : > { %v2490_v37 = vsel %vm1193_vm4, %v2485_v36, 0 }
 0xc8d   : > { %v2483_v39 = vpop.permute.xlu1 %2482 }
 0xc8e   : > { %3718 = vmatmul.mubr.msk.bf16.vlgmr.msra.gmra.mxu1 %vm1193_vm4, %v2360_v20 }
 0xc8f   : > { %3728 = vmatpush3.bf16.xpose.msra.mxu1 %v2490_v37  ;;  %3729 = vmatprep.mubr.msk.bf16.mxu1 %vm4566_vm0, %v4565_v0 }
 0xc90   : > { %3739 = vmatprep.subr.bf16.mxu1 %v4565_v0 }
 0xc91   : > { %v2604_v40 = vpop.permute.xlu1 %2603 }
 0xc96   : > { %3730 = vmatmul.mubr.msk.bf16.vlgmr.msra.gmra.mxu1 %vm1193_vm4, %v2483_v39 }
 0xc97   : > { %3740 = vmatpush3.bf16.xpose.msra.mxu1 %v2611_v21  ;;  %3741 = vmatprep.mubr.msk.bf16.mxu1 %vm4566_vm0, %v4565_v0 }
 0xc98   : > { %3751 = vmatprep.subr.bf16.mxu1 %v4565_v0 }
 0xc9e   : > { %3742 = vmatmul.mubr.msk.bf16.vlgmr.msra.gmra.mxu1 %vm1193_vm4, %v2604_v40 }
 0xc9f   : > { %3755 = vmatprep.mubr.msk.bf16.mxu1 %vm4566_vm0, %v4565_v0 }
 0xcdb   : > { %v2283_v41 = vpop.f32.mrf.mxu1 }
 0xcdc   : > { %v2284_v42 = vadd.f32 %v5038_v59, %v2283_v41 }
 0xcdd   : > { %v3707_v43 = vpop.f32.mrf.mxu1 }
 0xcde   : > { %v2290_v44 = vsel %vm1241_vm5, %v2284_v42, -inf }
 0xcdf   : > { %2291 = vmax.xlane.f32.xlu0 %v2290_v44  ;;  %v2286_v45 = vpop.f32.mrf.mxu1 }
 0xce0   : > { %v2287_v46 = vadd.f32 %v5038_v59, %v2286_v45 }
 0xce1   : > { %v3708_v47 = vpop.f32.mrf.mxu1 }
 0xce2   : > { %v2293_v48 = vsel %vm1241_vm5, %v2287_v46, -inf }
 0xce3   : > { %2294 = vmax.xlane.f32.xlu1 %v2293_v48 }
 0xd4e   : > { %v2404_v50 = vpop.f32.mrf.mxu1 }
 0xd4f   : > { %v2405_v51 = vadd.f32 %v5038_v59, %v2404_v50 }
 0xd50   : > { %v3719_v52 = vpop.f32.mrf.mxu1 }
 0xd51   : > { %v2411_v53 = vsel %vm1241_vm5, %v2405_v51, -inf }
 0xd52   : > { %2412 = vmax.xlane.f32.xlu0 %v2411_v53  ;;  %v2407_v54 = vpop.f32.mrf.mxu1 }
 0xd53   : > { %v2408_v55 = vadd.f32 %v5038_v59, %v2407_v54 }
 0xd54   : > { %v3720_v56 = vpop.f32.mrf.mxu1 }
 0xd55   : > { %v2414_v57 = vsel %vm1241_vm5, %v2408_v55, -inf }
 0xd56   : > { %2415 = vmax.xlane.f32.xlu0 %v2414_v57  ;;  %v2526_v58 = vpop.f32.mrf.mxu1 }
 0xd57   : > { %v2527_v60 = vadd.f32 %v5038_v59, %v2526_v58 }
 0xd58   : > { %v3731_v61 = vpop.f32.mrf.mxu1 }
 0xd59   : > { %v2533_v62 = vsel %vm1241_vm5, %v2527_v60, -inf }
 0xd5a   : > { %2534 = vmax.xlane.f32.xlu1 %v2533_v62  ;;  %v2529_v63 = vpop.f32.mrf.mxu1 }
 0xd5b   : > { %v2530_v1 = vadd.f32 %v5038_v59, %v2529_v63 }
 0xd5c   : > { %v3732_v2 = vpop.f32.mrf.mxu1 }
 0xd5d   : > { %v2536_v5 = vsel %vm1241_vm5, %v2530_v1, -inf }
 0xd5e   : > { %2537 = vmax.xlane.f32.xlu0 %v2536_v5  ;;  %v2647_v6 = vpop.f32.mrf.mxu1 }
 0xd5f   : > { %v2648_v7 = vadd.f32 %v5038_v59, %v2647_v6 }
 0xd60   : > { %v3743_v8 = vpop.f32.mrf.mxu1 }
 0xd61   : > { %v2654_v9 = vsel %vm1241_vm5, %v2648_v7, -inf }
 0xd62   : > { %2655 = vmax.xlane.f32.xlu1 %v2654_v9  ;;  %v2650_v10 = vpop.f32.mrf.mxu1 }
 0xd63   : > { %v2651_v11 = vadd.f32 %v5038_v59, %v2650_v10 }
 0xd64   : > { %v3744_v12 = vpop.f32.mrf.mxu1 }
 0xd65   : > { %v2657_v13 = vsel %vm1241_vm5, %v2651_v11, -inf }
 0xd66   : > { %2658 = vmax.xlane.f32.xlu0 %v2657_v13 }
 0xd68   : > { %v2292_v14 = vpop.xlane.xlu0 %2291 }
 0xd69   : > { %v2296_v15 = vsub.f32 %v2284_v42, %v2292_v14 }
 0xd6b   : > { %v2298_v16 = vmul.f32 1.442695, %v2296_v15 }
 0xd6c   : > { %v2295_v17 = vpop.xlane.xlu1 %2294 }
 0xd6d   : > { %4068 = vpow2.f32 %v2298_v16  ;;  %v2297_v18 = vsub.f32 %v2287_v46, %v2295_v17 }
 0xd6f   : > { %v2300_v19 = vmul.f32 1.442695, %v2297_v18 }
 0xd71   : > { %4070 = vpow2.f32 %v2300_v19 }
 0xd7a   : > { %v4069_v22 = vpop.eup %4068 }
 0xd7b   : > { %v2302_v23 = vsel %vm1241_vm5, %v4069_v22, 0.0 }
 0xd7c   : > { %2303 = vadd.xlane.f32.xlu1 %v2302_v23 }
 0xd7e   : > { %v4071_v49 = vpop.eup %4070 }
 0xd7f   : > { %v2305_v25 = vsel %vm1241_vm5, %v4071_v49, 0.0 }
 0xd80   : > { %2306 = vadd.xlane.f32.xlu0 %v2305_v25 }
 0xd8d   : > { %2435 = vrot.lane.b32.xlu1 %v5181_v24, %s4568_s21  ;;  %s5471_s21 = smov 8  }
 0xddb   : > { %v2413_v59 = vpop.xlane.xlu0 %2412 }
 0xddc   : > { %v2417_v26 = vsub.f32 %v2405_v51, %v2413_v59 }
 0xdde   : > { %v2419_v27 = vmul.f32 1.442695, %v2417_v26 }
 0xddf   : > { %v2416_v28 = vpop.xlane.xlu0 %2415 }
 0xde0   : > { %4072 = vpow2.f32 %v2419_v27  ;;  %v2418_v29 = vsub.f32 %v2408_v55, %v2416_v28 }
 0xde2   : > { %v2421_v30 = vmul.f32 1.442695, %v2418_v29 }
 0xde3   : > { %v2535_v31 = vpop.xlane.xlu1 %2534 }
 0xde4   : > { %4074 = vpow2.f32 %v2421_v30  ;;  %v2539_v32 = vsub.f32 %v2527_v60, %v2535_v31 }
 0xde6   : > { %v2541_v33 = vmul.f32 1.442695, %v2539_v32  ;;  %v4016_v32 = vld [vmem:[#allocation14 + $0x18] sm:$0xff]  }
 0xde7   : > { %v2538_v34 = vpop.xlane.xlu0 %2537  ;;  %3752 = vmatpush3.bf16.msra.mxu1 %v4016_v32 }
 0xde8   : > { %4076 = vpow2.f32 %v2541_v33  ;;  %v2540_v35 = vsub.f32 %v2530_v1, %v2538_v34  ;;  %3753 = vmatprep.subr.bf16.mxu1 %v4565_v0 }
 0xdea   : > { %v2543_v36 = vmul.f32 1.442695, %v2540_v35 }
 0xdeb   : > { %v2656_v20 = vpop.xlane.xlu1 %2655 }
 0xdec   : > { %4078 = vpow2.f32 %v2543_v36  ;;  %v2660_v37 = vsub.f32 %v2648_v7, %v2656_v20 }
 0xded   : > { %v4073_v38 = vpop.eup %4072 }
 0xdee   : > { %v2662_v39 = vmul.f32 1.442695, %v2660_v37  ;;  %v2423_v21 = vsel %vm1241_vm5, %v4073_v38, 0.0  ;;  %v4017_v37 = vld [vmem:[#allocation14 + $0x10] sm:$0xff]  }
 0xdef   : > { %2424 = vadd.xlane.f32.xlu1 %v2423_v21  ;;  %v2659_v40 = vpop.xlane.xlu0 %2658  ;;  %3754 = vmatpush3.bf16.msra.mxu1 %v4017_v37 }
 0xdf0   : > { %4080 = vpow2.f32 %v2662_v39  ;;  %v2661_v41 = vsub.f32 %v2651_v11, %v2659_v40  ;;  %3767 = vmatprep.subr.bf16.mxu1 %v4565_v0 }
 0xdf1   : > { %v4075_v42 = vpop.eup %4074 }
 0xdf2   : > { %v2664_v43 = vmul.f32 1.442695, %v2661_v41  ;;  %v2426_v44 = vsel %vm1241_vm5, %v4075_v42, 0.0 }
 0xdf3   : > { %2427 = vadd.xlane.f32.xlu0 %v2426_v44 }
 0xdf4   : > { %4082 = vpow2.f32 %v2664_v43 }
 0xdf5   : > { %v4077_v45 = vpop.eup %4076 }
 0xdf6   : > { %v2545_v46 = vsel %vm1241_vm5, %v4077_v45, 0.0 }
 0xdf7   : > { %2546 = vadd.xlane.f32.xlu1 %v2545_v46 }
 0xdf9   : > { %v4079_v47 = vpop.eup %4078 }
 0xdfa   : > { %v2548_v48 = vsel %vm1241_vm5, %v4079_v47, 0.0 }
 0xdfb   : > { %2549 = vadd.xlane.f32.xlu0 %v2548_v48 }
 0xdfd   : > { %v4081_v50 = vpop.eup %4080 }
 0xdfe   : > { %v2666_v51 = vsel %vm1241_vm5, %v4081_v50, 0.0 }
 0xdff   : > { %2667 = vadd.xlane.f32.xlu1 %v2666_v51 }
 0xe01   : > { %v4083_v52 = vpop.eup %4082 }
 0xe02   : > { %v2669_v53 = vsel %vm1241_vm5, %v4083_v52, 0.0 }
 0xe03   : > { %2670 = vadd.xlane.f32.xlu0 %v2669_v53 }
 0xe05   : > { %v2304_v54 = vpop.xlane.xlu1 %2303 }
 0xe06   : > { %4084 = vrcp.f32 %v2304_v54 }
 0xe09   : > { %v2307_v55 = vpop.xlane.xlu0 %2306  ;;  %v2436_v62 = vpop.permute.xlu1 %2435 }
 0xe0a   : > { %4086 = vrcp.f32 %v2307_v55 }
 0xe10   : > { %2677 = vrot.lane.b32.xlu1 %v5181_v24, %s4569_s27  ;;  %s5472_s27 = smov 16  }
 0xe13   : > { %v4085_v56 = vpop.eup %4084 }
 0xe14   : > { %v2310_v58 = vmul.f32 %v4085_v56, %v4069_v22 }
 0xe17   : > { %v4087_v57 = vpop.eup %4086 }
 0xe18   : > { %v2311_v60 = vmul.f32 %v4087_v57, %v4071_v49 }
 0xe19   : > { %2556 = vrot.lane.b32.xlu0 %v5181_v24, %s5470_s1  ;;  %s5475_s1 = sld [smem:[#allocation34_spill]] }
 0xe1a   : > { %v2312_v61 = vpack.c.bf16 %v2311_v60, %v2310_v58 }
 0xe1c   : > { %3712 = vmatmul.mubr.msk.bf16.vlgmr.msra.gmra.mxu0 %vm1241_vm5, %v2312_v61 }
 0xe1d   : > { %3722 = vmatpush3.bf16.msra.mxu0 %v2436_v62  ;;  %3723 = vmatprep.mubr.msk.bf16.mxu0 %vm4566_vm0, %v4565_v0  ;;  %v3459_v62 = vld [vmem:[#allocation16 + $0x1] ss:$0 sm:$0xff] }
 0xe1e   : > { %3733 = vmatprep.subr.bf16.mxu0 %v4565_v0 }
 0xe78   : > { %v2425_v63 = vpop.xlane.xlu1 %2424 }
 0xe79   : > { %4088 = vrcp.f32 %v2425_v63 }
 0xe7c   : > { %v2428_v1 = vpop.xlane.xlu0 %2427 }
 0xe7d   : > { %4090 = vrcp.f32 %v2428_v1 }
 0xe80   : > { %v2547_v2 = vpop.xlane.xlu1 %2546 }
 0xe81   : > { %4092 = vrcp.f32 %v2547_v2 }
 0xe84   : > { %v2550_v5 = vpop.xlane.xlu0 %2549 }
 0xe85   : > { %4094 = vrcp.f32 %v2550_v5 }
 0xe86   : > { %v4089_v6 = vpop.eup %4088 }
 0xe87   : > { %v2431_v8 = vmul.f32 %v4089_v6, %v4073_v38 }
 0xe88   : > { %v2668_v24 = vpop.xlane.xlu1 %2667 }
 0xe89   : > { %4096 = vrcp.f32 %v2668_v24 }
 0xe8a   : > { %v4091_v7 = vpop.eup %4090 }
 0xe8b   : > { %v2432_v9 = vmul.f32 %v4091_v7, %v4075_v42 }
 0xe8c   : > { %v2671_v10 = vpop.xlane.xlu0 %2670  ;;  %v2678_v18 = vpop.permute.xlu1 %2677 }
 0xe8d   : > { %4098 = vrcp.f32 %v2671_v10  ;;  %v2433_v11 = vpack.c.bf16 %v2432_v9, %v2431_v8 }
 0xe8e   : > { %v4093_v12 = vpop.eup %4092 }
 0xe8f   : > { %3724 = vmatmul.mubr.msk.bf16.vlgmr.msra.gmra.mxu0 %vm1241_vm5, %v2433_v11  ;;  %v2553_v15 = vmul.f32 %v4093_v12, %v4077_v45 }
 0xe90   : > { %v2557_v13 = vpop.permute.xlu0 %2556  ;;  %3735 = vmatprep.mubr.msk.bf16.mxu0 %vm4566_vm0, %v4565_v0 }
 0xe91   : > { %3734 = vmatpush3.bf16.msra.mxu0 %v2557_v13 }
 0xe92   : > { %v4095_v14 = vpop.eup %4094  ;;  %3745 = vmatprep.subr.bf16.mxu0 %v4565_v0 }
 0xe93   : > { %v2554_v16 = vmul.f32 %v4095_v14, %v4079_v47 }
 0xe95   : > { %v2555_v17 = vpack.c.bf16 %v2554_v16, %v2553_v15 }
 0xe96   : > { %v4097_v19 = vpop.eup %4096 }
 0xe97   : > { %3736 = vmatmul.mubr.msk.bf16.vlgmr.msra.gmra.mxu0 %vm1241_vm5, %v2555_v17  ;;  %v2674_v23 = vmul.f32 %v4097_v19, %v4081_v50 }
 0xe98   : > { %3746 = vmatpush3.bf16.msra.mxu0 %v2678_v18  ;;  %3747 = vmatprep.mubr.msk.bf16.mxu0 %vm4566_vm0, %v4565_v0 }
 0xe99   : > { %3759 = vmatprep.subr.bf16.mxu0 %v4565_v0 }
 0xe9a   : > { %v4099_v22 = vpop.eup %4098 }
 0xe9b   : > { %v2675_v49 = vmul.f32 %v4099_v22, %v4083_v52  ;;  %v4018_v22 = vld [vmem:[#allocation20 + $0x18] sm:$0xff]  }
 0xe9d   : > { %v2676_v25 = vpack.c.bf16 %v2675_v49, %v2674_v23 }
 0xe9f   : > { %3748 = vmatmul.mubr.msk.bf16.vlgmr.msra.gmra.mxu0 %vm1241_vm5, %v2676_v25 }
 0xea0   : > { %3763 = vmatprep.mubr.msk.bf16.mxu0 %vm4566_vm0, %v4565_v0  ;;  %3760 = vmatpush3.bf16.msra.mxu0 %v4018_v22 }
 0xea1   : > { %3761 = vmatprep.subr.bf16.mxu0 %v4565_v0 }
 0xedc   : > { %v2351_v59 = vpop.f32.mrf.mxu0 }
 0xede   : > { %v3713_v26 = vpop.f32.mrf.mxu0 }
 0xee0   : > { %v2354_v27 = vpop.f32.mrf.mxu0 }
 0xee2   : > { %v3714_v28 = vpop.f32.mrf.mxu0 }
 0xf4f   : > { %v2475_v29 = vpop.f32.mrf.mxu0 }
 0xf51   : > { %v3725_v30 = vpop.f32.mrf.mxu0 }
 0xf52   : > { %v3463_v30 = vld [vmem:[#allocation17 + $0x1] ss:$0 sm:$0xff] }
 0xf53   : > { %v2478_v31 = vpop.f32.mrf.mxu0 }
 0xf54   : > { %v3977_v33 = vpack.i.bf16 %v2478_v31, %v2475_v29 }
 0xf55   : > { %v3726_v34 = vpop.f32.mrf.mxu0 }
 0xf56   : > { %3978 = vrot.lane.b32.xlu1 %v3977_v33, %s5471_s21  ;;  %v3464_v34 = vld [vmem:[#allocation19 + $0x1] ss:$0 sm:$0xff] }
 0xf57   : > { %v2596_v35 = vpop.f32.mrf.mxu0 }
 0xf59   : > { %v3737_v36 = vpop.f32.mrf.mxu0 }
 0xf5b   : > { %v2599_v20 = vpop.f32.mrf.mxu0 }
 0xf5c   : > { %v3982_v38 = vpack.i.bf16 %v2599_v20, %v2596_v35 }
 0xf5d   : > { %v3738_v39 = vpop.f32.mrf.mxu0 }
 0xf5e   : > { %3983 = vrot.lane.b32.xlu0 %v3982_v38, %s5472_s27  ;;  %v4020_v38 = vld [vmem:[%s5466_s20 + $0x38] sm:$0xff]   ;;  %v4021_v39 = vld [vmem:[%s5466_s20 + $0x30] sm:$0xff]   ;;  %s907_s27 = scalar_lea.vmem %s5475_s1, %s5474_s0  ;;  %s3379_s0 = sshll.u32 %s4915_s9, 4 }
 0xf5f   : > { %v2717_v21 = vpop.f32.mrf.mxu0  ;;  %s897_s24 = scalar_lea.vmem [#allocation23], %s3379_s0  ;;  %s3495_s1 = sshll.u32 %s4712_s23, 8 }
 0xf60   : > { %s3142_s11 = sshll.u32 %s897_s24, 4  ;;  %s5320_s7 = scalar_lea.hbm %s5476_s4, %s3495_s1  ;;  %s5315_s11 = int_to_ptr.vmem [resolvable:$true] %s3142_s11 }
 0xf61   : > { %v3749_v40 = vpop.f32.mrf.mxu0  ;;  %s4456_s0 = scalar_lea.vmem %s5315_s11, 256  ;;  %s4574_s23 = smov [#allocation23]  }
 0xf62   : > { %v4023_v40 = vld [vmem:[%s5466_s20 + $0x20] sm:$0xff]   ;;  %p4457_p7 = scmp.ne.s32.totalorder %s5315_s11, %s4456_s0  ;;  %s4460_s5 = sshll.u32 %s4574_s23, 4  ;;  %s4461_s5 = int_to_ptr.vmem [resolvable:$false] %s4460_s5 }
 0xf63   : > { %v2720_v41 = vpop.f32.mrf.mxu0  ;;  %p4463_p3 = scmp.lt.s32.totalorder %s5315_s11, %s4461_s5 }
 0xf64   : > { %v3987_v42 = vpack.i.bf16 %v2720_v41, %v2717_v21  ;;  %v4022_v21 = vld [vmem:[%s5466_s20 + $0x28] sm:$0xff]   ;;  %v3465_v41 = vld [vmem:[#allocation22 + $0x1] ss:$0 sm:$0xff]  ;;  %p4458_p5 = pnand %p4457_p7, %p5477_p6 }
 0xf65   : > { %v3750_v43 = vpop.f32.mrf.mxu0 }
 0xf66   : > { %3988 = vrot.lane.b32.xlu1 %v3987_v42, %s5473_s10  ;;  %p4459_p1 = pneg %p4458_p5 }
 0xfc8   : > { %v3979_v44 = vpop.permute.xlu1 %3978 }
 0xfc9   : > { %v3981_v46 = vunpack.i.h.bf16 %v3979_v44  ;;  %v3980_v47 = vunpack.i.l.bf16 %v3979_v44 }
 0xfcb   : > { %v2749_v52 = vsel %vm1193_vm4, %v2354_v27, %v3981_v46  ;;  %v2748_v53 = vsel %vm1193_vm4, %v2351_v59, %v3980_v47 }
 0xfd0   : > { %v3984_v45 = vpop.permute.xlu0 %3983 }
 0xfd1   : > { %v3986_v48 = vunpack.i.h.bf16 %v3984_v45  ;;  %v3985_v50 = vunpack.i.l.bf16 %v3984_v45 }
 0xfd3   : > { %v2751_v56 = vsel %vm1241_vm5, %v2749_v52, %v3986_v48  ;;  %v2750_v57 = vsel %vm1241_vm5, %v2748_v53, %v3985_v50 }
 0xfd8   : > { %v3989_v51 = vpop.permute.xlu1 %3988 }
 0xfd9   : > { %v3991_v54 = vunpack.i.h.bf16 %v3989_v51  ;;  %v3990_v55 = vunpack.i.l.bf16 %v3989_v51 }
 0xfdb   : > { %v2753_v58 = vsel %vm1704_vm6, %v2751_v56, %v3991_v54  ;;  %v2752_v60 = vsel %vm1704_vm6, %v2750_v57, %v3990_v55 }
 0xfdc   : > { %v2754_v61 = vpack.c.bf16 %v2753_v58, %v2752_v60 }
 0xfde   : > { %3756 = vmatmul.mubr.msk.bf16.vlgmr.msra.gmra.mxu1 %vm1012_vm3, %v2754_v61 }
 0xfdf   : > { %3775 = vmatprep.mubr.msk.bf16.mxu1 %vm4566_vm0, %v4565_v0  ;;  %3768 = vmatpush3.bf16.msra.mxu1 %v4020_v38 }
 0xfe0   : > { %3769 = vmatprep.subr.bf16.mxu1 %v4565_v0 }
 0xfe3   : > { %3770 = vmatpush3.bf16.msra.mxu1 %v4021_v39 }
 0xfe4   : > { %3771 = vmatprep.subr.bf16.mxu1 %v4565_v0 }
 0xfe7   : > { %3772 = vmatpush3.bf16.msra.mxu1 %v4022_v21 }
 0xfe8   : > { %3773 = vmatprep.subr.bf16.mxu1 %v4565_v0 }
 0xfeb   : > { %3774 = vmatpush3.bf16.msra.mxu1 %v4023_v40 }
0x109e   : > { %v2817_v63 = vpop.f32.mrf.mxu1 }
0x109f   : > { %v2818_v1 = vadd.f32 %v3459_v62, %v2817_v63 }
0x10a0   : > { %v3757_v2 = vpop.f32.mrf.mxu1 }
0x10a1   : > { %v2824_v5 = vadd.f32 %v2818_v1, %v5158_v3 }
0x10a2   : > { %v2820_v6 = vpop.f32.mrf.mxu1 }
0x10a3   : > { %v2821_v24 = vadd.f32 %v3459_v62, %v2820_v6  ;;  %v2830_v7 = vsel %vm1012_vm3, %v2824_v5, 0.0 }
0x10a4   : > { %2831 = vadd.xlane.f32.xlu0 %v2830_v7  ;;  %v3758_v8 = vpop.f32.mrf.mxu1 }
0x10a5   : > { %v2825_v9 = vadd.f32 %v2821_v24, %v5160_v4  ;;  %v4019_v4 = vld [vmem:[#allocation20 + $0x10] sm:$0xff]  }
0x10a6   : > { %3762 = vmatpush3.bf16.msra.mxu0 %v4019_v4  ;;  %v3478_v24 = vld [vmem:[%s5467_s18 + $0x1] ss:$0 sm:$0xff] }
0x10a7   : > { %v2833_v10 = vsel %vm1012_vm3, %v2825_v9, 0.0 }
0x10a8   : > { %2834 = vadd.xlane.f32.xlu1 %v2833_v10 }
0x112d   : > { %v2832_v11 = vpop.xlane.xlu0 %2831 }
0x112e   : > { %v2836_v12 = vmul.f32 0.03125, %v2832_v11 }
0x1130   : > { %v2838_v13 = vsub.f32 %v2824_v5, %v2836_v12 }
0x1131   : > { %v2835_v14 = vpop.xlane.xlu1 %2834 }
0x1132   : > { %v2837_v15 = vmul.f32 0.03125, %v2835_v14  ;;  %v2840_v16 = vmul.f32 %v2838_v13, %v2838_v13 }
0x1134   : > { %v2839_v17 = vsub.f32 %v2825_v9, %v2837_v15  ;;  %v2842_v3 = vsel %vm1012_vm3, %v2840_v16, 0.0 }
0x1135   : > { %2843 = vadd.xlane.f32.xlu0 %v2842_v3 }
0x1136   : > { %v2841_v18 = vmul.f32 %v2839_v17, %v2839_v17 }
0x1138   : > { %v2845_v19 = vsel %vm1012_vm3, %v2841_v18, 0.0 }
0x1139   : > { %2846 = vadd.xlane.f32.xlu0 %v2845_v19 }
0x11be   : > { %v2844_v23 = vpop.xlane.xlu0 %2843 }
0x11bf   : > { %v2848_v49 = vmul.f32 0.03125, %v2844_v23 }
0x11c1   : > { %v2850_v25 = vadd.f32 1e-05, %v2848_v49 }
0x11c2   : > { %v2847_v59 = vpop.xlane.xlu0 %2846 }
0x11c3   : > { %4100 = vrsqrt.f32 %v2850_v25  ;;  %v2849_v26 = vmul.f32 0.03125, %v2847_v59 }
0x11c5   : > { %v2851_v27 = vadd.f32 1e-05, %v2849_v26 }
0x11c7   : > { %4102 = vrsqrt.f32 %v2851_v27  ;;  %v3112_v27 = vld [vmem:[%s907_s27] sm:$0xff] }
0x11d0   : > { %v4101_v28 = vpop.eup %4100 }
0x11d1   : > { %v2854_v29 = vmul.f32 %v4101_v28, %v2838_v13  ;;  %v3113_v28 = vld [vmem:[%s907_s27 + $0x8] sm:$0xff] }
0x11d3   : > { %v2862_v33 = vmul.f32 %v3463_v30, %v2854_v29 }
0x11d4   : > { %v4103_v31 = vpop.eup %4102 }
0x11d5   : > { %v2855_v32 = vmul.f32 %v4103_v31, %v2839_v17  ;;  %v2870_v36 = vadd.f32 %v3464_v34, %v2862_v33  ;;  %v4573_v17 = vmov 0  }
0x11d6   : > { %3992 = vset.pattern.permute.xlu1 %v4573_v17  ;;  %3993 = vset.pattern.permute.xlu0 %v4573_v17 }
0x11d7   : > { %v2863_v35 = vmul.f32 %v3463_v30, %v2855_v32 }
0x11d9   : > { %v2871_v20 = vadd.f32 %v3464_v34, %v2863_v35 }
0x11db   : > { %v2872_v37 = vpack.c.bf16 %v2871_v20, %v2870_v36 }
0x11dd   : > { %3764 = vmatmul.mubr.msk.bf16.vlgmr.msra.gmra.mxu0 %vm1012_vm3, %v2872_v37  ;;  %v3487_v37 = vld [vmem:[%s5469_s6 + $0x1] ss:$0 sm:$0xff]  ;;  %s4462_s6 = scalar_lea.vmem %s4461_s5, 512 }
0x11de   : > { %p4464_p11 = scmp.lt.s32.totalorder %s4462_s6, %s4456_s0 }
0x11e0   : > { %p4465_p10 = por %p4464_p11, %p4463_p3 }
0x11e2   : > { %p4466_p12 = pnand %p4465_p10, %p4459_p1 }
0x129d   : > { %v2935_v42 = vpop.f32.mrf.mxu0 }
0x129e   : > { %v2936_v43 = vadd.f32 %v3465_v41, %v2935_v42 }
0x129f   : > { %v3765_v44 = vpop.f32.mrf.mxu0 }
0x12a0   : > { %v2944_v45 = vmul.f32 0.044715, %v2936_v43  ;;  %v2942_v62 = vmul.f32 0.5, %v2936_v43 }
0x12a1   : > { %v2938_v46 = vpop.f32.mrf.mxu0 }
0x12a2   : > { %v2946_v47 = vmul.f32 %v2944_v45, %v2936_v43  ;;  %v2939_v48 = vadd.f32 %v3465_v41, %v2938_v46 }
0x12a3   : > { %v3766_v50 = vpop.f32.mrf.mxu0 }
0x12a4   : > { %v2948_v51 = vmul.f32 %v2946_v47, %v2936_v43  ;;  %v2945_v52 = vmul.f32 0.044715, %v2939_v48  ;;  %v2943_v63 = vmul.f32 0.5, %v2939_v48 }
0x12a6   : > { %v2950_v53 = vadd.f32 %v2948_v51, %v2936_v43  ;;  %v2947_v54 = vmul.f32 %v2945_v52, %v2939_v48 }
0x12a8   : > { %v2952_v55 = vmul.f32 0.7978846, %v2950_v53  ;;  %v2949_v56 = vmul.f32 %v2947_v54, %v2939_v48 }
0x12aa   : > { %4104 = vtanh.f32 %v2952_v55  ;;  %v2951_v57 = vadd.f32 %v2949_v56, %v2939_v48 }
0x12ac   : > { %v2953_v58 = vmul.f32 0.7978846, %v2951_v57 }
0x12ae   : > { %4106 = vtanh.f32 %v2953_v58 }
0x12b7   : > { %v4105_v0 = vpop.eup %4104 }
0x12b8   : > { %v2956_v60 = vadd.f32 1.0, %v4105_v0 }
0x12ba   : > { %v2958_v2 = vmul.f32 %v2956_v60, %v2942_v62 }
0x12bb   : > { %v4107_v61 = vpop.eup %4106 }
0x12bc   : > { %v2957_v1 = vadd.f32 1.0, %v4107_v61 }
0x12be   : > { %v2959_v5 = vmul.f32 %v2957_v1, %v2943_v63 }
0x12c0   : > { %v2960_v6 = vpack.c.bf16 %v2959_v5, %v2958_v2 }
0x12c2   : > { %3776 = vmatmul.mubr.msk.bf16.vlgmr.msra.gmra.mxu1 %vm1948_vm7, %v2960_v6 }
0x1382   : > { %v3039_v7 = vpop.f32.mrf.mxu1 }
0x1383   : > { %v3040_v8 = vadd.f32 %v3478_v24, %v3039_v7 }
0x1384   : > { %v3777_v9 = vpop.f32.mrf.mxu1 }
0x1385   : > { %v3046_v10 = vadd.f32 %v3040_v8, %v2870_v36  ;;  %v3486_v36 = vld [vmem:[%s5468_s13 + $0x1] ss:$0 sm:$0xff] }
0x1386   : > { %v3042_v11 = vpop.f32.mrf.mxu1 }
0x1387   : > { %v3043_v12 = vadd.f32 %v3478_v24, %v3042_v11  ;;  %v3052_v13 = vsel %vm1012_vm3, %v3046_v10, 0.0 }
0x1388   : > { %3053 = vadd.xlane.f32.xlu1 %v3052_v13  ;;  %v3778_v14 = vpop.f32.mrf.mxu1 }
0x1389   : > { %v3047_v15 = vadd.f32 %v3043_v12, %v2871_v20 }
0x138b   : > { %v3055_v16 = vsel %vm1012_vm3, %v3047_v15, 0.0 }
0x138c   : > { %3056 = vadd.xlane.f32.xlu0 %v3055_v16 }
0x1411   : > { %v3054_v3 = vpop.xlane.xlu1 %3053 }
0x1412   : > { %v3058_v18 = vmul.f32 0.03125, %v3054_v3 }
0x1414   : > { %v3060_v19 = vsub.f32 %v3046_v10, %v3058_v18 }
0x1415   : > { %v3057_v22 = vpop.xlane.xlu0 %3056 }
0x1416   : > { %v3059_v4 = vmul.f32 0.03125, %v3057_v22  ;;  %v3062_v23 = vmul.f32 %v3060_v19, %v3060_v19 }
0x1418   : > { %v3061_v49 = vsub.f32 %v3047_v15, %v3059_v4  ;;  %v3064_v25 = vsel %vm1012_vm3, %v3062_v23, 0.0 }
0x1419   : > { %3065 = vadd.xlane.f32.xlu1 %v3064_v25 }
0x141a   : > { %v3063_v59 = vmul.f32 %v3061_v49, %v3061_v49 }
0x141c   : > { %v3067_v26 = vsel %vm1012_vm3, %v3063_v59, 0.0 }
0x141d   : > { %3068 = vadd.xlane.f32.xlu0 %v3067_v26 }
0x142a   : > { %3116 = vperm.xlu1 %3992, %v3112_v27  }
0x1433   : > { %3121 = vperm.xlu0 %3993, %v3113_v28  }
0x14a2   : > { %v3066_v29 = vpop.xlane.xlu1 %3065 }
0x14a3   : > { %v3070_v30 = vmul.f32 0.03125, %v3066_v29 }
0x14a5   : > { %v3072_v31 = vadd.f32 1e-05, %v3070_v30 }
0x14a6   : > { %v3069_v32 = vpop.xlane.xlu0 %3068  ;;  %v3117_v57 = vpop.permute.xlu1 %3116 }
0x14a7   : > { %4108 = vrsqrt.f32 %v3072_v31  ;;  %v3071_v33 = vmul.f32 0.03125, %v3069_v32 }
0x14a9   : > { %v3073_v34 = vadd.f32 1e-05, %v3071_v33 }
0x14ab   : > { %4110 = vrsqrt.f32 %v3073_v34 }
0x14ae   : > { %v3122_v63 = vpop.permute.xlu0 %3121 }
0x14b4   : > { %v4109_v35 = vpop.eup %4108 }
0x14b5   : > { %v3076_v20 = vmul.f32 %v4109_v35, %v3060_v19 }
0x14b7   : > { %v3084_v38 = vmul.f32 %v3486_v36, %v3076_v20 }
0x14b8   : > { %v4111_v39 = vpop.eup %4110 }
0x14b9   : > { %v3077_v21 = vmul.f32 %v4111_v39, %v3061_v49  ;;  %v3092_v40 = vadd.f32 %v3487_v37, %v3084_v38 }
0x14bb   : > { %v3085_v41 = vmul.f32 %v3486_v36, %v3077_v21  ;;  %v3096_v42 = vmul.f32 0.044715, %v3092_v40  ;;  %v3094_v55 = vmul.f32 0.5, %v3092_v40 }
0x14bd   : > { %v3098_v43 = vmul.f32 %v3096_v42, %v3092_v40  ;;  %v3093_v44 = vadd.f32 %v3487_v37, %v3085_v41 }
0x14bf   : > { %v3100_v45 = vmul.f32 %v3098_v43, %v3092_v40  ;;  %v3097_v46 = vmul.f32 0.044715, %v3093_v44  ;;  %v3095_v61 = vmul.f32 0.5, %v3093_v44 }
0x14c1   : > { %v3102_v47 = vadd.f32 %v3100_v45, %v3092_v40  ;;  %v3099_v48 = vmul.f32 %v3097_v46, %v3093_v44 }
0x14c3   : > { %v3104_v50 = vmul.f32 0.7978846, %v3102_v47  ;;  %v3101_v51 = vmul.f32 %v3099_v48, %v3093_v44 }
0x14c5   : > { %4112 = vtanh.f32 %v3104_v50  ;;  %v3103_v52 = vadd.f32 %v3101_v51, %v3093_v44 }
0x14c7   : > { %v3105_v53 = vmul.f32 0.7978846, %v3103_v52 }
0x14c9   : > { %4114 = vtanh.f32 %v3105_v53 }
0x14d2   : > { %v4113_v54 = vpop.eup %4112 }
0x14d3   : > { %v3108_v56 = vadd.f32 1.0, %v4113_v54 }
0x14d5   : > { %v3110_v58 = vmul.f32 %v3108_v56, %v3094_v55 }
0x14d6   : > { %v4115_v0 = vpop.eup %4114 }
0x14d7   : > { %v3124_v60 = vmul.f32 %v3117_v57, %v3110_v58  ;;  %v3109_v62 = vadd.f32 1.0, %v4115_v0 }
0x14d9   : > { %3126 = vst.msk [vmem:[%s897_s24] sm:$0xff] %vm1012_vm3, %v3124_v60  ;;  %v3111_v1 = vmul.f32 %v3109_v62, %v3095_v61 }
0x14db   : > { %v3125_v2 = vmul.f32 %v3122_v63, %v3111_v1 }
0x14dd   : > { %3127 = vst.msk [vmem:[%s897_s24 + $0x8] sm:$0xff] %vm1012_vm3, %v3125_v2 }
0x14de   : > { %4469 = shalt.err (!%p4466_p12)
}
0x14df   : > { %s4470_s24 = scalar_lea.hbm %s5320_s7, 256  ;;  %s4474_s10 = scalar_lea.hbm %s5476_s4, 512 }
0x14e0   : > { %p4471_p13 = scmp.ne.s32.totalorder %s5320_s7, %s4470_s24  ;;  %p4475_p4 = scmp.lt.s32.totalorder %s5320_s7, %s5476_s4 }
0x14e1   : > { %p4476_p8 = scmp.lt.s32.totalorder %s4474_s10, %s4470_s24 }
0x14e2   : > { %p4472_p0 = pnand %p4471_p13, %p5477_p6 }
0x14e3   : > { %p4477_p9 = por %p4476_p8, %p4475_p4 }
0x14e4   : > { %p4473_p2 = pneg %p4472_p0 }
0x14e6   : > { %p4478_p7 = pnand %p4477_p9, %p4473_p2 }
0x14e8   : > { %4481 = shalt.err (!%p4478_p7)
}
0x14e9   : > { %s4575_s5 = smov 128   ;;  %s5478_s6 = scalar_lea.sflag [#allocation4], %s4915_s9 }
0x14ea   : > { %3829 = dma.vmem_to_hbm [thread:$0]  (%p5477_p6), %s5315_s11, 256, %s5320_s7, %s5478_s6, %s4575_s5, %s4575_s5, %s5471_s21  }
0x14eb PF: > { %s3157_s0 = sand.u32 1, %s4532_s3   ;;  %p5479_p5 = scmp.ne.s32.totalorder %s5446_s19, 0 }
0x14ec   : > { %p5480_p1 = scmp.ge.s32.totalorder %s4544_s30, 2  ;;  %s3158_s12 = scalar_lea.sflag [#allocation4], %s3157_s0 }
0x14ee   : > { %p3873_p3 = pnand %p5480_p1, %p5479_p5 }
0x14f0   : > { %p3874_p11 = pneg %p3873_p3 }
0x14f2   : > { %4527 = dma.done.wait (%p3874_p11), %s3158_s12, 256  }
0x14f3   : > { %4529 = vsyncadd (%p3874_p11), %s3158_s12, 4294967040  ;;  %p41_p10 = scmp.ge.s32.totalorder %s4852_s2, 4   ;;  %s5481_s3 = smov %s4536_s28 }
0x14f4   : > { %s5482_s28 = smov %s4540_s29  ;;  %s5483_s29 = smov %s4863_s25 }
0x14f5   : > { %s5484_s30 = smov %s4852_s2  ;;  %43 = sbr.rel (!%p41_p10) target bundleno = 30 (0x1e), region = 223 }
0x14fa   :  { %3163 = vsyncpa [#allocation3], 1 }
0x14fb   :  { %3165 = vsyncpa [#allocation3 + $0x1], 1 }
0x14fc   :  { %3166 = vsyncpa [#allocation6], 1 }
0x14fd   :  { %3167 = vsyncpa [#allocation9], 1 }
0x14fe   :  { %3168 = vsyncpa [#allocation12], 1 }
0x14ff   :  { %3169 = vsyncpa [#allocation15], 1 }
0x1500   :  { %3170 = vsyncpa [#allocation18], 1 }
0x1501   :  { %3171 = vsyncpa [#allocation21], 1 }
0x1502   :  { %3172 = vsyncpa [#allocation4], 1 }
0x1503   :  { %3174 = vsyncpa [#allocation4 + $0x1], 1 }

</bundles_post_ra>
